<compile_context>
chip_gen: v5e
topology: v5e:2x2
jax: 0.10.0
libtpu: 0.0.40
codegen_flags: <defaults>
</compile_context>

<pallas_src>
import jax
import jax.numpy as jnp
from jax.experimental import pallas as pl
from jax.experimental.pallas import tpu as pltpu


# ---------------------------------------------------------------------------
# Fused Conv3x3(pad=1) + BatchNorm(scale/shift) + ReLU Pallas kernel
# ---------------------------------------------------------------------------

def _conv3x3_bn_relu_kernel(x_ref, w_ref, scale_ref, shift_ref, o_ref):
    """Fused 3x3 convolution (input already zero-padded), BN, ReLU.

    x_ref:     (H+2, W+2, Cin)  padded NHWC activation (batch dim squeezed)
    w_ref:     (9, Cin, Cout)   tap-major weight matrix
    scale_ref: (1, Cout)        gamma / sqrt(running_var + eps)
    shift_ref: (1, Cout)        (conv_bias - running_mean) * scale + beta
    o_ref:     (H, W, Cout)
    """
    H, W, Cout = o_ref.shape
    Cin = x_ref.shape[-1]

    x = x_ref[...]                       # whole padded block resident in VMEM
    acc = jnp.zeros((H * W, Cout), jnp.float32)
    # Fused im2col: 9 shifted taps, each a VMEM slice, accumulated on the MXU.
    for idx in range(9):
        di, dj = idx // 3, idx % 3
        patch = x[di:di + H, dj:dj + W, :].reshape(H * W, Cin)
        acc = acc + jnp.dot(patch, w_ref[idx],
                            preferred_element_type=jnp.float32)

    out = acc * scale_ref[...] + shift_ref[...]      # fused bias + BatchNorm
    out = jnp.maximum(out, 0.0)                      # fused ReLU
    o_ref[...] = out.reshape(H, W, Cout).astype(o_ref.dtype)


def conv3x3_bn_relu(x_nhwc, w, b, gamma, beta, mean, var, *, eps=1e-5):
    """x: (N, H, W, Cin) NHWC.  w: (Cout, Cin, 3, 3) in PyTorch layout."""
    N, H, W, Cin = x_nhwc.shape
    Cout = w.shape[0]

    xpad = jnp.pad(x_nhwc, ((0, 0), (1, 1), (1, 1), (0, 0)))
    # (Cout, Cin, kh, kw) -> (kh*kw, Cin, Cout), tap-major, so the kernel's
    # w_ref[idx] is the (Cin, Cout) matrix for tap (di, dj).
    w_mat = jnp.transpose(w, (2, 3, 1, 0)).reshape(9, Cin, Cout)

    # Fold conv bias + eval-mode BatchNorm into per-channel scale/shift.
    scale = gamma / jnp.sqrt(var + eps)
    shift = (b - mean) * scale + beta
    scale = scale.reshape(1, Cout).astype(jnp.float32)
    shift = shift.reshape(1, Cout).astype(jnp.float32)

    return pl.pallas_call(
        _conv3x3_bn_relu_kernel,
        out_shape=jax.ShapeDtypeStruct((N, H, W, Cout), jnp.float32),
        grid=(N,),
        in_specs=[
            # One padded image per grid step (halo included, batch squeezed).
            pl.BlockSpec((None, H + 2, W + 2, Cin), lambda n: (n, 0, 0, 0)),
            pl.BlockSpec((9, Cin, Cout), lambda n: (0, 0, 0)),
            pl.BlockSpec((1, Cout), lambda n: (0, 0)),
            pl.BlockSpec((1, Cout), lambda n: (0, 0)),
        ],
        out_specs=pl.BlockSpec((None, H, W, Cout), lambda n: (n, 0, 0, 0)),
        compiler_params=pltpu.CompilerParams(
            dimension_semantics=("parallel",)),
    )(xpad, w_mat, scale, shift)


# ---------------------------------------------------------------------------
# conv_block parameters + forward (matches the PyTorch module)
# ---------------------------------------------------------------------------

def init_conv_block_params(key, in_ch, out_ch):
    k1, k2, k3, k4 = jax.random.split(key, 4)

    def conv_bn(kw, kb, cin, cout):
        fan_in = 9 * cin
        w = jax.random.normal(kw, (cout, cin, 3, 3), jnp.float32) * (2.0 / fan_in) ** 0.5
        b = jnp.zeros((cout,), jnp.float32)
        sub = jax.random.split(kb, 4)
        gamma = 1.0 + 0.1 * jax.random.normal(sub[0], (cout,), jnp.float32)
        beta = 0.1 * jax.random.normal(sub[1], (cout,), jnp.float32)
        running_mean = 0.1 * jax.random.normal(sub[2], (cout,), jnp.float32)
        running_var = jax.random.uniform(sub[3], (cout,), jnp.float32,
                                         minval=0.5, maxval=1.5)
        return (w, b, gamma, beta, running_mean, running_var)

    return {
        'conv1': conv_bn(k1, k2, in_ch, out_ch),
        'conv2': conv_bn(k3, k4, out_ch, out_ch),
    }


def conv_block_forward(params, x_nchw):
    x = jnp.transpose(x_nchw, (0, 2, 3, 1))          # NCHW -> NHWC
    h = conv3x3_bn_relu(x, *params['conv1'])         # Conv3x3 + BN + ReLU
    h = conv3x3_bn_relu(h, *params['conv2'])         # Conv3x3 + BN + ReLU
    return jnp.transpose(h, (0, 3, 1, 2))            # NHWC -> NCHW


if __name__ == "__main__":
    key = jax.random.PRNGKey(0)
    pkey, xkey = jax.random.split(key)

    in_ch, out_ch = 4, 32
    batch, H, W = 2, 16, 16

    params = init_conv_block_params(pkey, in_ch, out_ch)
    x = jax.random.normal(xkey, (batch, in_ch, H, W), jnp.float32)

    fwd = jax.jit(conv_block_forward)
    out = fwd(params, x)
    out = jax.block_until_ready(out)

    assert out.shape == (batch, out_ch, H, W), out.shape
    assert bool(jnp.all(jnp.isfinite(out)))
    assert bool(jnp.all(out >= 0.0))                 # ReLU output
    print("KERNEL_OK")
</pallas_src>

<mosaic_0001>
module attributes {stable_mosaic.version = 11 : i64} {
  func.func @_conv3x3_bn_relu_kernel(%arg0: i32, %arg1: memref<1x18x18x4xf32, #tpu.memory_space<vmem>>, %arg2: memref<9x4x32xf32, #tpu.memory_space<vmem>>, %arg3: memref<1x32xf32, #tpu.memory_space<vmem>>, %arg4: memref<1x32xf32, #tpu.memory_space<vmem>>, %arg5: memref<1x16x16x32xf32, #tpu.memory_space<vmem>>) attributes {dimension_semantics = [#tpu.dimension_semantics<parallel>], iteration_bounds = array<i64: 2>, scalar_prefetch = 0 : i64, scratch_operands = 0 : i64, tpu.core_type = #tpu.core_type<tc>, window_params = [{transform_indices = @transform_0, window_bounds = array<i64: 1, 18, 18, 4>}, {pipeline_mode = #tpu.pipeline_mode<synchronous>, transform_indices = @transform_1, window_bounds = array<i64: 9, 4, 32>}, {pipeline_mode = #tpu.pipeline_mode<synchronous>, transform_indices = @transform_2, window_bounds = array<i64: 1, 32>}, {pipeline_mode = #tpu.pipeline_mode<synchronous>, transform_indices = @transform_3, window_bounds = array<i64: 1, 32>}, {transform_indices = @transform_4, window_bounds = array<i64: 1, 16, 16, 32>}]} {
    %c0 = arith.constant 0 : index
    %c0_0 = arith.constant 0 : index
    %c0_1 = arith.constant 0 : index
    %c0_2 = arith.constant 0 : index
    %0 = vector.load %arg1[%c0, %c0_0, %c0_1, %c0_2] : memref<1x18x18x4xf32, #tpu.memory_space<vmem>>, vector<1x18x18x4xf32>
    %1 = vector.shape_cast %0 : vector<1x18x18x4xf32> to vector<18x18x4xf32>
    %cst = arith.constant 0.000000e+00 : f32
    %2 = vector.broadcast %cst : f32 to vector<256x32xf32>
    %3 = vector.extract_strided_slice %1 {offsets = [0, 0, 0], sizes = [16, 16, 4], strides = [1, 1, 1]} : vector<18x18x4xf32> to vector<16x16x4xf32>
    %4 = vector.shape_cast %3 : vector<16x16x4xf32> to vector<256x4xf32>
    %c0_3 = arith.constant 0 : index
    %c0_4 = arith.constant 0 : index
    %c0_5 = arith.constant 0 : index
    %5 = vector.load %arg2[%c0_3, %c0_4, %c0_5] : memref<9x4x32xf32, #tpu.memory_space<vmem>>, vector<1x4x32xf32>
    %6 = vector.shape_cast %5 : vector<1x4x32xf32> to vector<4x32xf32>
    %cst_6 = arith.constant dense<0.000000e+00> : vector<256x32xf32>
    %7 = tpu.matmul %4, %6, %cst_6 {dimension_numbers = #tpu.dot_dimension_numbers<[1], [0], [0], [1], [0, 0, 1, 1], [], []>} : vector<256x4xf32>, vector<4x32xf32>, vector<256x32xf32> -> vector<256x32xf32>
    %8 = arith.addf %2, %7 : vector<256x32xf32>
    %9 = vector.extract_strided_slice %1 {offsets = [0, 1, 0], sizes = [16, 16, 4], strides = [1, 1, 1]} : vector<18x18x4xf32> to vector<16x16x4xf32>
    %10 = vector.shape_cast %9 : vector<16x16x4xf32> to vector<256x4xf32>
    %c1 = arith.constant 1 : index
    %c0_7 = arith.constant 0 : index
    %c0_8 = arith.constant 0 : index
    %11 = vector.load %arg2[%c1, %c0_7, %c0_8] : memref<9x4x32xf32, #tpu.memory_space<vmem>>, vector<1x4x32xf32>
    %12 = vector.shape_cast %11 : vector<1x4x32xf32> to vector<4x32xf32>
    %cst_9 = arith.constant dense<0.000000e+00> : vector<256x32xf32>
    %13 = tpu.matmul %10, %12, %cst_9 {dimension_numbers = #tpu.dot_dimension_numbers<[1], [0], [0], [1], [0, 0, 1, 1], [], []>} : vector<256x4xf32>, vector<4x32xf32>, vector<256x32xf32> -> vector<256x32xf32>
    %14 = arith.addf %8, %13 : vector<256x32xf32>
    %15 = vector.extract_strided_slice %1 {offsets = [0, 2, 0], sizes = [16, 16, 4], strides = [1, 1, 1]} : vector<18x18x4xf32> to vector<16x16x4xf32>
    %16 = vector.shape_cast %15 : vector<16x16x4xf32> to vector<256x4xf32>
    %c2 = arith.constant 2 : index
    %c0_10 = arith.constant 0 : index
    %c0_11 = arith.constant 0 : index
    %17 = vector.load %arg2[%c2, %c0_10, %c0_11] : memref<9x4x32xf32, #tpu.memory_space<vmem>>, vector<1x4x32xf32>
    %18 = vector.shape_cast %17 : vector<1x4x32xf32> to vector<4x32xf32>
    %cst_12 = arith.constant dense<0.000000e+00> : vector<256x32xf32>
    %19 = tpu.matmul %16, %18, %cst_12 {dimension_numbers = #tpu.dot_dimension_numbers<[1], [0], [0], [1], [0, 0, 1, 1], [], []>} : vector<256x4xf32>, vector<4x32xf32>, vector<256x32xf32> -> vector<256x32xf32>
    %20 = arith.addf %14, %19 : vector<256x32xf32>
    %21 = vector.extract_strided_slice %1 {offsets = [1, 0, 0], sizes = [16, 16, 4], strides = [1, 1, 1]} : vector<18x18x4xf32> to vector<16x16x4xf32>
    %22 = vector.shape_cast %21 : vector<16x16x4xf32> to vector<256x4xf32>
    %c3 = arith.constant 3 : index
    %c0_13 = arith.constant 0 : index
    %c0_14 = arith.constant 0 : index
    %23 = vector.load %arg2[%c3, %c0_13, %c0_14] : memref<9x4x32xf32, #tpu.memory_space<vmem>>, vector<1x4x32xf32>
    %24 = vector.shape_cast %23 : vector<1x4x32xf32> to vector<4x32xf32>
    %cst_15 = arith.constant dense<0.000000e+00> : vector<256x32xf32>
    %25 = tpu.matmul %22, %24, %cst_15 {dimension_numbers = #tpu.dot_dimension_numbers<[1], [0], [0], [1], [0, 0, 1, 1], [], []>} : vector<256x4xf32>, vector<4x32xf32>, vector<256x32xf32> -> vector<256x32xf32>
    %26 = arith.addf %20, %25 : vector<256x32xf32>
    %27 = vector.extract_strided_slice %1 {offsets = [1, 1, 0], sizes = [16, 16, 4], strides = [1, 1, 1]} : vector<18x18x4xf32> to vector<16x16x4xf32>
    %28 = vector.shape_cast %27 : vector<16x16x4xf32> to vector<256x4xf32>
    %c4 = arith.constant 4 : index
    %c0_16 = arith.constant 0 : index
    %c0_17 = arith.constant 0 : index
    %29 = vector.load %arg2[%c4, %c0_16, %c0_17] : memref<9x4x32xf32, #tpu.memory_space<vmem>>, vector<1x4x32xf32>
    %30 = vector.shape_cast %29 : vector<1x4x32xf32> to vector<4x32xf32>
    %cst_18 = arith.constant dense<0.000000e+00> : vector<256x32xf32>
    %31 = tpu.matmul %28, %30, %cst_18 {dimension_numbers = #tpu.dot_dimension_numbers<[1], [0], [0], [1], [0, 0, 1, 1], [], []>} : vector<256x4xf32>, vector<4x32xf32>, vector<256x32xf32> -> vector<256x32xf32>
    %32 = arith.addf %26, %31 : vector<256x32xf32>
    %33 = vector.extract_strided_slice %1 {offsets = [1, 2, 0], sizes = [16, 16, 4], strides = [1, 1, 1]} : vector<18x18x4xf32> to vector<16x16x4xf32>
    %34 = vector.shape_cast %33 : vector<16x16x4xf32> to vector<256x4xf32>
    %c5 = arith.constant 5 : index
    %c0_19 = arith.constant 0 : index
    %c0_20 = arith.constant 0 : index
    %35 = vector.load %arg2[%c5, %c0_19, %c0_20] : memref<9x4x32xf32, #tpu.memory_space<vmem>>, vector<1x4x32xf32>
    %36 = vector.shape_cast %35 : vector<1x4x32xf32> to vector<4x32xf32>
    %cst_21 = arith.constant dense<0.000000e+00> : vector<256x32xf32>
    %37 = tpu.matmul %34, %36, %cst_21 {dimension_numbers = #tpu.dot_dimension_numbers<[1], [0], [0], [1], [0, 0, 1, 1], [], []>} : vector<256x4xf32>, vector<4x32xf32>, vector<256x32xf32> -> vector<256x32xf32>
    %38 = arith.addf %32, %37 : vector<256x32xf32>
    %39 = vector.extract_strided_slice %1 {offsets = [2, 0, 0], sizes = [16, 16, 4], strides = [1, 1, 1]} : vector<18x18x4xf32> to vector<16x16x4xf32>
    %40 = vector.shape_cast %39 : vector<16x16x4xf32> to vector<256x4xf32>
    %c6 = arith.constant 6 : index
    %c0_22 = arith.constant 0 : index
    %c0_23 = arith.constant 0 : index
    %41 = vector.load %arg2[%c6, %c0_22, %c0_23] : memref<9x4x32xf32, #tpu.memory_space<vmem>>, vector<1x4x32xf32>
    %42 = vector.shape_cast %41 : vector<1x4x32xf32> to vector<4x32xf32>
    %cst_24 = arith.constant dense<0.000000e+00> : vector<256x32xf32>
    %43 = tpu.matmul %40, %42, %cst_24 {dimension_numbers = #tpu.dot_dimension_numbers<[1], [0], [0], [1], [0, 0, 1, 1], [], []>} : vector<256x4xf32>, vector<4x32xf32>, vector<256x32xf32> -> vector<256x32xf32>
    %44 = arith.addf %38, %43 : vector<256x32xf32>
    %45 = vector.extract_strided_slice %1 {offsets = [2, 1, 0], sizes = [16, 16, 4], strides = [1, 1, 1]} : vector<18x18x4xf32> to vector<16x16x4xf32>
    %46 = vector.shape_cast %45 : vector<16x16x4xf32> to vector<256x4xf32>
    %c7 = arith.constant 7 : index
    %c0_25 = arith.constant 0 : index
    %c0_26 = arith.constant 0 : index
    %47 = vector.load %arg2[%c7, %c0_25, %c0_26] : memref<9x4x32xf32, #tpu.memory_space<vmem>>, vector<1x4x32xf32>
    %48 = vector.shape_cast %47 : vector<1x4x32xf32> to vector<4x32xf32>
    %cst_27 = arith.constant dense<0.000000e+00> : vector<256x32xf32>
    %49 = tpu.matmul %46, %48, %cst_27 {dimension_numbers = #tpu.dot_dimension_numbers<[1], [0], [0], [1], [0, 0, 1, 1], [], []>} : vector<256x4xf32>, vector<4x32xf32>, vector<256x32xf32> -> vector<256x32xf32>
    %50 = arith.addf %44, %49 : vector<256x32xf32>
    %51 = vector.extract_strided_slice %1 {offsets = [2, 2, 0], sizes = [16, 16, 4], strides = [1, 1, 1]} : vector<18x18x4xf32> to vector<16x16x4xf32>
    %52 = vector.shape_cast %51 : vector<16x16x4xf32> to vector<256x4xf32>
    %c8 = arith.constant 8 : index
    %c0_28 = arith.constant 0 : index
    %c0_29 = arith.constant 0 : index
    %53 = vector.load %arg2[%c8, %c0_28, %c0_29] : memref<9x4x32xf32, #tpu.memory_space<vmem>>, vector<1x4x32xf32>
    %54 = vector.shape_cast %53 : vector<1x4x32xf32> to vector<4x32xf32>
    %cst_30 = arith.constant dense<0.000000e+00> : vector<256x32xf32>
    %55 = tpu.matmul %52, %54, %cst_30 {dimension_numbers = #tpu.dot_dimension_numbers<[1], [0], [0], [1], [0, 0, 1, 1], [], []>} : vector<256x4xf32>, vector<4x32xf32>, vector<256x32xf32> -> vector<256x32xf32>
    %56 = arith.addf %50, %55 : vector<256x32xf32>
    %c0_31 = arith.constant 0 : index
    %c0_32 = arith.constant 0 : index
    %57 = vector.load %arg3[%c0_31, %c0_32] : memref<1x32xf32, #tpu.memory_space<vmem>>, vector<1x32xf32>
    %58 = vector.broadcast %57 : vector<1x32xf32> to vector<256x32xf32>
    %59 = arith.mulf %56, %58 : vector<256x32xf32>
    %c0_33 = arith.constant 0 : index
    %c0_34 = arith.constant 0 : index
    %60 = vector.load %arg4[%c0_33, %c0_34] : memref<1x32xf32, #tpu.memory_space<vmem>>, vector<1x32xf32>
    %61 = vector.broadcast %60 : vector<1x32xf32> to vector<256x32xf32>
    %62 = arith.addf %59, %61 : vector<256x32xf32>
    %cst_35 = arith.constant 0.000000e+00 : f32
    %63 = vector.broadcast %cst_35 : f32 to vector<256x32xf32>
    %64 = arith.maximumf %62, %63 : vector<256x32xf32>
    %65 = vector.shape_cast %64 : vector<256x32xf32> to vector<16x16x32xf32>
    %c0_36 = arith.constant 0 : index
    %c0_37 = arith.constant 0 : index
    %c0_38 = arith.constant 0 : index
    %c0_39 = arith.constant 0 : index
    %66 = vector.load %arg5[%c0_36, %c0_37, %c0_38, %c0_39] : memref<1x16x16x32xf32, #tpu.memory_space<vmem>>, vector<1x16x16x32xf32>
    %67 = vector.shape_cast %66 : vector<1x16x16x32xf32> to vector<16x16x32xf32>
    %68 = vector.shape_cast %65 : vector<16x16x32xf32> to vector<1x16x16x32xf32>
    tpu.vector_store %arg5[%c0_36, %c0_37, %c0_38, %c0_39], %68 {strides = array<i32>} : memref<1x16x16x32xf32, #tpu.memory_space<vmem>>, vector<1x16x16x32xf32>,
    return
  }
  func.func @transform_0(%arg0: i32) -> (i32, i32, i32, i32) {
    %c0_i32 = arith.constant 0 : i32
    %c0_i32_0 = arith.constant 0 : i32
    %c0_i32_1 = arith.constant 0 : i32
    %c0_i32_2 = arith.constant 0 : i32
    return %arg0, %c0_i32, %c0_i32_0, %c0_i32_1 : i32, i32, i32, i32
  }
  func.func @transform_1(%arg0: i32) -> (i32, i32, i32) {
    %c0_i32 = arith.constant 0 : i32
    %c0_i32_0 = arith.constant 0 : i32
    %c0_i32_1 = arith.constant 0 : i32
    %c0_i32_2 = arith.constant 0 : i32
    return %c0_i32, %c0_i32_0, %c0_i32_1 : i32, i32, i32
  }
  func.func @transform_2(%arg0: i32) -> (i32, i32) {
    %c0_i32 = arith.constant 0 : i32
    %c0_i32_0 = arith.constant 0 : i32
    %c0_i32_1 = arith.constant 0 : i32
    return %c0_i32, %c0_i32_0 : i32, i32
  }
  func.func @transform_3(%arg0: i32) -> (i32, i32) {
    %c0_i32 = arith.constant 0 : i32
    %c0_i32_0 = arith.constant 0 : i32
    %c0_i32_1 = arith.constant 0 : i32
    return %c0_i32, %c0_i32_0 : i32, i32
  }
  func.func @transform_4(%arg0: i32) -> (i32, i32, i32, i32) {
    %c0_i32 = arith.constant 0 : i32
    %c0_i32_0 = arith.constant 0 : i32
    %c0_i32_1 = arith.constant 0 : i32
    %c0_i32_2 = arith.constant 0 : i32
    return %arg0, %c0_i32, %c0_i32_0, %c0_i32_1 : i32, i32, i32, i32
  }
}

module attributes {stable_mosaic.version = 11 : i64} {
  func.func @_conv3x3_bn_relu_kernel(%arg0: i32, %arg1: memref<1x18x18x32xf32, #tpu.memory_space<vmem>>, %arg2: memref<9x32x32xf32, #tpu.memory_space<vmem>>, %arg3: memref<1x32xf32, #tpu.memory_space<vmem>>, %arg4: memref<1x32xf32, #tpu.memory_space<vmem>>, %arg5: memref<1x16x16x32xf32, #tpu.memory_space<vmem>>) attributes {dimension_semantics = [#tpu.dimension_semantics<parallel>], iteration_bounds = array<i64: 2>, scalar_prefetch = 0 : i64, scratch_operands = 0 : i64, tpu.core_type = #tpu.core_type<tc>, window_params = [{transform_indices = @transform_0, window_bounds = array<i64: 1, 18, 18, 32>}, {pipeline_mode = #tpu.pipeline_mode<synchronous>, transform_indices = @transform_1, window_bounds = array<i64: 9, 32, 32>}, {pipeline_mode = #tpu.pipeline_mode<synchronous>, transform_indices = @transform_2, window_bounds = array<i64: 1, 32>}, {pipeline_mode = #tpu.pipeline_mode<synchronous>, transform_indices = @transform_3, window_bounds = array<i64: 1, 32>}, {transform_indices = @transform_4, window_bounds = array<i64: 1, 16, 16, 32>}]} {
    %c0 = arith.constant 0 : index
    %c0_0 = arith.constant 0 : index
    %c0_1 = arith.constant 0 : index
    %c0_2 = arith.constant 0 : index
    %0 = vector.load %arg1[%c0, %c0_0, %c0_1, %c0_2] : memref<1x18x18x32xf32, #tpu.memory_space<vmem>>, vector<1x18x18x32xf32>
    %1 = vector.shape_cast %0 : vector<1x18x18x32xf32> to vector<18x18x32xf32>
    %cst = arith.constant 0.000000e+00 : f32
    %2 = vector.broadcast %cst : f32 to vector<256x32xf32>
    %3 = vector.extract_strided_slice %1 {offsets = [0, 0, 0], sizes = [16, 16, 32], strides = [1, 1, 1]} : vector<18x18x32xf32> to vector<16x16x32xf32>
    %4 = vector.shape_cast %3 : vector<16x16x32xf32> to vector<256x32xf32>
    %c0_3 = arith.constant 0 : index
    %c0_4 = arith.constant 0 : index
    %c0_5 = arith.constant 0 : index
    %5 = vector.load %arg2[%c0_3, %c0_4, %c0_5] : memref<9x32x32xf32, #tpu.memory_space<vmem>>, vector<1x32x32xf32>
    %6 = vector.shape_cast %5 : vector<1x32x32xf32> to vector<32x32xf32>
    %cst_6 = arith.constant dense<0.000000e+00> : vector<256x32xf32>
    %7 = tpu.matmul %4, %6, %cst_6 {dimension_numbers = #tpu.dot_dimension_numbers<[1], [0], [0], [1], [0, 0, 1, 1], [], []>} : vector<256x32xf32>, vector<32x32xf32>, vector<256x32xf32> -> vector<256x32xf32>
    %8 = arith.addf %2, %7 : vector<256x32xf32>
    %9 = vector.extract_strided_slice %1 {offsets = [0, 1, 0], sizes = [16, 16, 32], strides = [1, 1, 1]} : vector<18x18x32xf32> to vector<16x16x32xf32>
    %10 = vector.shape_cast %9 : vector<16x16x32xf32> to vector<256x32xf32>
    %c1 = arith.constant 1 : index
    %c0_7 = arith.constant 0 : index
    %c0_8 = arith.constant 0 : index
    %11 = vector.load %arg2[%c1, %c0_7, %c0_8] : memref<9x32x32xf32, #tpu.memory_space<vmem>>, vector<1x32x32xf32>
    %12 = vector.shape_cast %11 : vector<1x32x32xf32> to vector<32x32xf32>
    %cst_9 = arith.constant dense<0.000000e+00> : vector<256x32xf32>
    %13 = tpu.matmul %10, %12, %cst_9 {dimension_numbers = #tpu.dot_dimension_numbers<[1], [0], [0], [1], [0, 0, 1, 1], [], []>} : vector<256x32xf32>, vector<32x32xf32>, vector<256x32xf32> -> vector<256x32xf32>
    %14 = arith.addf %8, %13 : vector<256x32xf32>
    %15 = vector.extract_strided_slice %1 {offsets = [0, 2, 0], sizes = [16, 16, 32], strides = [1, 1, 1]} : vector<18x18x32xf32> to vector<16x16x32xf32>
    %16 = vector.shape_cast %15 : vector<16x16x32xf32> to vector<256x32xf32>
    %c2 = arith.constant 2 : index
    %c0_10 = arith.constant 0 : index
    %c0_11 = arith.constant 0 : index
    %17 = vector.load %arg2[%c2, %c0_10, %c0_11] : memref<9x32x32xf32, #tpu.memory_space<vmem>>, vector<1x32x32xf32>
    %18 = vector.shape_cast %17 : vector<1x32x32xf32> to vector<32x32xf32>
    %cst_12 = arith.constant dense<0.000000e+00> : vector<256x32xf32>
    %19 = tpu.matmul %16, %18, %cst_12 {dimension_numbers = #tpu.dot_dimension_numbers<[1], [0], [0], [1], [0, 0, 1, 1], [], []>} : vector<256x32xf32>, vector<32x32xf32>, vector<256x32xf32> -> vector<256x32xf32>
    %20 = arith.addf %14, %19 : vector<256x32xf32>
    %21 = vector.extract_strided_slice %1 {offsets = [1, 0, 0], sizes = [16, 16, 32], strides = [1, 1, 1]} : vector<18x18x32xf32> to vector<16x16x32xf32>
    %22 = vector.shape_cast %21 : vector<16x16x32xf32> to vector<256x32xf32>
    %c3 = arith.constant 3 : index
    %c0_13 = arith.constant 0 : index
    %c0_14 = arith.constant 0 : index
    %23 = vector.load %arg2[%c3, %c0_13, %c0_14] : memref<9x32x32xf32, #tpu.memory_space<vmem>>, vector<1x32x32xf32>
    %24 = vector.shape_cast %23 : vector<1x32x32xf32> to vector<32x32xf32>
    %cst_15 = arith.constant dense<0.000000e+00> : vector<256x32xf32>
    %25 = tpu.matmul %22, %24, %cst_15 {dimension_numbers = #tpu.dot_dimension_numbers<[1], [0], [0], [1], [0, 0, 1, 1], [], []>} : vector<256x32xf32>, vector<32x32xf32>, vector<256x32xf32> -> vector<256x32xf32>
    %26 = arith.addf %20, %25 : vector<256x32xf32>
    %27 = vector.extract_strided_slice %1 {offsets = [1, 1, 0], sizes = [16, 16, 32], strides = [1, 1, 1]} : vector<18x18x32xf32> to vector<16x16x32xf32>
    %28 = vector.shape_cast %27 : vector<16x16x32xf32> to vector<256x32xf32>
    %c4 = arith.constant 4 : index
    %c0_16 = arith.constant 0 : index
    %c0_17 = arith.constant 0 : index
    %29 = vector.load %arg2[%c4, %c0_16, %c0_17] : memref<9x32x32xf32, #tpu.memory_space<vmem>>, vector<1x32x32xf32>
    %30 = vector.shape_cast %29 : vector<1x32x32xf32> to vector<32x32xf32>
    %cst_18 = arith.constant dense<0.000000e+00> : vector<256x32xf32>
    %31 = tpu.matmul %28, %30, %cst_18 {dimension_numbers = #tpu.dot_dimension_numbers<[1], [0], [0], [1], [0, 0, 1, 1], [], []>} : vector<256x32xf32>, vector<32x32xf32>, vector<256x32xf32> -> vector<256x32xf32>
    %32 = arith.addf %26, %31 : vector<256x32xf32>
    %33 = vector.extract_strided_slice %1 {offsets = [1, 2, 0], sizes = [16, 16, 32], strides = [1, 1, 1]} : vector<18x18x32xf32> to vector<16x16x32xf32>
    %34 = vector.shape_cast %33 : vector<16x16x32xf32> to vector<256x32xf32>
    %c5 = arith.constant 5 : index
    %c0_19 = arith.constant 0 : index
    %c0_20 = arith.constant 0 : index
    %35 = vector.load %arg2[%c5, %c0_19, %c0_20] : memref<9x32x32xf32, #tpu.memory_space<vmem>>, vector<1x32x32xf32>
    %36 = vector.shape_cast %35 : vector<1x32x32xf32> to vector<32x32xf32>
    %cst_21 = arith.constant dense<0.000000e+00> : vector<256x32xf32>
    %37 = tpu.matmul %34, %36, %cst_21 {dimension_numbers = #tpu.dot_dimension_numbers<[1], [0], [0], [1], [0, 0, 1, 1], [], []>} : vector<256x32xf32>, vector<32x32xf32>, vector<256x32xf32> -> vector<256x32xf32>
    %38 = arith.addf %32, %37 : vector<256x32xf32>
    %39 = vector.extract_strided_slice %1 {offsets = [2, 0, 0], sizes = [16, 16, 32], strides = [1, 1, 1]} : vector<18x18x32xf32> to vector<16x16x32xf32>
    %40 = vector.shape_cast %39 : vector<16x16x32xf32> to vector<256x32xf32>
    %c6 = arith.constant 6 : index
    %c0_22 = arith.constant 0 : index
    %c0_23 = arith.constant 0 : index
    %41 = vector.load %arg2[%c6, %c0_22, %c0_23] : memref<9x32x32xf32, #tpu.memory_space<vmem>>, vector<1x32x32xf32>
    %42 = vector.shape_cast %41 : vector<1x32x32xf32> to vector<32x32xf32>
    %cst_24 = arith.constant dense<0.000000e+00> : vector<256x32xf32>
    %43 = tpu.matmul %40, %42, %cst_24 {dimension_numbers = #tpu.dot_dimension_numbers<[1], [0], [0], [1], [0, 0, 1, 1], [], []>} : vector<256x32xf32>, vector<32x32xf32>, vector<256x32xf32> -> vector<256x32xf32>
    %44 = arith.addf %38, %43 : vector<256x32xf32>
    %45 = vector.extract_strided_slice %1 {offsets = [2, 1, 0], sizes = [16, 16, 32], strides = [1, 1, 1]} : vector<18x18x32xf32> to vector<16x16x32xf32>
    %46 = vector.shape_cast %45 : vector<16x16x32xf32> to vector<256x32xf32>
    %c7 = arith.constant 7 : index
    %c0_25 = arith.constant 0 : index
    %c0_26 = arith.constant 0 : index
    %47 = vector.load %arg2[%c7, %c0_25, %c0_26] : memref<9x32x32xf32, #tpu.memory_space<vmem>>, vector<1x32x32xf32>
    %48 = vector.shape_cast %47 : vector<1x32x32xf32> to vector<32x32xf32>
    %cst_27 = arith.constant dense<0.000000e+00> : vector<256x32xf32>
    %49 = tpu.matmul %46, %48, %cst_27 {dimension_numbers = #tpu.dot_dimension_numbers<[1], [0], [0], [1], [0, 0, 1, 1], [], []>} : vector<256x32xf32>, vector<32x32xf32>, vector<256x32xf32> -> vector<256x32xf32>
    %50 = arith.addf %44, %49 : vector<256x32xf32>
    %51 = vector.extract_strided_slice %1 {offsets = [2, 2, 0], sizes = [16, 16, 32], strides = [1, 1, 1]} : vector<18x18x32xf32> to vector<16x16x32xf32>
    %52 = vector.shape_cast %51 : vector<16x16x32xf32> to vector<256x32xf32>
    %c8 = arith.constant 8 : index
    %c0_28 = arith.constant 0 : index
    %c0_29 = arith.constant 0 : index
    %53 = vector.load %arg2[%c8, %c0_28, %c0_29] : memref<9x32x32xf32, #tpu.memory_space<vmem>>, vector<1x32x32xf32>
    %54 = vector.shape_cast %53 : vector<1x32x32xf32> to vector<32x32xf32>
    %cst_30 = arith.constant dense<0.000000e+00> : vector<256x32xf32>
    %55 = tpu.matmul %52, %54, %cst_30 {dimension_numbers = #tpu.dot_dimension_numbers<[1], [0], [0], [1], [0, 0, 1, 1], [], []>} : vector<256x32xf32>, vector<32x32xf32>, vector<256x32xf32> -> vector<256x32xf32>
    %56 = arith.addf %50, %55 : vector<256x32xf32>
    %c0_31 = arith.constant 0 : index
    %c0_32 = arith.constant 0 : index
    %57 = vector.load %arg3[%c0_31, %c0_32] : memref<1x32xf32, #tpu.memory_space<vmem>>, vector<1x32xf32>
    %58 = vector.broadcast %57 : vector<1x32xf32> to vector<256x32xf32>
    %59 = arith.mulf %56, %58 : vector<256x32xf32>
    %c0_33 = arith.constant 0 : index
    %c0_34 = arith.constant 0 : index
    %60 = vector.load %arg4[%c0_33, %c0_34] : memref<1x32xf32, #tpu.memory_space<vmem>>, vector<1x32xf32>
    %61 = vector.broadcast %60 : vector<1x32xf32> to vector<256x32xf32>
    %62 = arith.addf %59, %61 : vector<256x32xf32>
    %cst_35 = arith.constant 0.000000e+00 : f32
    %63 = vector.broadcast %cst_35 : f32 to vector<256x32xf32>
    %64 = arith.maximumf %62, %63 : vector<256x32xf32>
    %65 = vector.shape_cast %64 : vector<256x32xf32> to vector<16x16x32xf32>
    %c0_36 = arith.constant 0 : index
    %c0_37 = arith.constant 0 : index
    %c0_38 = arith.constant 0 : index
    %c0_39 = arith.constant 0 : index
    %66 = vector.load %arg5[%c0_36, %c0_37, %c0_38, %c0_39] : memref<1x16x16x32xf32, #tpu.memory_space<vmem>>, vector<1x16x16x32xf32>
    %67 = vector.shape_cast %66 : vector<1x16x16x32xf32> to vector<16x16x32xf32>
    %68 = vector.shape_cast %65 : vector<16x16x32xf32> to vector<1x16x16x32xf32>
    tpu.vector_store %arg5[%c0_36, %c0_37, %c0_38, %c0_39], %68 {strides = array<i32>} : memref<1x16x16x32xf32, #tpu.memory_space<vmem>>, vector<1x16x16x32xf32>,
    return
  }
  func.func @transform_0(%arg0: i32) -> (i32, i32, i32, i32) {
    %c0_i32 = arith.constant 0 : i32
    %c0_i32_0 = arith.constant 0 : i32
    %c0_i32_1 = arith.constant 0 : i32
    %c0_i32_2 = arith.constant 0 : i32
    return %arg0, %c0_i32, %c0_i32_0, %c0_i32_1 : i32, i32, i32, i32
  }
  func.func @transform_1(%arg0: i32) -> (i32, i32, i32) {
    %c0_i32 = arith.constant 0 : i32
    %c0_i32_0 = arith.constant 0 : i32
    %c0_i32_1 = arith.constant 0 : i32
    %c0_i32_2 = arith.constant 0 : i32
    return %c0_i32, %c0_i32_0, %c0_i32_1 : i32, i32, i32
  }
  func.func @transform_2(%arg0: i32) -> (i32, i32) {
    %c0_i32 = arith.constant 0 : i32
    %c0_i32_0 = arith.constant 0 : i32
    %c0_i32_1 = arith.constant 0 : i32
    return %c0_i32, %c0_i32_0 : i32, i32
  }
  func.func @transform_3(%arg0: i32) -> (i32, i32) {
    %c0_i32 = arith.constant 0 : i32
    %c0_i32_0 = arith.constant 0 : i32
    %c0_i32_1 = arith.constant 0 : i32
    return %c0_i32, %c0_i32_0 : i32, i32
  }
  func.func @transform_4(%arg0: i32) -> (i32, i32, i32, i32) {
    %c0_i32 = arith.constant 0 : i32
    %c0_i32_0 = arith.constant 0 : i32
    %c0_i32_1 = arith.constant 0 : i32
    %c0_i32_2 = arith.constant 0 : i32
    return %arg0, %c0_i32, %c0_i32_0, %c0_i32_1 : i32, i32, i32, i32
  }
}

</mosaic_0001>

<bundles_post_ra>
// kernel: conv_block_forward.3
= control target key start
LH: loop header
LB: loop body
LE: loop exit
PB: predicated region body
PF: predicated region fallthrough
CT: control target
= control target key end

     0   :  { %9 = vsyncpa [#allocation3], 0  ;;  %s4253_s0 = inlined_call_operand.vmem [shape: f32[2,18,18,32], index: 0, kind: input, shape index: {}]   ;;  %s4254_s1 = inlined_call_operand.vmem [shape: f32[9,32,32], index: 1, kind: input, shape index: {}]   ;;  %s4255_s2 = inlined_call_operand.vmem [shape: f32[1,32], index: 2, kind: input, shape index: {}]   ;;  %s4256_s3 = inlined_call_operand.vmem [shape: f32[1,32], index: 3, kind: input, shape index: {}]   ;;  %s4257_s4 = inlined_call_operand.hbm [shape: f32[2,16,16,32], index: 4, kind: output, shape index: {}]  }
   0x1   :  { %11 = vsyncpa [#allocation3 + $0x1], 0  ;;  %s2705_s15 = smov 0   ;;  %s2707_s16 = smov 0  }
   0x2   :  { %s2709_s17 = smov 0   ;;  %s2711_s18 = smov 0  }
   0x3 LB: > { %s2726_s19 = sadd.s32 4294967295, %s2676_s18   ;;  %s2202_s20 = sadd.s32 4294967294, %s2676_s18   ;;  %s2676_s18 = sphi %s2711_s18, %s4476_s18   ;;  %s2672_s17 = sphi %s2709_s17, %s4475_s17   ;;  %s2668_s16 = sphi %s2707_s16, %s4474_s16   ;;  %s2664_s15 = sphi %s2705_s15, %s4473_s15  }
   0x4   : > { %s2730_s21 = sadd.s32 1, %s2676_s18   ;;  %s113_s22 = sadd.s32 1, %s2672_s17 }
   0x5   : > { %s110_s23 = ssub.s32 %s2676_s18, %s2730_s21  ;;  %p123_p0 = scmp.ne.s32.totalorder %s2672_s17, %s2668_s16 }
   0x6   : > { %p111_p1 = scmp.eq.s32.totalorder %s110_s23, 0  ;;  %p124_p2 = scmp.eq.s32.totalorder %s2726_s19, 1 }
   0x7   : > { %p129_p3 = scmp.ne.s32.totalorder %s2668_s16, %s2664_s15  ;;  %p130_p4 = scmp.eq.s32.totalorder %s2202_s20, 1 }
   0x8   : > { %s2741_s24 = scalar_select %p111_p1, %s2672_s17, %s113_s22  }
   0x9   : > { %p2743_p5 = por %p124_p2, %p123_p0  ;;  %p2747_p6 = por %p130_p4, %p129_p3 }
   0xa   : > { %p2205_p7 = scmp.ge.s32.totalorder %s2676_s18, 1  ;;  %p165_p8 = scmp.lt.s32.totalorder %s2676_s18, 3 }
   0xc   : > { %p166_p9 = pnand %p2205_p7, %p165_p8 }
   0xe   : > { %169 = sbr.rel (%p166_p9) target bundleno = 747 (0x2eb), region = 36 }
  0x13   : > { %v2211_v0 = vld [vmem:[%s4254_s1 + $0x38] sm:$0xff]  ;;  %v2210_v1 = vld [vmem:[%s4254_s1 + $0x30] sm:$0xff]  ;;  %p191_p10 = scmp.lt.s32.totalorder %s2726_s19, 1  ;;  %v2209_v2 = vld [vmem:[%s4254_s1 + $0x28] sm:$0xff]  ;;  %vm302_vm0 = vcmask 1046528   ;;  %vm388_vm1 = vcmask 261120  }
  0x14   : > { %2534 = vmatpush.msra.mxu1 %v2211_v0  ;;  %2535 = vmatpush.msra.mxu2 %v2211_v0  ;;  %v2208_v3 = vld [vmem:[%s4254_s1 + $0x20] sm:$0xff]  ;;  %v2279_v4 = vld [vmem:[%s4254_s1 + $0x58] sm:$0xff]  ;;  %v2278_v8 = vld [vmem:[%s4254_s1 + $0x50] sm:$0xff]  ;;  %vm743_vm2 = vcmask 1045504   ;;  %s188_s20 = sand.u32 1, %s2668_s16   ;;  %s2634_s13 = scalar_lea.hbm %s4257_s4, 512 }
  0x15   : > { %2536 = vmatpush.msra.mxu3 %v2211_v0  ;;  %s192_s7 = scalar_select %p191_p10, %s2726_s19, 1  ;;  %465 = vmatpush.msra.mxu0 %v2211_v0  ;;  %v2315_v5 = vld [vmem:[%s4254_s1 + $0x78] sm:$0xff]  ;;  %v2314_v18 = vld [vmem:[%s4254_s1 + $0x70] sm:$0xff]  ;;  %v2277_v48 = vld [vmem:[%s4254_s1 + $0x48] sm:$0xff] }
  0x16   : > { %2537 = vmatpush.msra.mxu1 %v2210_v1  ;;  %2538 = vmatpush.msra.mxu2 %v2210_v1  ;;  %v253_v6 = vld [vmem:[%s4254_s1 + $0x18] sm:$0xff]  ;;  %v252_v28 = vld [vmem:[%s4254_s1 + $0x10] sm:$0xff]  ;;  %v2313_v50 = vld [vmem:[%s4254_s1 + $0x68] sm:$0xff]  ;;  %s2206_s28 = sshll.u32 %s188_s20, 8 }
  0x17   : > { %2539 = vmatpush.msra.mxu3 %v2210_v1  ;;  %s2546_s10 = smul.u32 432, %s192_s7  ;;  %466 = vmatpush.msra.mxu0 %v2210_v1  ;;  %v2351_v7 = vld [vmem:[%s4254_s1 + $0x98] sm:$0xff]  ;;  %v2350_v35 = vld [vmem:[%s4254_s1 + $0x90] sm:$0xff]  ;;  %v251_v51 = vld [vmem:[%s4254_s1 + $0x8] sm:$0xff]  ;;  %s3949_s29 = scalar_lea.vmem [#allocation2], %s2206_s28 }
  0x18   : > { %2540 = vmatpush.msra.mxu1 %v2209_v2  ;;  %2541 = vmatpush.msra.mxu2 %v2209_v2  ;;  %v2349_v61 = vld [vmem:[%s4254_s1 + $0x88] sm:$0xff]  ;;  %s2137_s7 = sshll.u32 %s3949_s29, 4  ;;  %s2138_s7 = int_to_ptr.vmem [resolvable:$true] %s2137_s7 }
  0x19   : > { %2542 = vmatpush.msra.mxu3 %v2209_v2  ;;  %s2776_s23 = scalar_lea.vmem %s4253_s0, %s2546_s10  ;;  %467 = vmatpush.msra.mxu0 %v2209_v2 }
  0x1a   : > { %2543 = vmatpush.msra.mxu1 %v2208_v3  ;;  %2544 = vmatpush.msra.mxu2 %v2208_v3  ;;  %v2788_v9 = vld [vmem:[%s2776_s23 + $0x60] sm:$0xff]  ;;  %v2791_v10 = vld [vmem:[%s2776_s23 + $0x68] sm:$0xff]  ;;  %v2815_v22 = vld [vmem:[%s2776_s23 + $0x70] sm:$0x3] }
  0x1b   : > { %v2794_v11 = vld [vmem:[%s2776_s23 + $0xc0] sm:$0xff]  ;;  %v323_v12 = vrot.slane %v2788_v9, 1  ;;  %v324_v13 = vrot.slane %v2791_v10, 1  ;;  %v2799_v14 = vld [vmem:[%s2776_s23 + $0xc8] sm:$0xff]  ;;  %2545 = vmatpush.msra.mxu3 %v2208_v3  ;;  %v2824_v25 = vld [vmem:[%s2776_s23 + $0xd0] sm:$0x3]  ;;  %468 = vmatpush.msra.mxu0 %v2208_v3 }
  0x1c   : > { %v343_v15 = vrot.slane %v2794_v11, 1  ;;  %905 = vmatpush.msrb.mxu2 %v2279_v4  ;;  %v2803_v16 = vld [vmem:[%s2776_s23 + $0x120] sm:$0xff]  ;;  %v2806_v17 = vld [vmem:[%s2776_s23 + $0x128] sm:$0xff]  ;;  %v344_v19 = vrot.slane %v2799_v14, 1  ;;  %642 = vmatpush.msrb.mxu1 %v253_v6  ;;  %v2843_v32 = vld [vmem:[%s2776_s23 + $0x130] sm:$0x3] }
  0x1d   : > { %4335 = vst [vmem:[#allocation5_spill] sm:$0xff] %v2803_v16  ;;  %v363_v20 = vrot.slane %v2803_v16, 1  ;;  %v364_v21 = vrot.slane %v2806_v17, 1  ;;  %1061 = vmatpush.msrb.mxu3 %v2315_v5  ;;  %v2818_v23 = vld [vmem:[%s2776_s23] sm:$0xff]  ;;  %v2821_v24 = vsel %vm302_vm0, %v323_v12, %v324_v13  ;;  %v2827_v26 = vld [vmem:[%s2776_s23 + $0x8] sm:$0xff]  ;;  %1221 = vmatpush.msrb.mxu0 %v2351_v7  ;;  %v326_v33 = vrot.slane %v2815_v22, 1 }
  0x1e   : > { %4336 = vst [vmem:[#allocation6_spill] sm:$0xff] %v2806_v17  ;;  %v303_v27 = vrot.slane %v2818_v23, 1  ;;  %906 = vmatpush.msrb.mxu2 %v2278_v8  ;;  %2220 = vmatmul.msk.f32.vlgmr.msra.gmra.mxu1 %vm388_vm1, %v2821_v24  ;;  %v2836_v29 = vsel %vm302_vm0, %v343_v15, %v344_v19  ;;  %v304_v31 = vrot.slane %v2827_v26, 1  ;;  %v2851_v34 = vld [vmem:[%s2776_s23 + $0x10] sm:$0x3]  ;;  %v346_v36 = vrot.slane %v2824_v25, 1 }
  0x1f   : > { %4337 = vst [vmem:[#allocation7_spill] sm:$0xff] %v2836_v29  ;;  %v2839_v30 = vsel %vm302_vm0, %v363_v20, %v364_v21  ;;  %2228 = vmatmul.msk.f32.vlgmr.msra.gmra.mxu2 %vm388_vm1, %v2836_v29  ;;  %v366_v38 = vrot.slane %v2843_v32, 1  ;;  %1062 = vmatpush.msrb.mxu3 %v2314_v18  ;;  %v306_v39 = vrot.slane %v2851_v34, 1  ;;  %v2862_v40 = vsel %vm302_vm0, %v324_v13, %v326_v33  ;;  %v2865_v41 = vld [vmem:[%s2776_s23 + $0x78] sm:$0xff]  ;;  %v2868_v42 = vld [vmem:[%s2776_s23 + $0x80] sm:$0xff] }
  0x20   : > { %4338 = vst [vmem:[#allocation8_spill] sm:$0xff] %v2839_v30  ;;  %2236 = vmatmul.msk.f32.vlgmr.msra.gmra.mxu3 %vm388_vm1, %v2839_v30  ;;  %v305_v37 = vsel %vm302_vm0, %v303_v27, %v304_v31  ;;  %643 = vmatpush.msrb.mxu1 %v252_v28  ;;  %v2871_v43 = vld [vmem:[%s2776_s23 + $0xd8] sm:$0xff]  ;;  %v2874_v44 = vsel %vm302_vm0, %v344_v19, %v346_v36  ;;  %v2880_v46 = vld [vmem:[%s2776_s23 + $0xe0] sm:$0xff]  ;;  %v328_v53 = vrot.slane %v2865_v41, 1  ;;  %v329_v54 = vrot.slane %v2868_v42, 1 }
  0x21   : > { %4339 = vst [vmem:[#allocation9_spill] sm:$0xff] %v2843_v32  ;;  %2212 = vmatmul.msk.f32.vlgmr.msra.gmra.mxu0 %vm388_vm1, %v305_v37  ;;  %v2877_v45 = vsel %vm302_vm0, %v364_v21, %v366_v38  ;;  %v2883_v47 = vld [vmem:[%s2776_s23 + $0x138] sm:$0xff]  ;;  %v2889_v49 = vld [vmem:[%s2776_s23 + $0x140] sm:$0xff]  ;;  %907 = vmatpush.msrb.mxu2 %v2277_v48  ;;  %v307_v52 = vsel %vm302_vm0, %v304_v31, %v306_v39  ;;  %v348_v57 = vrot.slane %v2871_v43, 1  ;;  %v349_v58 = vrot.slane %v2880_v46, 1  ;;  %v2977_v31 = vld [vmem:[%s2776_s23 + $0x90] sm:$0xff] }
  0x22   : > { %1222 = vmatpush.msrb.mxu0 %v2350_v35  ;;  %4340 = vst [vmem:[#allocation10_spill] sm:$0xff] %v2862_v40  ;;  %1063 = vmatpush.msrb.mxu3 %v2313_v50  ;;  %v2907_v55 = vld [vmem:[%s2776_s23 + $0x18] sm:$0xff]  ;;  %v2910_v56 = vld [vmem:[%s2776_s23 + $0x20] sm:$0xff]  ;;  %v368_v59 = vrot.slane %v2883_v47, 1  ;;  %v369_v60 = vrot.slane %v2889_v49, 1  ;;  %v2923_v0 = vsel %vm302_vm0, %v328_v53, %v329_v54  ;;  %v2983_v35 = vld [vmem:[%s2776_s23 + $0xf0] sm:$0xff] }
  0x23   : > { %4341 = vst [vmem:[#allocation11_spill] sm:$0xff] %v2874_v44  ;;  %644 = vmatpush.msrb.mxu1 %v251_v51  ;;  %v308_v62 = vrot.slane %v2907_v55, 1  ;;  %v309_v63 = vrot.slane %v2910_v56, 1  ;;  %v2926_v1 = vsel %vm302_vm0, %v348_v57, %v349_v58  ;;  %v2932_v3 = vld [vmem:[%s2776_s23 + $0x88] sm:$0x3]  ;;  %v2276_v12 = vld [vmem:[%s4254_s1 + $0x40] sm:$0xff] }
  0x24   : > { %4342 = vst [vmem:[#allocation12_spill] sm:$0xff] %v2877_v45  ;;  %1223 = vmatpush.msrb.mxu0 %v2349_v61  ;;  %v2929_v2 = vsel %vm302_vm0, %v368_v59, %v369_v60  ;;  %v2935_v4 = vld [vmem:[%s2776_s23 + $0xe8] sm:$0x3]  ;;  %v331_v8 = vrot.slane %v2932_v3, 1  ;;  %v2312_v13 = vld [vmem:[%s4254_s1 + $0x60] sm:$0xff]  ;;  %908 = vmatpush.msrb.mxu2 %v2276_v12  ;;  %v2980_v33 = vld [vmem:[%s2776_s23 + $0x98] sm:$0xff] }
  0x25   : > { %4343 = vst [vmem:[#allocation13_spill] sm:$0xff] %v2883_v47  ;;  %v2938_v5 = vld [vmem:[%s2776_s23 + $0x148] sm:$0x3]  ;;  %v2943_v6 = vsel %vm302_vm0, %v308_v62, %v309_v63  ;;  %v250_v15 = vld [vmem:[%s4254_s1] sm:$0xff]  ;;  %v351_v18 = vrot.slane %v2935_v4, 1  ;;  %1064 = vmatpush.msrb.mxu3 %v2312_v13  ;;  %v2986_v36 = vld [vmem:[%s2776_s23 + $0xf8] sm:$0xff] }
  0x26   : > { %4344 = vst [vmem:[#allocation14_spill] sm:$0xff] %v2889_v49  ;;  %2221 = vmatmul.msk.f32.gmra.mxu1 %vm388_vm1, %v2862_v40  ;;  %v2946_v7 = vld [vmem:[%s2776_s23 + $0x28] sm:$0x3]  ;;  %v371_v19 = vrot.slane %v2938_v5, 1  ;;  %v2968_v21 = vsel %vm302_vm0, %v329_v54, %v331_v8  ;;  %v2989_v37 = vld [vmem:[%s2776_s23 + $0x150] sm:$0xff]  ;;  %v2992_v38 = vld [vmem:[%s2776_s23 + $0x158] sm:$0xff] }
  0x27   : > { %2229 = vmatmul.msk.f32.gmra.mxu2 %vm388_vm1, %v2874_v44  ;;  %4345 = vst [vmem:[#allocation15_spill] sm:$0xff] %v2923_v0  ;;  %645 = vmatpush.msrb.mxu1 %v250_v15  ;;  %v311_v20 = vrot.slane %v2946_v7, 1  ;;  %v2971_v27 = vsel %vm302_vm0, %v349_v58, %v351_v18  ;;  %v333_v48 = vrot.slane %v2977_v31, 1  ;;  %v334_v50 = vrot.slane %v2980_v33, 1  ;;  %v3006_v51 = vld [vmem:[%s2776_s23 + $0x30] sm:$0xff]  ;;  %v2348_v53 = vld [vmem:[%s4254_s1 + $0x80] sm:$0xff] }
  0x28   : > { %2237 = vmatmul.msk.f32.gmra.mxu3 %vm388_vm1, %v2877_v45  ;;  %4346 = vst [vmem:[#allocation16_spill] sm:$0xff] %v2929_v2  ;;  %v2974_v28 = vsel %vm302_vm0, %v369_v60, %v371_v19  ;;  %v353_v54 = vrot.slane %v2983_v35, 1  ;;  %v354_v57 = vrot.slane %v2986_v36, 1  ;;  %v373_v58 = vrot.slane %v2989_v37, 1  ;;  %1224 = vmatpush.msrb.mxu0 %v2348_v53  ;;  %v3032_v12 = vld [vmem:[%s2776_s23 + $0xa0] sm:$0x3] }
  0x29   : > { %2213 = vmatmul.msk.f32.gmra.mxu0 %vm388_vm1, %v307_v52  ;;  %4347 = vst [vmem:[#allocation17_spill] sm:$0xff] %v2938_v5  ;;  %v2997_v39 = vsel %vm302_vm0, %v309_v63, %v311_v20  ;;  %v3009_v52 = vld [vmem:[%s2776_s23 + $0x38] sm:$0xff]  ;;  %v374_v59 = vrot.slane %v2992_v38, 1  ;;  %v313_v60 = vrot.slane %v3006_v51, 1  ;;  %v3023_v62 = vsel %vm302_vm0, %v333_v48, %v334_v50  ;;  %v3035_v13 = vld [vmem:[%s2776_s23 + $0x100] sm:$0x3] }
  0x2a   : > { %4348 = vst [vmem:[#allocation18_spill] sm:$0xff] %v2968_v21  ;;  %v314_v61 = vrot.slane %v3009_v52, 1  ;;  %v3026_v63 = vsel %vm302_vm0, %v353_v54, %v354_v57  ;;  %v3038_v15 = vld [vmem:[%s2776_s23 + $0x160] sm:$0x3]  ;;  %v336_v20 = vrot.slane %v3032_v12, 1  ;;  %v2423_v48 = vld [vmem:[%s4254_s1 + $0xd8] sm:$0xff] }
  0x2b   : > { %4349 = vst [vmem:[#allocation19_spill] sm:$0xff] %v2974_v28  ;;  %v3029_v8 = vsel %vm302_vm0, %v373_v58, %v374_v59  ;;  %v3046_v19 = vld [vmem:[%s2776_s23 + $0x40] sm:$0x3]  ;;  %v2459_v53 = vld [vmem:[%s4254_s1 + $0xf8] sm:$0xff]  ;;  %v356_v58 = vrot.slane %v3035_v13, 1  ;;  %1536 = vmatpush.msra.mxu2 %v2423_v48  ;;  %v3080_v48 = vld [vmem:[%s2776_s23 + $0xb0] sm:$0xff] }
  0x2c   : > { %4350 = vst [vmem:[#allocation20_spill] sm:$0xff] %v2989_v37  ;;  %v3043_v18 = vsel %vm302_vm0, %v313_v60, %v314_v61  ;;  %v2387_v54 = vld [vmem:[%s4254_s1 + $0xb8] sm:$0xff]  ;;  %v376_v60 = vrot.slane %v3038_v15, 1  ;;  %1696 = vmatpush.msra.mxu3 %v2459_v53  ;;  %v3083_v53 = vld [vmem:[%s2776_s23 + $0x108] sm:$0xff]  ;;  %v3092_v49 = vld [vmem:[%s2776_s23 + $0x170] sm:$0xff] }
  0x2d   : > { %4351 = vst [vmem:[#allocation21_spill] sm:$0xff] %v2992_v38  ;;  %1380 = vmatpush.msra.mxu1 %v2387_v54  ;;  %v316_v38 = vrot.slane %v3046_v19, 1  ;;  %v3071_v5 = vsel %vm302_vm0, %v354_v57, %v356_v58  ;;  %v3086_v54 = vld [vmem:[%s2776_s23 + $0x110] sm:$0xff] }
  0x2e   : > { %2222 = vmatmul.msk.f32.gmra.mxu1 %vm388_vm1, %v2923_v0  ;;  %4352 = vst [vmem:[#allocation22_spill] sm:$0xff] %v3023_v62  ;;  %v3074_v37 = vsel %vm302_vm0, %v374_v59, %v376_v60  ;;  %v339_v59 = vrot.slane %v3080_v48, 1  ;;  %v3109_v58 = vld [vmem:[%s2776_s23 + $0x50] sm:$0xff]  ;;  %v359_v60 = vrot.slane %v3086_v54, 1 }
  0x2f   : > { %2230 = vmatmul.msk.f32.gmra.mxu2 %vm388_vm1, %v2926_v1  ;;  %4353 = vst [vmem:[#allocation23_spill] sm:$0xff] %v3029_v8  ;;  %v319_v47 = vrot.slane %v3109_v58, 1 }
  0x30   : > { %2238 = vmatmul.msk.f32.gmra.mxu3 %vm388_vm1, %v2929_v2  ;;  %4354 = vst [vmem:[#allocation24_spill] sm:$0xff] %v3035_v13  ;;  %v379_v2 = vrot.slane %v3092_v49, 1 }
  0x31   : > { %2214 = vmatmul.msk.f32.gmra.mxu0 %vm388_vm1, %v2943_v6  ;;  %4355 = vst [vmem:[#allocation25_spill] sm:$0xff] %v3038_v15  ;;  %v3077_v15 = vld [vmem:[%s2776_s23 + $0xa8] sm:$0xff] }
  0x32   : > { %4357 = vst [vmem:[#allocation27_spill] sm:$0xff] %v3074_v37  ;;  %v338_v57 = vrot.slane %v3077_v15, 1 }
  0x33   : > { %4358 = vst [vmem:[#allocation28_spill] sm:$0xff] %v3086_v54 }
  0x34   : > { %4360 = vst [vmem:[#allocation30_spill] sm:$0xff] %v3092_v49  ;;  %v3123_v45 = vsel %vm302_vm0, %v338_v57, %v339_v59  ;;  %v3135_v49 = vld [vmem:[%s2776_s23 + $0x118] sm:$0x3] }
  0x35   : > { %4361 = vst [vmem:[#allocation31_spill] sm:$0xff] %v3123_v45  ;;  %v3151_v57 = vld [vmem:[%s2776_s23 + $0x58] sm:$0x3] }
  0x36   : > { %2223 = vmatmul.msk.f32.gmra.mxu1 %vm388_vm1, %v2968_v21  ;;  %4364 = vst [vmem:[#allocation34_spill] sm:$0xff] %v3135_v49 }
  0x37   : > { %2231 = vmatmul.msk.f32.gmra.mxu2 %vm388_vm1, %v2971_v27 }
  0x38   : > { %2239 = vmatmul.msk.f32.gmra.mxu3 %vm388_vm1, %v2974_v28  ;;  %v3089_v28 = vld [vmem:[%s2776_s23 + $0x168] sm:$0xff] }
  0x39   : > { %2215 = vmatmul.msk.f32.gmra.mxu0 %vm388_vm1, %v2997_v39  ;;  %4359 = vst [vmem:[#allocation29_spill] sm:$0xff] %v3089_v28 }
  0x3e   : > { %2224 = vmatmul.msk.f32.gmra.mxu1 %vm388_vm1, %v3023_v62 }
  0x3f   : > { %2232 = vmatmul.msk.f32.gmra.mxu2 %vm388_vm1, %v3026_v63 }
  0x40   : > { %2240 = vmatmul.msk.f32.gmra.mxu3 %vm388_vm1, %v3029_v8  ;;  %v3068_v8 = vsel %vm302_vm0, %v334_v50, %v336_v20  ;;  %v3097_v50 = vsel %vm302_vm0, %v314_v61, %v316_v38  ;;  %v3106_v20 = vld [vmem:[%s2776_s23 + $0x48] sm:$0xff]  ;;  %v2495_v38 = vld [vmem:[%s4254_s1 + $0x118] sm:$0xff]  ;;  %v358_v61 = vrot.slane %v3083_v53, 1 }
  0x41   : > { %2216 = vmatmul.msk.f32.gmra.mxu0 %vm388_vm1, %v3043_v18  ;;  %4356 = vst [vmem:[#allocation26_spill] sm:$0xff] %v3068_v8  ;;  %v318_v32 = vrot.slane %v3106_v20, 1 }
  0x42   : > { %1855 = vmatpush.msra.mxu0 %v2495_v38  ;;  %v3126_v17 = vsel %vm302_vm0, %v358_v61, %v359_v60  ;;  %v3138_v38 = vld [vmem:[%s2776_s23 + $0x178] sm:$0x3]  ;;  %v361_v61 = vrot.slane %v3135_v49, 1 }
  0x43   : > { %4362 = vst [vmem:[#allocation32_spill] sm:$0xff] %v3126_v17  ;;  %v3143_v16 = vsel %vm302_vm0, %v318_v32, %v319_v47  ;;  %v381_v54 = vrot.slane %v3138_v38, 1  ;;  %v321_v32 = vrot.slane %v3151_v57, 1 }
  0x45   : > { %v3170_v49 = vsel %vm302_vm0, %v319_v47, %v321_v32  ;;  %v747_v47 = vrot.slane %v2851_v34, 2  ;;  %v757_v32 = vrot.slane %v3046_v19, 2  ;;  %v2494_v19 = vld [vmem:[%s4254_s1 + $0x110] sm:$0xff] }
  0x46   : > { %2225 = vmatmul.msk.f32.gmra.mxu1 %vm388_vm1, %v3068_v8  ;;  %1856 = vmatpush.msra.mxu0 %v2494_v19 }
  0x47   : > { %2233 = vmatmul.msk.f32.gmra.mxu2 %vm388_vm1, %v3071_v5 }
  0x48   : > { %2241 = vmatmul.msk.f32.gmra.mxu3 %vm388_vm1, %v3074_v37  ;;  %v378_v37 = vrot.slane %v3089_v28, 1  ;;  %v3132_v28 = vld [vmem:[%s2776_s23 + $0xb8] sm:$0x3] }
  0x49   : > { %2217 = vmatmul.msk.f32.gmra.mxu0 %vm388_vm1, %v3097_v50 }
  0x4a   : > { %v3129_v30 = vsel %vm302_vm0, %v378_v37, %v379_v2  ;;  %v341_v37 = vrot.slane %v3132_v28, 1 }
  0x4b   : > { %4363 = vst [vmem:[#allocation33_spill] sm:$0xff] %v3129_v30 }
  0x4c   : > { %v3159_v13 = vsel %vm302_vm0, %v339_v59, %v341_v37  ;;  %v744_v59 = vrot.slane %v2818_v23, 2  ;;  %v750_v37 = vrot.slane %v2910_v56, 2 }
  0x4d   : > { %4365 = vst [vmem:[#allocation35_spill] sm:$0xff] %v3159_v13 }
  0x4e   : > { %2226 = vmatmul.msk.f32.gmra.mxu1 %vm388_vm1, %v3123_v45 }
  0x4f   : > { %2234 = vmatmul.msk.f32.gmra.mxu2 %vm388_vm1, %v3126_v17  ;;  %v3162_v17 = vsel %vm302_vm0, %v359_v60, %v361_v61  ;;  %v745_v60 = vrot.slane %v2827_v26, 2  ;;  %v2458_v61 = vld [vmem:[%s4254_s1 + $0xf0] sm:$0xff] }
  0x50   : > { %2242 = vmatmul.msk.f32.gmra.mxu3 %vm388_vm1, %v3129_v30  ;;  %v3165_v30 = vsel %vm302_vm0, %v379_v2, %v381_v54 }
  0x51   : > { %2218 = vmatmul.msk.f32.gmra.mxu0 %vm388_vm1, %v3143_v16  ;;  %4366 = vst [vmem:[#allocation36_spill] sm:$0xff] %v3165_v30  ;;  %v746_v2 = vsel %vm743_vm2, %v744_v59, %v745_v60  ;;  %v748_v54 = vsel %vm743_vm2, %v745_v60, %v747_v47  ;;  %1697 = vmatpush.msra.mxu3 %v2458_v61  ;;  %v2386_v59 = vld [vmem:[%s4254_s1 + $0xb0] sm:$0xff]  ;;  %v760_v47 = vrot.slane %v3109_v58, 2  ;;  %v767_v61 = vrot.slane %v2815_v22, 2 }
  0x52   : > { %1381 = vmatpush.msra.mxu1 %v2386_v59  ;;  %v769_v22 = vrot.slane %v2865_v41, 2 }
  0x56   : > { %2227 = vmatmul.msk.f32.gmra.mxu1 %vm388_vm1, %v3159_v13 }
  0x57   : > { %2235 = vmatmul.msk.f32.gmra.mxu2 %vm388_vm1, %v3162_v17 }
  0x58   : > { %2243 = vmatmul.msk.f32.gmra.mxu3 %vm388_vm1, %v3165_v30 }
  0x59   : > { %2219 = vmatmul.msk.f32.gmra.mxu0 %vm388_vm1, %v3170_v49 }
  0x5e   : > { %2244 = vmatmul.msk.f32.vlgmr.msrb.gmra.mxu1 %vm388_vm1, %v2818_v23  ;;  %v749_v23 = vrot.slane %v2907_v55, 2 }
  0x5f   : > { %2280 = vmatmul.msk.f32.vlgmr.msrb.gmra.mxu2 %vm388_vm1, %v746_v2  ;;  %v759_v2 = vrot.slane %v3106_v20, 2 }
  0x60   : > { %2316 = vmatmul.msk.f32.vlgmr.msrb.gmra.mxu3 %vm388_vm1, %v2907_v55  ;;  %v3200_v34 = vsel %vm743_vm2, %v749_v23, %v750_v37  ;;  %v762_v23 = vrot.slane %v3151_v57, 2 }
  0x61   : > { %2352 = vmatmul.msk.f32.vlgmr.msrb.gmra.mxu0 %vm388_vm1, %v2943_v6 }
  0x66   : > { %2245 = vmatmul.msk.f32.gmra.mxu1 %vm388_vm1, %v2827_v26  ;;  %v752_v26 = vrot.slane %v2946_v7, 2 }
  0x67   : > { %2281 = vmatmul.msk.f32.gmra.mxu2 %vm388_vm1, %v748_v54  ;;  %v3262_v54 = vsel %vm743_vm2, %v759_v2, %v760_v47 }
  0x68   : > { %2317 = vmatmul.msk.f32.gmra.mxu3 %vm388_vm1, %v2910_v56  ;;  %v3212_v6 = vsel %vm743_vm2, %v750_v37, %v752_v26  ;;  %v3274_v37 = vsel %vm743_vm2, %v760_v47, %v762_v23  ;;  %v764_v26 = vrot.slane %v2788_v9, 2  ;;  %v770_v47 = vrot.slane %v2868_v42, 2 }
  0x69   : > { %2353 = vmatmul.msk.f32.gmra.mxu0 %vm388_vm1, %v2997_v39  ;;  %v755_v39 = vrot.slane %v3009_v52, 2 }
  0x6b   : > { %v3246_v60 = vsel %vm743_vm2, %v755_v39, %v757_v32 }
  0x6e   : > { %2246 = vmatmul.msk.f32.gmra.mxu1 %vm388_vm1, %v2907_v55  ;;  %v754_v55 = vrot.slane %v3006_v51, 2 }
  0x6f   : > { %2282 = vmatmul.msk.f32.gmra.mxu2 %vm388_vm1, %v3200_v34 }
  0x70   : > { %2318 = vmatmul.msk.f32.gmra.mxu3 %vm388_vm1, %v3006_v51  ;;  %v3225_v7 = vsel %vm743_vm2, %v754_v55, %v755_v39  ;;  %v765_v55 = vrot.slane %v2791_v10, 2 }
  0x71   : > { %2354 = vmatmul.msk.f32.gmra.mxu0 %vm388_vm1, %v3043_v18 }
  0x72   : > { %v3289_v39 = vsel %vm743_vm2, %v764_v26, %v765_v55 }
  0x73   : > { %4367 = vst [vmem:[#allocation37_spill] sm:$0xff] %v3289_v39 }
  0x76   : > { %2247 = vmatmul.msk.f32.gmra.mxu1 %vm388_vm1, %v2910_v56  ;;  %v2422_v56 = vld [vmem:[%s4254_s1 + $0xd0] sm:$0xff] }
  0x77   : > { %2283 = vmatmul.msk.f32.gmra.mxu2 %vm388_vm1, %v3212_v6 }
  0x78   : > { %2319 = vmatmul.msk.f32.gmra.mxu3 %vm388_vm1, %v3009_v52  ;;  %1537 = vmatpush.msra.mxu2 %v2422_v56 }
  0x79   : > { %2355 = vmatmul.msk.f32.gmra.mxu0 %vm388_vm1, %v3097_v50 }
  0x7e   : > { %2248 = vmatmul.msk.f32.gmra.mxu1 %vm388_vm1, %v3006_v51 }
  0x7f   : > { %2284 = vmatmul.msk.f32.gmra.mxu2 %vm388_vm1, %v3225_v7 }
  0x80   : > { %2320 = vmatmul.msk.f32.gmra.mxu3 %vm388_vm1, %v3106_v20 }
  0x81   : > { %2356 = vmatmul.msk.f32.gmra.mxu0 %vm388_vm1, %v3143_v16 }
  0x86   : > { %2249 = vmatmul.msk.f32.gmra.mxu1 %vm388_vm1, %v3009_v52 }
  0x87   : > { %2285 = vmatmul.msk.f32.gmra.mxu2 %vm388_vm1, %v3246_v60 }
  0x88   : > { %2321 = vmatmul.msk.f32.gmra.mxu3 %vm388_vm1, %v3109_v58 }
  0x89   : > { %2357 = vmatmul.msk.f32.gmra.mxu0 %vm388_vm1, %v3170_v49 }
  0x8e   : > { %2250 = vmatmul.msk.f32.gmra.mxu1 %vm388_vm1, %v3106_v20 }
  0x8f   : > { %2286 = vmatmul.msk.f32.gmra.mxu2 %vm388_vm1, %v3262_v54 }
  0x90   : > { %2322 = vmatmul.msk.f32.gmra.mxu3 %vm388_vm1, %v2788_v9 }
  0x91   : > { %2358 = vmatmul.msk.f32.gmra.mxu0 %vm388_vm1, %v2821_v24 }
  0x96   : > { %2251 = vmatmul.msk.f32.gmra.mxu1 %vm388_vm1, %v3109_v58 }
  0x97   : > { %2287 = vmatmul.msk.f32.gmra.mxu2 %vm388_vm1, %v3274_v37 }
  0x98   : > { %2323 = vmatmul.msk.f32.gmra.mxu3 %vm388_vm1, %v2791_v10 }
  0x99   : > { %2359 = vmatmul.msk.f32.gmra.mxu0 %vm388_vm1, %v2862_v40 }
  0x9b   : > { %v3286_v57 = vpop.f32.mrf.mxu1 }
  0x9e   : > { %2252 = vmatmul.msk.f32.gmra.mxu1 %vm388_vm1, %v2788_v9  ;;  %v3293_v56 = vpop.f32.mrf.mxu0  ;;  %v3309_v9 = vsel %vm743_vm2, %v765_v55, %v767_v61  ;;  %v3330_v55 = vsel %vm743_vm2, %v769_v22, %v770_v47 }
  0x9f   : > { %2288 = vmatmul.msk.f32.gmra.mxu2 %vm388_vm1, %v3289_v39  ;;  %4369 = vst [vmem:[#allocation39_spill] sm:$0xff] %v3309_v9 }
  0xa0   : > { %2324 = vmatmul.msk.f32.gmra.mxu3 %vm388_vm1, %v2865_v41  ;;  %4371 = vst [vmem:[#allocation41_spill] sm:$0xff] %v3330_v55 }
  0xa1   : > { %2360 = vmatmul.msk.f32.gmra.mxu0 %vm388_vm1, %v2923_v0 }
  0xa2   : > { %v3302_v32 = vpop.f32.mrf.mxu2 }
  0xa3   : > { %v3304_v59 = vpop.f32.mrf.mxu3  ;;  %v3306_v19 = vpop.f32.mrf.mxu1 }
  0xa4   : > { %4368 = vst [vmem:[#allocation38_spill] sm:$0xff] %v3304_v59  ;;  %v772_v59 = vrot.slane %v2932_v3, 2  ;;  %v774_v3 = vrot.slane %v2977_v31, 2 }
  0xa6   : > { %2253 = vmatmul.msk.f32.gmra.mxu1 %vm388_vm1, %v2791_v10  ;;  %v3313_v2 = vpop.f32.mrf.mxu0 }
  0xa7   : > { %2289 = vmatmul.msk.f32.gmra.mxu2 %vm388_vm1, %v3309_v9  ;;  %v2385_v9 = vld [vmem:[%s4254_s1 + $0xa8] sm:$0xff] }
  0xa8   : > { %2325 = vmatmul.msk.f32.gmra.mxu3 %vm388_vm1, %v2868_v42  ;;  %1382 = vmatpush.msra.mxu1 %v2385_v9 }
  0xa9   : > { %2361 = vmatmul.msk.f32.gmra.mxu0 %vm388_vm1, %v2968_v21 }
  0xaa   : > { %v3323_v23 = vpop.f32.mrf.mxu2 }
  0xab   : > { %v3325_v26 = vpop.f32.mrf.mxu3  ;;  %v3327_v10 = vpop.f32.mrf.mxu1 }
  0xac   : > { %4370 = vst [vmem:[#allocation40_spill] sm:$0xff] %v3325_v26 }
  0xae   : > { %2254 = vmatmul.msk.f32.gmra.mxu1 %vm388_vm1, %v2865_v41  ;;  %v3334_v61 = vpop.f32.mrf.mxu0  ;;  %v3350_v41 = vsel %vm743_vm2, %v770_v47, %v772_v59 }
  0xaf   : > { %2290 = vmatmul.msk.f32.gmra.mxu2 %vm388_vm1, %v3330_v55  ;;  %4373 = vst [vmem:[#allocation43_spill] sm:$0xff] %v3350_v41 }
  0xb0   : > { %2326 = vmatmul.msk.f32.gmra.mxu3 %vm388_vm1, %v2977_v31 }
  0xb1   : > { %2362 = vmatmul.msk.f32.gmra.mxu0 %vm388_vm1, %v3023_v62 }
  0xb2   : > { %v3343_v26 = vpop.f32.mrf.mxu2 }
  0xb3   : > { %v3345_v22 = vpop.f32.mrf.mxu3  ;;  %v3347_v21 = vpop.f32.mrf.mxu1 }
  0xb4   : > { %4372 = vst [vmem:[#allocation42_spill] sm:$0xff] %v3345_v22  ;;  %v775_v22 = vrot.slane %v2980_v33, 2 }
  0xb6   : > { %2255 = vmatmul.msk.f32.gmra.mxu1 %vm388_vm1, %v2868_v42  ;;  %v3354_v55 = vpop.f32.mrf.mxu0  ;;  %v3371_v62 = vsel %vm743_vm2, %v774_v3, %v775_v22  ;;  %v2457_v3 = vld [vmem:[%s4254_s1 + $0xe8] sm:$0xff] }
  0xb7   : > { %2291 = vmatmul.msk.f32.gmra.mxu2 %vm388_vm1, %v3350_v41  ;;  %4375 = vst [vmem:[#allocation45_spill] sm:$0xff] %v3371_v62  ;;  %1698 = vmatpush.msra.mxu3 %v2457_v3  ;;  %v779_v3 = vrot.slane %v3077_v15, 2 }
  0xb8   : > { %2327 = vmatmul.msk.f32.gmra.mxu3 %vm388_vm1, %v2980_v33 }
  0xb9   : > { %2363 = vmatmul.msk.f32.gmra.mxu0 %vm388_vm1, %v3068_v8  ;;  %v777_v8 = vrot.slane %v3032_v12, 2 }
  0xba   : > { %v3364_v59 = vpop.f32.mrf.mxu2 }
  0xbb   : > { %v3366_v47 = vpop.f32.mrf.mxu3  ;;  %v3368_v42 = vpop.f32.mrf.mxu1  ;;  %v3400_v40 = vsel %vm743_vm2, %v775_v22, %v777_v8  ;;  %v780_v8 = vrot.slane %v3080_v48, 2 }
  0xbc   : > { %4374 = vst [vmem:[#allocation44_spill] sm:$0xff] %v3366_v47  ;;  %v2421_v47 = vld [vmem:[%s4254_s1 + $0xc8] sm:$0xff] }
  0xbd   : > { %1538 = vmatpush.msra.mxu2 %v2421_v47  ;;  %4377 = vst [vmem:[#allocation47_spill] sm:$0xff] %v3400_v40  ;;  %v2493_v47 = vld [vmem:[%s4254_s1 + $0x108] sm:$0xff] }
  0xbe   : > { %2256 = vmatmul.msk.f32.gmra.mxu1 %vm388_vm1, %v2977_v31  ;;  %v3375_v41 = vpop.f32.mrf.mxu0  ;;  %1857 = vmatpush.msra.mxu0 %v2493_v47  ;;  %v782_v47 = vrot.slane %v3132_v28, 2  ;;  %v784_v28 = vrot.slane %v2794_v11, 2 }
  0xbf   : > { %2292 = vmatmul.msk.f32.gmra.mxu2 %vm388_vm1, %v3371_v62 }
  0xc0   : > { %2328 = vmatmul.msk.f32.gmra.mxu3 %vm388_vm1, %v3077_v15 }
  0xc1   : > { %2364 = vmatmul.msk.f32.gmra.mxu0 %vm388_vm1, %v3123_v45 }
  0xc2   : > { %v3390_v31 = vpop.f32.mrf.mxu2 }
  0xc3   : > { %v3392_v62 = vpop.f32.mrf.mxu3  ;;  %v3394_v0 = vpop.f32.mrf.mxu1 }
  0xc4   : > { %4376 = vst [vmem:[#allocation46_spill] sm:$0xff] %v3392_v62  ;;  %v3424_v62 = vsel %vm743_vm2, %v779_v3, %v780_v8 }
  0xc5   : > { %4380 = vst [vmem:[#allocation50_spill] sm:$0xff] %v3424_v62 }
  0xc6   : > { %2257 = vmatmul.msk.f32.gmra.mxu1 %vm388_vm1, %v2980_v33  ;;  %v3404_v12 = vpop.f32.mrf.mxu0 }
  0xc7   : > { %2293 = vmatmul.msk.f32.gmra.mxu2 %vm388_vm1, %v3400_v40 }
  0xc8   : > { %2329 = vmatmul.msk.f32.gmra.mxu3 %vm388_vm1, %v3080_v48 }
  0xc9   : > { %2365 = vmatmul.msk.f32.gmra.mxu0 %vm388_vm1, %v3159_v13 }
  0xca   : > { %v3417_v33 = vpop.f32.mrf.mxu2 }
  0xcb   : > { %4378 = vst [vmem:[#allocation48_spill] sm:$0xff] %v3417_v33  ;;  %v3419_v9 = vpop.f32.mrf.mxu3  ;;  %v3421_v22 = vpop.f32.mrf.mxu1 }
  0xcc   : > { %4379 = vst [vmem:[#allocation49_spill] sm:$0xff] %v3419_v9 }
  0xce   : > { %2258 = vmatmul.msk.f32.gmra.mxu1 %vm388_vm1, %v3077_v15  ;;  %v3428_v45 = vpop.f32.mrf.mxu0  ;;  %v3444_v15 = vsel %vm743_vm2, %v780_v8, %v782_v47 }
  0xcf   : > { %2294 = vmatmul.msk.f32.gmra.mxu2 %vm388_vm1, %v3424_v62  ;;  %4383 = vst [vmem:[#allocation53_spill] sm:$0xff] %v3444_v15 }
  0xd0   : > { %2330 = vmatmul.msk.f32.gmra.mxu3 %vm388_vm1, %v2794_v11 }
  0xd1   : > { %2366 = vmatmul.msk.f32.gmra.mxu0 %vm388_vm1, %v2836_v29 }
  0xd2   : > { %v3437_v9 = vpop.f32.mrf.mxu2 }
  0xd3   : > { %4381 = vst [vmem:[#allocation51_spill] sm:$0xff] %v3437_v9  ;;  %v3439_v3 = vpop.f32.mrf.mxu3  ;;  %v3441_v13 = vpop.f32.mrf.mxu1 }
  0xd4   : > { %4382 = vst [vmem:[#allocation52_spill] sm:$0xff] %v3439_v3  ;;  %v785_v3 = vrot.slane %v2799_v14, 2 }
  0xd6   : > { %2259 = vmatmul.msk.f32.gmra.mxu1 %vm388_vm1, %v3080_v48  ;;  %v3448_v62 = vpop.f32.mrf.mxu0  ;;  %v3463_v29 = vsel %vm743_vm2, %v784_v28, %v785_v3 }
  0xd7   : > { %2295 = vmatmul.msk.f32.gmra.mxu2 %vm388_vm1, %v3444_v15  ;;  %4386 = vst [vmem:[#allocation56_spill] sm:$0xff] %v3463_v29 }
  0xd8   : > { %2331 = vmatmul.msk.f32.gmra.mxu3 %vm388_vm1, %v2799_v14 }
  0xd9   : > { %2367 = vmatmul.msk.f32.gmra.mxu0 %vm388_vm1, %v2874_v44  ;;  %v787_v44 = vrot.slane %v2824_v25, 2  ;;  %v789_v25 = vrot.slane %v2871_v43, 2 }
  0xda   : > { %v3458_v8 = vpop.f32.mrf.mxu2 }
  0xdb   : > { %4384 = vst [vmem:[#allocation54_spill] sm:$0xff] %v3458_v8  ;;  %v3460_v47 = vpop.f32.mrf.mxu3  ;;  %v647_v48 = vpop.f32.mrf.mxu1 }
  0xdc   : > { %4385 = vst [vmem:[#allocation55_spill] sm:$0xff] %v3460_v47  ;;  %v648_v40 = vadd.f32 %v647_v48, %v3293_v56 }
  0xde   : > { %2260 = vmatmul.msk.f32.gmra.mxu1 %vm388_vm1, %v2794_v11  ;;  %v1226_v15 = vpop.f32.mrf.mxu0  ;;  %v3476_v11 = vsel %vm743_vm2, %v785_v3, %v787_v44 }
  0xdf   : > { %2296 = vmatmul.msk.f32.gmra.mxu2 %vm388_vm1, %v3463_v29 }
  0xe0   : > { %2332 = vmatmul.msk.f32.gmra.mxu3 %vm388_vm1, %v2871_v43 }
  0xe1   : > { %2368 = vmatmul.msk.f32.gmra.mxu0 %vm388_vm1, %v2926_v1 }
  0xe2   : > { %v910_v47 = vpop.f32.mrf.mxu2 }
  0xe3   : > { %v1066_v28 = vpop.f32.mrf.mxu3  ;;  %v1006_v8 = vadd.f32 %v910_v47, %v648_v40  ;;  %v650_v9 = vpop.f32.mrf.mxu1  ;;  %v790_v40 = vrot.slane %v2880_v46, 2 }
  0xe4   : > { %v651_v44 = vadd.f32 %v650_v9, %v3313_v2  ;;  %v792_v2 = vrot.slane %v2935_v4, 2  ;;  %v794_v4 = vrot.slane %v2983_v35, 2 }
  0xe5   : > { %v1162_v33 = vadd.f32 %v1066_v28, %v1006_v8 }
  0xe6   : > { %2261 = vmatmul.msk.f32.gmra.mxu1 %vm388_vm1, %v2799_v14  ;;  %v1229_v29 = vpop.f32.mrf.mxu0 }
  0xe7   : > { %v3480_v39 = vadd.f32 %v1226_v15, %v1162_v33  ;;  %2297 = vmatmul.msk.f32.gmra.mxu2 %vm388_vm1, %v3476_v11  ;;  %v3492_v15 = vsel %vm743_vm2, %v789_v25, %v790_v40 }
  0xe8   : > { %2333 = vmatmul.msk.f32.gmra.mxu3 %vm388_vm1, %v2880_v46 }
  0xe9   : > { %2369 = vmatmul.msk.f32.gmra.mxu0 %vm388_vm1, %v2971_v27 }
  0xea   : > { %v913_v56 = vpop.f32.mrf.mxu2 }
  0xeb   : > { %v1069_v14 = vpop.f32.mrf.mxu3  ;;  %v1007_v3 = vadd.f32 %v913_v56, %v651_v44  ;;  %v653_v33 = vpop.f32.mrf.mxu1 }
  0xec   : > { %v654_v9 = vadd.f32 %v653_v33, %v3334_v61  ;;  %v795_v61 = vrot.slane %v2986_v36, 2 }
  0xed   : > { %v1163_v8 = vadd.f32 %v1069_v14, %v1007_v3 }
  0xee   : > { %2262 = vmatmul.msk.f32.gmra.mxu1 %vm388_vm1, %v2871_v43  ;;  %v1232_v47 = vpop.f32.mrf.mxu0 }
  0xef   : > { %v3496_v48 = vadd.f32 %v1229_v29, %v1163_v8  ;;  %2298 = vmatmul.msk.f32.gmra.mxu2 %vm388_vm1, %v3492_v15  ;;  %v3507_v29 = vsel %vm743_vm2, %v790_v40, %v792_v2  ;;  %v3523_v2 = vsel %vm743_vm2, %v794_v4, %v795_v61 }
  0xf0   : > { %2334 = vmatmul.msk.f32.gmra.mxu3 %vm388_vm1, %v2983_v35 }
  0xf1   : > { %2370 = vmatmul.msk.f32.gmra.mxu0 %vm388_vm1, %v3026_v63 }
  0xf2   : > { %v916_v28 = vpop.f32.mrf.mxu2 }
  0xf3   : > { %v1072_v25 = vpop.f32.mrf.mxu3  ;;  %v1008_v44 = vadd.f32 %v916_v28, %v654_v9  ;;  %v656_v43 = vpop.f32.mrf.mxu1 }
  0xf4   : > { %v657_v40 = vadd.f32 %v656_v43, %v3354_v55  ;;  %v2420_v55 = vld [vmem:[%s4254_s1 + $0xc0] sm:$0xff]  ;;  %v4388_v43 = vld [vmem:[#allocation24_spill] sm:$0xff] }
  0xf5   : > { %v1164_v56 = vadd.f32 %v1072_v25, %v1008_v44  ;;  %v2456_v44 = vld [vmem:[%s4254_s1 + $0xe0] sm:$0xff]  ;;  %1539 = vmatpush.msra.mxu2 %v2420_v55  ;;  %v4391_v55 = vld [vmem:[#allocation28_spill] sm:$0xff] }
  0xf6   : > { %2263 = vmatmul.msk.f32.gmra.mxu1 %vm388_vm1, %v2880_v46  ;;  %v1235_v14 = vpop.f32.mrf.mxu0  ;;  %1699 = vmatpush.msra.mxu3 %v2456_v44  ;;  %v2492_v44 = vld [vmem:[%s4254_s1 + $0x100] sm:$0xff] }
  0xf7   : > { %v3511_v3 = vadd.f32 %v1232_v47, %v1164_v56  ;;  %2299 = vmatmul.msk.f32.gmra.mxu2 %vm388_vm1, %v3507_v29  ;;  %v797_v56 = vrot.slane %v4388_v43, 2  ;;  %1858 = vmatpush.msra.mxu0 %v2492_v44 }
  0xf8   : > { %2335 = vmatmul.msk.f32.gmra.mxu3 %vm388_vm1, %v2986_v36 }
  0xf9   : > { %2371 = vmatmul.msk.f32.gmra.mxu0 %vm388_vm1, %v3071_v5 }
  0xfa   : > { %v919_v33 = vpop.f32.mrf.mxu2 }
  0xfb   : > { %v1075_v46 = vpop.f32.mrf.mxu3  ;;  %v1009_v8 = vadd.f32 %v919_v33, %v657_v40  ;;  %v659_v47 = vpop.f32.mrf.mxu1 }
  0xfd   : > { %v1165_v9 = vadd.f32 %v1075_v46, %v1009_v8  ;;  %v2384_v8 = vld [vmem:[%s4254_s1 + $0xa0] sm:$0xff] }
  0xfe   : > { %2264 = vmatmul.msk.f32.gmra.mxu1 %vm388_vm1, %v2983_v35  ;;  %v1238_v28 = vpop.f32.mrf.mxu0  ;;  %v660_v35 = vadd.f32 %v659_v47, %v3375_v41 }
  0xff   : > { %v3527_v25 = vadd.f32 %v1235_v14, %v1165_v9  ;;  %2300 = vmatmul.msk.f32.gmra.mxu2 %vm388_vm1, %v3523_v2  ;;  %v4389_v14 = vld [vmem:[#allocation32_spill] sm:$0xff]  ;;  %v3547_v9 = vsel %vm743_vm2, %v795_v61, %v797_v56  ;;  %1383 = vmatpush.msra.mxu1 %v2384_v8  ;;  %v799_v61 = vrot.slane %v3083_v53, 2  ;;  %v800_v56 = vrot.slane %v4391_v55, 2 }
 0x100   : > { %2336 = vmatmul.msk.f32.gmra.mxu3 %vm388_vm1, %v3083_v53 }
 0x101   : > { %4387 = vst [vmem:[#allocation57_spill] sm:$0xff] %v3527_v25  ;;  %2372 = vmatmul.msk.f32.gmra.mxu0 %vm388_vm1, %v4389_v14 }
 0x102   : > { %v922_v4 = vpop.f32.mrf.mxu2 }
 0x103   : > { %v1078_v40 = vpop.f32.mrf.mxu3  ;;  %v1010_v33 = vadd.f32 %v922_v4, %v660_v35  ;;  %v662_v46 = vpop.f32.mrf.mxu1 }
 0x105   : > { %v1166_v43 = vadd.f32 %v1078_v40, %v1010_v33  ;;  %v3566_v33 = vsel %vm743_vm2, %v799_v61, %v800_v56 }
 0x106   : > { %2265 = vmatmul.msk.f32.gmra.mxu1 %vm388_vm1, %v2986_v36  ;;  %v1241_v41 = vpop.f32.mrf.mxu0  ;;  %v663_v36 = vadd.f32 %v662_v46, %v3404_v12  ;;  %v4393_v12 = vld [vmem:[#allocation5_spill] sm:$0xff]  ;;  %v4394_v46 = vld [vmem:[#allocation34_spill] sm:$0xff] }
 0x107   : > { %v3551_v47 = vadd.f32 %v1238_v28, %v1166_v43  ;;  %2301 = vmatmul.msk.f32.gmra.mxu2 %vm388_vm1, %v3547_v9  ;;  %v802_v44 = vrot.slane %v4394_v46, 2 }
 0x108   : > { %2337 = vmatmul.msk.f32.gmra.mxu3 %vm388_vm1, %v4391_v55 }
 0x109   : > { %4390 = vst [vmem:[#allocation24_spill] sm:$0xff] %v3551_v47  ;;  %2373 = vmatmul.msk.f32.gmra.mxu0 %vm388_vm1, %v3162_v17 }
 0x10a   : > { %v925_v28 = vpop.f32.mrf.mxu2 }
 0x10b   : > { %v1081_v35 = vpop.f32.mrf.mxu3  ;;  %v1011_v4 = vadd.f32 %v925_v28, %v663_v36  ;;  %v665_v40 = vpop.f32.mrf.mxu1  ;;  %v4395_v28 = vld [vmem:[#allocation8_spill] sm:$0xff] }
 0x10c   : > { %v666_v36 = vadd.f32 %v665_v40, %v3428_v45  ;;  %v4397_v45 = vld [vmem:[#allocation6_spill] sm:$0xff]  ;;  %v804_v40 = vrot.slane %v4393_v12, 2 }
 0x10d   : > { %v1167_v8 = vadd.f32 %v1081_v35, %v1011_v4  ;;  %v805_v46 = vrot.slane %v4397_v45, 2 }
 0x10e   : > { %2266 = vmatmul.msk.f32.gmra.mxu1 %vm388_vm1, %v3083_v53  ;;  %v1244_v43 = vpop.f32.mrf.mxu0 }
 0x10f   : > { %v3570_v47 = vadd.f32 %v1241_v41, %v1167_v8  ;;  %2302 = vmatmul.msk.f32.gmra.mxu2 %vm388_vm1, %v3566_v33  ;;  %v3581_v41 = vsel %vm743_vm2, %v800_v56, %v802_v44  ;;  %v4398_v44 = vld [vmem:[#allocation12_spill] sm:$0xff] }
 0x110   : > { %2338 = vmatmul.msk.f32.gmra.mxu3 %vm388_vm1, %v4393_v12 }
 0x111   : > { %4392 = vst [vmem:[#allocation32_spill] sm:$0xff] %v3570_v47  ;;  %2374 = vmatmul.msk.f32.gmra.mxu0 %vm388_vm1, %v4395_v28 }
 0x112   : > { %v928_v61 = vpop.f32.mrf.mxu2 }
 0x113   : > { %v1084_v35 = vpop.f32.mrf.mxu3  ;;  %v1012_v4 = vadd.f32 %v928_v61, %v666_v36  ;;  %v668_v53 = vpop.f32.mrf.mxu1 }
 0x114   : > { %v669_v56 = vadd.f32 %v668_v53, %v3448_v62  ;;  %v4401_v62 = vld [vmem:[#allocation13_spill] sm:$0xff] }
 0x115   : > { %v1168_v8 = vadd.f32 %v1084_v35, %v1012_v4  ;;  %v3597_v35 = vsel %vm743_vm2, %v804_v40, %v805_v46  ;;  %v4402_v53 = vld [vmem:[#allocation9_spill] sm:$0xff] }
 0x116   : > { %2267 = vmatmul.msk.f32.gmra.mxu1 %vm388_vm1, %v4391_v55  ;;  %v1247_v47 = vpop.f32.mrf.mxu0  ;;  %4399 = vst [vmem:[#allocation5_spill] sm:$0xff] %v3597_v35 }
 0x117   : > { %v3585_v25 = vadd.f32 %v1244_v43, %v1168_v8  ;;  %2303 = vmatmul.msk.f32.gmra.mxu2 %vm388_vm1, %v3581_v41 }
 0x118   : > { %2339 = vmatmul.msk.f32.gmra.mxu3 %vm388_vm1, %v4397_v45 }
 0x119   : > { %4396 = vst [vmem:[#allocation28_spill] sm:$0xff] %v3585_v25  ;;  %2375 = vmatmul.msk.f32.gmra.mxu0 %vm388_vm1, %v4398_v44  ;;  %v807_v44 = vrot.slane %v4402_v53, 2 }
 0x11a   : > { %v931_v36 = vpop.f32.mrf.mxu2 }
 0x11b   : > { %v1087_v55 = vpop.f32.mrf.mxu3  ;;  %v1013_v61 = vadd.f32 %v931_v36, %v669_v56  ;;  %v671_v43 = vpop.f32.mrf.mxu1  ;;  %v4403_v36 = vld [vmem:[#allocation16_spill] sm:$0xff] }
 0x11c   : > { %v672_v56 = vadd.f32 %v671_v43, %v3286_v57  ;;  %v4405_v57 = vld [vmem:[#allocation14_spill] sm:$0xff]  ;;  %v809_v43 = vrot.slane %v4401_v62, 2 }
 0x11d   : > { %v1169_v4 = vadd.f32 %v1087_v55, %v1013_v61  ;;  %v810_v53 = vrot.slane %v4405_v57, 2 }
 0x11e   : > { %2268 = vmatmul.msk.f32.gmra.mxu1 %vm388_vm1, %v4393_v12  ;;  %v1250_v8 = vpop.f32.mrf.mxu0 }
 0x11f   : > { %v3601_v25 = vadd.f32 %v1247_v47, %v1169_v4  ;;  %2304 = vmatmul.msk.f32.gmra.mxu2 %vm388_vm1, %v3597_v35  ;;  %v3612_v47 = vsel %vm743_vm2, %v805_v46, %v807_v44  ;;  %v4406_v44 = vld [vmem:[#allocation19_spill] sm:$0xff] }
 0x120   : > { %2340 = vmatmul.msk.f32.gmra.mxu3 %vm388_vm1, %v4401_v62 }
 0x121   : > { %4400 = vst [vmem:[#allocation34_spill] sm:$0xff] %v3601_v25  ;;  %2376 = vmatmul.msk.f32.gmra.mxu0 %vm388_vm1, %v4403_v36 }
 0x122   : > { %v934_v40 = vpop.f32.mrf.mxu2 }
 0x123   : > { %v1090_v55 = vpop.f32.mrf.mxu3  ;;  %v1014_v61 = vadd.f32 %v934_v40, %v672_v56  ;;  %v674_v12 = vpop.f32.mrf.mxu1 }
 0x124   : > { %v675_v46 = vadd.f32 %v674_v12, %v3306_v19  ;;  %v4409_v19 = vld [vmem:[#allocation20_spill] sm:$0xff]  ;;  %v4410_v12 = vld [vmem:[#allocation17_spill] sm:$0xff] }
 0x125   : > { %v1170_v4 = vadd.f32 %v1090_v55, %v1014_v61  ;;  %v3628_v55 = vsel %vm743_vm2, %v809_v43, %v810_v53 }
 0x126   : > { %2269 = vmatmul.msk.f32.gmra.mxu1 %vm388_vm1, %v4397_v45  ;;  %v1253_v25 = vpop.f32.mrf.mxu0  ;;  %4407 = vst [vmem:[#allocation6_spill] sm:$0xff] %v3628_v55 }
 0x127   : > { %v3616_v35 = vadd.f32 %v1250_v8, %v1170_v4  ;;  %2305 = vmatmul.msk.f32.gmra.mxu2 %vm388_vm1, %v3612_v47 }
 0x128   : > { %2341 = vmatmul.msk.f32.gmra.mxu3 %vm388_vm1, %v4405_v57 }
 0x129   : > { %4404 = vst [vmem:[#allocation8_spill] sm:$0xff] %v3616_v35  ;;  %2377 = vmatmul.msk.f32.gmra.mxu0 %vm388_vm1, %v4406_v44  ;;  %v812_v44 = vrot.slane %v4410_v12, 2 }
 0x12a   : > { %v937_v56 = vpop.f32.mrf.mxu2 }
 0x12b   : > { %v1093_v45 = vpop.f32.mrf.mxu3  ;;  %v1015_v40 = vadd.f32 %v937_v56, %v675_v46  ;;  %v677_v8 = vpop.f32.mrf.mxu1  ;;  %v4411_v56 = vld [vmem:[#allocation23_spill] sm:$0xff] }
 0x12c   : > { %v678_v46 = vadd.f32 %v677_v8, %v3327_v10  ;;  %v4413_v10 = vld [vmem:[#allocation21_spill] sm:$0xff]  ;;  %v814_v8 = vrot.slane %v4409_v19, 2 }
 0x12d   : > { %v1171_v61 = vadd.f32 %v1093_v45, %v1015_v40  ;;  %v815_v12 = vrot.slane %v4413_v10, 2 }
 0x12e   : > { %2270 = vmatmul.msk.f32.gmra.mxu1 %vm388_vm1, %v4401_v62  ;;  %v1256_v4 = vpop.f32.mrf.mxu0 }
 0x12f   : > { %v3632_v35 = vadd.f32 %v1253_v25, %v1171_v61  ;;  %2306 = vmatmul.msk.f32.gmra.mxu2 %vm388_vm1, %v3628_v55  ;;  %v3643_v25 = vsel %vm743_vm2, %v810_v53, %v812_v44  ;;  %v4414_v44 = vld [vmem:[#allocation27_spill] sm:$0xff] }
 0x130   : > { %2342 = vmatmul.msk.f32.gmra.mxu3 %vm388_vm1, %v4409_v19 }
 0x131   : > { %4408 = vst [vmem:[#allocation13_spill] sm:$0xff] %v3632_v35  ;;  %2378 = vmatmul.msk.f32.gmra.mxu0 %vm388_vm1, %v4411_v56 }
 0x132   : > { %v940_v43 = vpop.f32.mrf.mxu2 }
 0x133   : > { %v1096_v45 = vpop.f32.mrf.mxu3  ;;  %v1016_v40 = vadd.f32 %v940_v43, %v678_v46  ;;  %v680_v62 = vpop.f32.mrf.mxu1 }
 0x134   : > { %v681_v53 = vadd.f32 %v680_v62, %v3347_v21  ;;  %v4417_v21 = vld [vmem:[#allocation29_spill] sm:$0xff] }
 0x135   : > { %v1172_v61 = vadd.f32 %v1096_v45, %v1016_v40  ;;  %v3659_v45 = vsel %vm743_vm2, %v814_v8, %v815_v12  ;;  %v4418_v62 = vld [vmem:[#allocation25_spill] sm:$0xff] }
 0x136   : > { %2271 = vmatmul.msk.f32.gmra.mxu1 %vm388_vm1, %v4405_v57  ;;  %v1259_v35 = vpop.f32.mrf.mxu0  ;;  %4415 = vst [vmem:[#allocation16_spill] sm:$0xff] %v3659_v45  ;;  %v4419_v8 = vld [vmem:[#allocation33_spill] sm:$0xff] }
 0x137   : > { %v3647_v55 = vadd.f32 %v1256_v4, %v1172_v61  ;;  %2307 = vmatmul.msk.f32.gmra.mxu2 %vm388_vm1, %v3643_v25 }
 0x138   : > { %2343 = vmatmul.msk.f32.gmra.mxu3 %vm388_vm1, %v4413_v10 }
 0x139   : > { %4412 = vst [vmem:[#allocation9_spill] sm:$0xff] %v3647_v55  ;;  %2379 = vmatmul.msk.f32.gmra.mxu0 %vm388_vm1, %v4414_v44 }
 0x13a   : > { %v943_v46 = vpop.f32.mrf.mxu2 }
 0x13b   : > { %v1099_v57 = vpop.f32.mrf.mxu3  ;;  %v1017_v43 = vadd.f32 %v943_v46, %v681_v53  ;;  %v683_v4 = vpop.f32.mrf.mxu1  ;;  %v817_v53 = vrot.slane %v4418_v62, 2  ;;  %v819_v62 = vrot.slane %v4417_v21, 2 }
 0x13c   : > { %v684_v46 = vadd.f32 %v683_v4, %v3368_v42  ;;  %v4421_v42 = vld [vmem:[#allocation30_spill] sm:$0xff] }
 0x13d   : > { %v1173_v40 = vadd.f32 %v1099_v57, %v1017_v43  ;;  %v3685_v4 = vld [vmem:[%s2776_s23 + $0x188] sm:$0xff] }
 0x13e   : > { %2272 = vmatmul.msk.f32.gmra.mxu1 %vm388_vm1, %v4409_v19  ;;  %v1262_v61 = vpop.f32.mrf.mxu0 }
 0x13f   : > { %v3663_v55 = vadd.f32 %v1259_v35, %v1173_v40  ;;  %2308 = vmatmul.msk.f32.gmra.mxu2 %vm388_vm1, %v3659_v45  ;;  %v3674_v40 = vsel %vm743_vm2, %v815_v12, %v817_v53  ;;  %v820_v12 = vrot.slane %v4421_v42, 2 }
 0x140   : > { %2344 = vmatmul.msk.f32.gmra.mxu3 %vm388_vm1, %v4417_v21 }
 0x141   : > { %4416 = vst [vmem:[#allocation14_spill] sm:$0xff] %v3663_v55  ;;  %2380 = vmatmul.msk.f32.gmra.mxu0 %vm388_vm1, %v4419_v8 }
 0x142   : > { %v946_v57 = vpop.f32.mrf.mxu2 }
 0x143   : > { %v1102_v19 = vpop.f32.mrf.mxu3  ;;  %v1018_v43 = vadd.f32 %v946_v57, %v684_v46  ;;  %v686_v35 = vpop.f32.mrf.mxu1  ;;  %v3691_v46 = vld [vmem:[%s2776_s23 + $0x180] sm:$0xff]  ;;  %v1196_v57 = vrot.slane %v3685_v4, 1 }
 0x144   : > { %v687_v53 = vadd.f32 %v686_v35, %v3394_v0  ;;  %4422 = vst [vmem:[#allocation17_spill] sm:$0xff] %v3691_v46 }
 0x145   : > { %v1174_v55 = vadd.f32 %v1102_v19, %v1018_v43 }
 0x146   : > { %2273 = vmatmul.msk.f32.gmra.mxu1 %vm388_vm1, %v4413_v10  ;;  %v1265_v44 = vpop.f32.mrf.mxu0 }
 0x147   : > { %v3678_v45 = vadd.f32 %v1262_v61, %v1174_v55  ;;  %2309 = vmatmul.msk.f32.gmra.mxu2 %vm388_vm1, %v3674_v40  ;;  %v1195_v61 = vrot.slane %v3691_v46, 1 }
 0x148   : > { %2345 = vmatmul.msk.f32.gmra.mxu3 %vm388_vm1, %v4421_v42 }
 0x149   : > { %4420 = vst [vmem:[#allocation20_spill] sm:$0xff] %v3678_v45  ;;  %2381 = vmatmul.msk.f32.gmra.mxu0 %vm388_vm1, %v3165_v30  ;;  %v3698_v45 = vsel %vm743_vm2, %v819_v62, %v820_v12  ;;  %v3703_v35 = vsel %vm302_vm0, %v1195_v61, %v1196_v57  ;;  %v822_v62 = vrot.slane %v3138_v38, 2 }
 0x14a   : > { %v949_v55 = vpop.f32.mrf.mxu2 }
 0x14b   : > { %v1105_v10 = vpop.f32.mrf.mxu3  ;;  %v1019_v19 = vadd.f32 %v949_v55, %v687_v53  ;;  %v689_v43 = vpop.f32.mrf.mxu1  ;;  %v3712_v53 = vld [vmem:[%s2776_s23 + $0x190] sm:$0x3] }
 0x14c   : > { %v690_v55 = vadd.f32 %v689_v43, %v3421_v22 }
 0x14d   : > { %v1175_v8 = vadd.f32 %v1105_v10, %v1019_v19  ;;  %v3720_v19 = vsel %vm743_vm2, %v820_v12, %v822_v62 }
 0x14e   : > { %2274 = vmatmul.msk.f32.gmra.mxu1 %vm388_vm1, %v4417_v21  ;;  %v1268_v0 = vpop.f32.mrf.mxu0 }
 0x14f   : > { %v3705_v30 = vadd.f32 %v1265_v44, %v1175_v8  ;;  %2310 = vmatmul.msk.f32.gmra.mxu2 %vm388_vm1, %v3698_v45  ;;  %v1198_v44 = vrot.slane %v3712_v53, 1 }
 0x150   : > { %2346 = vmatmul.msk.f32.gmra.mxu3 %vm388_vm1, %v3691_v46 }
 0x151   : > { %4423 = vst [vmem:[#allocation23_spill] sm:$0xff] %v3705_v30  ;;  %2382 = vmatmul.msk.f32.gmra.mxu0 %vm388_vm1, %v3703_v35  ;;  %v3725_v38 = vsel %vm302_vm0, %v1196_v57, %v1198_v44 }
 0x152   : > { %v952_v21 = vpop.f32.mrf.mxu2 }
 0x153   : > { %v1108_v10 = vpop.f32.mrf.mxu3  ;;  %v1020_v8 = vadd.f32 %v952_v21, %v690_v55  ;;  %v692_v61 = vpop.f32.mrf.mxu1 }
 0x154   : > { %v693_v43 = vadd.f32 %v692_v61, %v3441_v13 }
 0x155   : > { %v1176_v30 = vadd.f32 %v1108_v10, %v1020_v8 }
 0x156   : > { %2275 = vmatmul.msk.f32.gmra.mxu1 %vm388_vm1, %v4421_v42  ;;  %v1271_v46 = vpop.f32.mrf.mxu0 }
 0x157   : > { %v3727_v22 = vadd.f32 %v1268_v0, %v1176_v30  ;;  %2311 = vmatmul.msk.f32.gmra.mxu2 %vm388_vm1, %v3720_v19 }
 0x158   : > { %2347 = vmatmul.msk.f32.gmra.mxu3 %vm388_vm1, %v3685_v4 }
 0x159   : > { %2383 = vmatmul.msk.f32.gmra.mxu0 %vm388_vm1, %v3725_v38 }
 0x15a   : > { %v955_v12 = vpop.f32.mrf.mxu2 }
 0x15b   : > { %v1111_v62 = vpop.f32.mrf.mxu3  ;;  %v1021_v42 = vadd.f32 %v955_v12, %v693_v43  ;;  %v695_v55 = vpop.f32.mrf.mxu1 }
 0x15c   : > { %v696_v13 = vadd.f32 %v695_v55, %v3302_v32 }
 0x15d   : > { %v1177_v21 = vadd.f32 %v1111_v62, %v1021_v42 }
 0x15e   : > { %2388 = vmatmul.msk.f32.vlgmr.msra.gmra.mxu1 %vm388_vm1, %v3200_v34  ;;  %v1274_v30 = vpop.f32.mrf.mxu0 }
 0x15f   : > { %v3738_v57 = vadd.f32 %v1271_v46, %v1177_v21  ;;  %2424 = vmatmul.msk.f32.vlgmr.msra.gmra.mxu2 %vm388_vm1, %v3006_v51 }
 0x160   : > { %2460 = vmatmul.msk.f32.vlgmr.msra.gmra.mxu3 %vm388_vm1, %v3043_v18 }
 0x161   : > { %2496 = vmatmul.msk.f32.vlgmr.msra.gmra.mxu0 %vm388_vm1, %v3225_v7 }
 0x162   : > { %v958_v0 = vpop.f32.mrf.mxu2 }
 0x163   : > { %v1114_v10 = vpop.f32.mrf.mxu3  ;;  %v1022_v44 = vadd.f32 %v958_v0, %v696_v13  ;;  %v698_v8 = vpop.f32.mrf.mxu1 }
 0x164   : > { %v699_v51 = vadd.f32 %v698_v8, %v3323_v23 }
 0x165   : > { %v1178_v61 = vadd.f32 %v1114_v10, %v1022_v44 }
 0x166   : > { %2389 = vmatmul.msk.f32.gmra.mxu1 %vm388_vm1, %v3212_v6  ;;  %v1277_v34 = vpop.f32.mrf.mxu0 }
 0x167   : > { %v3749_v46 = vadd.f32 %v1274_v30, %v1178_v61  ;;  %2425 = vmatmul.msk.f32.gmra.mxu2 %vm388_vm1, %v3009_v52 }
 0x168   : > { %2461 = vmatmul.msk.f32.gmra.mxu3 %vm388_vm1, %v3097_v50 }
 0x169   : > { %2497 = vmatmul.msk.f32.gmra.mxu0 %vm388_vm1, %v3246_v60 }
 0x16a   : > { %v961_v18 = vpop.f32.mrf.mxu2 }
 0x16b   : > { %v1117_v32 = vpop.f32.mrf.mxu3  ;;  %v1023_v43 = vadd.f32 %v961_v18, %v699_v51  ;;  %v701_v12 = vpop.f32.mrf.mxu1 }
 0x16c   : > { %v702_v52 = vadd.f32 %v701_v12, %v3343_v26  ;;  %v2591_v12 = vld [vmem:[%s2776_s23 + $0x68] sm:$0xff] }
 0x16d   : > { %v1179_v62 = vadd.f32 %v1117_v32, %v1023_v43 }
 0x16e   : > { %2390 = vmatmul.msk.f32.gmra.mxu1 %vm388_vm1, %v3225_v7  ;;  %v1280_v6 = vpop.f32.mrf.mxu0 }
 0x16f   : > { %v3760_v42 = vadd.f32 %v1277_v34, %v1179_v62  ;;  %2426 = vmatmul.msk.f32.gmra.mxu2 %vm388_vm1, %v3106_v20 }
 0x170   : > { %2462 = vmatmul.msk.f32.gmra.mxu3 %vm388_vm1, %v3143_v16 }
 0x171   : > { %2498 = vmatmul.msk.f32.gmra.mxu0 %vm388_vm1, %v3262_v54 }
 0x172   : > { %v964_v50 = vpop.f32.mrf.mxu2 }
 0x173   : > { %v1120_v23 = vpop.f32.mrf.mxu3  ;;  %v1024_v55 = vadd.f32 %v964_v50, %v702_v52  ;;  %v704_v21 = vpop.f32.mrf.mxu1 }
 0x174   : > { %v705_v16 = vadd.f32 %v704_v21, %v3364_v59  ;;  %v4424_v59 = vld [vmem:[#allocation37_spill] sm:$0xff] }
 0x175   : > { %v1180_v30 = vadd.f32 %v1120_v23, %v1024_v55 }
 0x176   : > { %2391 = vmatmul.msk.f32.gmra.mxu1 %vm388_vm1, %v3246_v60  ;;  %v1283_v7 = vpop.f32.mrf.mxu0 }
 0x177   : > { %v3771_v13 = vadd.f32 %v1280_v6, %v1180_v30  ;;  %2427 = vmatmul.msk.f32.gmra.mxu2 %vm388_vm1, %v3109_v58  ;;  %v2590_v58 = vld [vmem:[%s2776_s23 + $0x60] sm:$0xff]  ;;  %v4427_v6 = vld [vmem:[#allocation39_spill] sm:$0xff] }
 0x178   : > { %2463 = vmatmul.msk.f32.gmra.mxu3 %vm388_vm1, %v3170_v49 }
 0x179   : > { %2499 = vmatmul.msk.f32.gmra.mxu0 %vm388_vm1, %v3274_v37 }
 0x17a   : > { %v967_v20 = vpop.f32.mrf.mxu2 }
 0x17b   : > { %v1123_v26 = vpop.f32.mrf.mxu3  ;;  %v1025_v0 = vadd.f32 %v967_v20, %v705_v16  ;;  %v707_v10 = vpop.f32.mrf.mxu1  ;;  %v4428_v16 = vld [vmem:[#allocation15_spill] sm:$0xff] }
 0x17c   : > { %v708_v49 = vadd.f32 %v707_v10, %v3390_v31  ;;  %v4426_v31 = vld [vmem:[#allocation48_spill] sm:$0xff]  ;;  %v4429_v20 = vld [vmem:[#allocation51_spill] sm:$0xff] }
 0x17d   : > { %v1181_v44 = vadd.f32 %v1123_v26, %v1025_v0  ;;  %v4430_v0 = vld [vmem:[#allocation41_spill] sm:$0xff] }
 0x17e   : > { %2392 = vmatmul.msk.f32.gmra.mxu1 %vm388_vm1, %v3262_v54  ;;  %v1286_v60 = vpop.f32.mrf.mxu0 }
 0x17f   : > { %v3782_v8 = vadd.f32 %v1283_v7, %v1181_v44  ;;  %2428 = vmatmul.msk.f32.gmra.mxu2 %vm388_vm1, %v2590_v58  ;;  %v2592_v7 = vld [vmem:[%s2776_s23 + $0x78] sm:$0xff] }
 0x180   : > { %2464 = vmatmul.msk.f32.gmra.mxu3 %vm388_vm1, %v2821_v24  ;;  %v4425_v24 = vld [vmem:[#allocation10_spill] sm:$0xff] }
 0x181   : > { %2500 = vmatmul.msk.f32.gmra.mxu0 %vm388_vm1, %v4424_v59 }
 0x182   : > { %v970_v61 = vpop.f32.mrf.mxu2 }
 0x183   : > { %v1126_v34 = vpop.f32.mrf.mxu3  ;;  %v1026_v51 = vadd.f32 %v970_v61, %v708_v49  ;;  %v710_v18 = vpop.f32.mrf.mxu1 }
 0x184   : > { %v711_v62 = vadd.f32 %v710_v18, %v4426_v31  ;;  %v4432_v18 = vld [vmem:[#allocation54_spill] sm:$0xff] }
 0x185   : > { %v1182_v54 = vadd.f32 %v1126_v34, %v1026_v51  ;;  %v2593_v34 = vld [vmem:[%s2776_s23 + $0x80] sm:$0xff]  ;;  %v4431_v51 = vld [vmem:[#allocation18_spill] sm:$0xff] }
 0x186   : > { %2393 = vmatmul.msk.f32.gmra.mxu1 %vm388_vm1, %v3274_v37  ;;  %v1289_v32 = vpop.f32.mrf.mxu0 }
 0x187   : > { %v3793_v43 = vadd.f32 %v1286_v60, %v1182_v54  ;;  %2429 = vmatmul.msk.f32.gmra.mxu2 %vm388_vm1, %v2591_v12 }
 0x188   : > { %2465 = vmatmul.msk.f32.gmra.mxu3 %vm388_vm1, %v4425_v24 }
 0x189   : > { %2501 = vmatmul.msk.f32.gmra.mxu0 %vm388_vm1, %v4427_v6 }
 0x18a   : > { %v973_v52 = vpop.f32.mrf.mxu2 }
 0x18b   : > { %v1129_v50 = vpop.f32.mrf.mxu3  ;;  %v1027_v23 = vadd.f32 %v973_v52, %v711_v62  ;;  %v713_v55 = vpop.f32.mrf.mxu1 }
 0x18c   : > { %v714_v26 = vadd.f32 %v713_v55, %v4429_v20  ;;  %v4434_v55 = vld [vmem:[#allocation22_spill] sm:$0xff] }
 0x18d   : > { %v1183_v37 = vadd.f32 %v1129_v50, %v1027_v23  ;;  %v2594_v23 = vld [vmem:[%s2776_s23 + $0x90] sm:$0xff] }
 0x18e   : > { %2394 = vmatmul.msk.f32.gmra.mxu1 %vm388_vm1, %v4424_v59  ;;  %v1292_v21 = vpop.f32.mrf.mxu0 }
 0x18f   : > { %v3804_v30 = vadd.f32 %v1289_v32, %v1183_v37  ;;  %2430 = vmatmul.msk.f32.gmra.mxu2 %vm388_vm1, %v2592_v7  ;;  %v4433_v32 = vld [vmem:[#allocation43_spill] sm:$0xff]  ;;  %v4435_v37 = vld [vmem:[#allocation38_spill] sm:$0xff]  ;;  %v4436_v7 = vld [vmem:[#allocation45_spill] sm:$0xff] }
 0x190   : > { %2466 = vmatmul.msk.f32.gmra.mxu3 %vm388_vm1, %v4428_v16 }
 0x191   : > { %2502 = vmatmul.msk.f32.gmra.mxu0 %vm388_vm1, %v4430_v0 }
 0x192   : > { %v976_v10 = vpop.f32.mrf.mxu2 }
 0x193   : > { %v1132_v44 = vpop.f32.mrf.mxu3  ;;  %v1028_v60 = vadd.f32 %v976_v10, %v714_v26  ;;  %v716_v58 = vpop.f32.mrf.mxu1 }
 0x194   : > { %v717_v54 = vadd.f32 %v716_v58, %v4432_v18  ;;  %v2595_v58 = vld [vmem:[%s2776_s23 + $0x98] sm:$0xff] }
 0x195   : > { %v1184_v49 = vadd.f32 %v1132_v44, %v1028_v60 }
 0x196   : > { %2395 = vmatmul.msk.f32.gmra.mxu1 %vm388_vm1, %v4427_v6  ;;  %v1295_v59 = vpop.f32.mrf.mxu0 }
 0x197   : > { %v3815_v61 = vadd.f32 %v1292_v21, %v1184_v49  ;;  %2431 = vmatmul.msk.f32.gmra.mxu2 %vm388_vm1, %v2593_v34  ;;  %v4437_v49 = vld [vmem:[#allocation26_spill] sm:$0xff] }
 0x198   : > { %2467 = vmatmul.msk.f32.gmra.mxu3 %vm388_vm1, %v4431_v51  ;;  %v4439_v51 = vld [vmem:[#allocation47_spill] sm:$0xff] }
 0x199   : > { %2503 = vmatmul.msk.f32.gmra.mxu0 %vm388_vm1, %v4433_v32 }
 0x19a   : > { %v979_v12 = vpop.f32.mrf.mxu2 }
 0x19b   : > { %v1135_v24 = vpop.f32.mrf.mxu3  ;;  %v1029_v31 = vadd.f32 %v979_v12, %v717_v54  ;;  %v719_v62 = vpop.f32.mrf.mxu1 }
 0x19c   : > { %v720_v21 = vadd.f32 %v719_v62, %v4435_v37  ;;  %v4442_v37 = vld [vmem:[#allocation50_spill] sm:$0xff] }
 0x19d   : > { %v1185_v6 = vadd.f32 %v1135_v24, %v1029_v31 }
 0x19e   : > { %2396 = vmatmul.msk.f32.gmra.mxu1 %vm388_vm1, %v4430_v0  ;;  %v1298_v52 = vpop.f32.mrf.mxu0 }
 0x19f   : > { %v3826_v50 = vadd.f32 %v1295_v59, %v1185_v6  ;;  %2432 = vmatmul.msk.f32.gmra.mxu2 %vm388_vm1, %v2594_v23  ;;  %v4438_v59 = vld [vmem:[#allocation40_spill] sm:$0xff]  ;;  %v2596_v6 = vld [vmem:[%s2776_s23 + $0xa8] sm:$0xff] }
 0x1a0   : > { %2468 = vmatmul.msk.f32.gmra.mxu3 %vm388_vm1, %v4434_v55  ;;  %v4441_v23 = vld [vmem:[#allocation42_spill] sm:$0xff] }
 0x1a1   : > { %2504 = vmatmul.msk.f32.gmra.mxu0 %vm388_vm1, %v4436_v7 }
 0x1a2   : > { %v982_v16 = vpop.f32.mrf.mxu2 }
 0x1a3   : > { %v1138_v20 = vpop.f32.mrf.mxu3  ;;  %v1030_v26 = vadd.f32 %v982_v16, %v720_v21  ;;  %v722_v10 = vpop.f32.mrf.mxu1 }
 0x1a4   : > { %v723_v34 = vadd.f32 %v722_v10, %v4438_v59 }
 0x1a5   : > { %v1186_v0 = vadd.f32 %v1138_v20, %v1030_v26 }
 0x1a6   : > { %2397 = vmatmul.msk.f32.gmra.mxu1 %vm388_vm1, %v4433_v32  ;;  %v1301_v44 = vpop.f32.mrf.mxu0 }
 0x1a7   : > { %v3837_v60 = vadd.f32 %v1298_v52, %v1186_v0  ;;  %2433 = vmatmul.msk.f32.gmra.mxu2 %vm388_vm1, %v2595_v58  ;;  %v4440_v52 = vld [vmem:[#allocation31_spill] sm:$0xff] }
 0x1a8   : > { %2469 = vmatmul.msk.f32.gmra.mxu3 %vm388_vm1, %v4437_v49  ;;  %v4443_v58 = vld [vmem:[#allocation35_spill] sm:$0xff]  ;;  %v4444_v49 = vld [vmem:[#allocation44_spill] sm:$0xff] }
 0x1a9   : > { %2505 = vmatmul.msk.f32.gmra.mxu0 %vm388_vm1, %v4439_v51 }
 0x1aa   : > { %v985_v18 = vpop.f32.mrf.mxu2 }
 0x1ab   : > { %v1141_v54 = vpop.f32.mrf.mxu3  ;;  %v1031_v12 = vadd.f32 %v985_v18, %v723_v34  ;;  %v725_v24 = vpop.f32.mrf.mxu1  ;;  %v4445_v34 = vld [vmem:[#allocation53_spill] sm:$0xff] }
 0x1ac   : > { %v726_v55 = vadd.f32 %v725_v24, %v4441_v23  ;;  %v4447_v23 = vld [vmem:[#allocation46_spill] sm:$0xff] }
 0x1ad   : > { %v1187_v32 = vadd.f32 %v1141_v54, %v1031_v12 }
 0x1ae   : > { %2398 = vmatmul.msk.f32.gmra.mxu1 %vm388_vm1, %v4436_v7  ;;  %v1304_v31 = vpop.f32.mrf.mxu0 }
 0x1af   : > { %v3848_v62 = vadd.f32 %v1301_v44, %v1187_v32  ;;  %2434 = vmatmul.msk.f32.gmra.mxu2 %vm388_vm1, %v2596_v6  ;;  %v2597_v44 = vld [vmem:[%s2776_s23 + $0xb0] sm:$0xff]  ;;  %v2598_v6 = vld [vmem:[%s2776_s23 + $0xc0] sm:$0xff] }
 0x1b0   : > { %2470 = vmatmul.msk.f32.gmra.mxu3 %vm388_vm1, %v4440_v52  ;;  %v4446_v52 = vld [vmem:[#allocation7_spill] sm:$0xff] }
 0x1b1   : > { %2506 = vmatmul.msk.f32.gmra.mxu0 %vm388_vm1, %v4442_v37 }
 0x1b2   : > { %v988_v21 = vpop.f32.mrf.mxu2 }
 0x1b3   : > { %v1144_v16 = vpop.f32.mrf.mxu3  ;;  %v1032_v20 = vadd.f32 %v988_v21, %v726_v55  ;;  %v728_v26 = vpop.f32.mrf.mxu1  ;;  %v4448_v21 = vld [vmem:[#allocation56_spill] sm:$0xff] }
 0x1b4   : > { %v729_v59 = vadd.f32 %v728_v26, %v4444_v49  ;;  %v4449_v49 = vld [vmem:[#allocation11_spill] sm:$0xff] }
 0x1b5   : > { %v1188_v7 = vadd.f32 %v1144_v16, %v1032_v20 }
 0x1b6   : > { %2399 = vmatmul.msk.f32.gmra.mxu1 %vm388_vm1, %v4439_v51  ;;  %v1307_v10 = vpop.f32.mrf.mxu0 }
 0x1b7   : > { %v3859_v0 = vadd.f32 %v1304_v31, %v1188_v7  ;;  %2435 = vmatmul.msk.f32.gmra.mxu2 %vm388_vm1, %v2597_v44 }
 0x1b8   : > { %2471 = vmatmul.msk.f32.gmra.mxu3 %vm388_vm1, %v4443_v58  ;;  %v2599_v58 = vld [vmem:[%s2776_s23 + $0xc8] sm:$0xff] }
 0x1b9   : > { %2507 = vmatmul.msk.f32.gmra.mxu0 %vm388_vm1, %v4445_v34 }
 0x1ba   : > { %v991_v18 = vpop.f32.mrf.mxu2 }
 0x1bb   : > { %v1147_v54 = vpop.f32.mrf.mxu3  ;;  %v1033_v12 = vadd.f32 %v991_v18, %v729_v59  ;;  %v731_v24 = vpop.f32.mrf.mxu1  ;;  %v4450_v59 = vld [vmem:[#allocation49_spill] sm:$0xff] }
 0x1bc   : > { %v732_v55 = vadd.f32 %v731_v24, %v4447_v23  ;;  %v4451_v23 = vld [vmem:[#allocation52_spill] sm:$0xff] }
 0x1bd   : > { %v1189_v51 = vadd.f32 %v1147_v54, %v1033_v12 }
 0x1be   : > { %2400 = vmatmul.msk.f32.gmra.mxu1 %vm388_vm1, %v4442_v37  ;;  %v1310_v32 = vpop.f32.mrf.mxu0 }
 0x1bf   : > { %v3870_v31 = vadd.f32 %v1307_v10, %v1189_v51  ;;  %2436 = vmatmul.msk.f32.gmra.mxu2 %vm388_vm1, %v2598_v6 }
 0x1c0   : > { %2472 = vmatmul.msk.f32.gmra.mxu3 %vm388_vm1, %v4446_v52  ;;  %v2600_v52 = vld [vmem:[%s2776_s23 + $0xd8] sm:$0xff] }
 0x1c1   : > { %2508 = vmatmul.msk.f32.gmra.mxu0 %vm388_vm1, %v4448_v21 }
 0x1c2   : > { %v994_v16 = vpop.f32.mrf.mxu2 }
 0x1c3   : > { %v1150_v20 = vpop.f32.mrf.mxu3  ;;  %v1034_v26 = vadd.f32 %v994_v16, %v732_v55  ;;  %v734_v7 = vpop.f32.mrf.mxu1 }
 0x1c4   : > { %v735_v18 = vadd.f32 %v734_v7, %v4450_v59 }
 0x1c5   : > { %v1190_v37 = vadd.f32 %v1150_v20, %v1034_v26 }
 0x1c6   : > { %2401 = vmatmul.msk.f32.gmra.mxu1 %vm388_vm1, %v4445_v34  ;;  %v1313_v10 = vpop.f32.mrf.mxu0 }
 0x1c7   : > { %v3881_v44 = vadd.f32 %v1310_v32, %v1190_v37  ;;  %2437 = vmatmul.msk.f32.gmra.mxu2 %vm388_vm1, %v2599_v58  ;;  %v2601_v58 = vld [vmem:[%s2776_s23 + $0xe0] sm:$0xff] }
 0x1c8   : > { %2473 = vmatmul.msk.f32.gmra.mxu3 %vm388_vm1, %v4449_v49 }
 0x1c9   : > { %2509 = vmatmul.msk.f32.gmra.mxu0 %vm388_vm1, %v3476_v11 }
 0x1ca   : > { %v997_v54 = vpop.f32.mrf.mxu2 }
 0x1cb   : > { %v1153_v12 = vpop.f32.mrf.mxu3  ;;  %v1035_v24 = vadd.f32 %v997_v54, %v735_v18  ;;  %v737_v51 = vpop.f32.mrf.mxu1 }
 0x1cc   : > { %v738_v55 = vadd.f32 %v737_v51, %v4451_v23 }
 0x1cd   : > { %v1191_v34 = vadd.f32 %v1153_v12, %v1035_v24 }
 0x1ce   : > { %2402 = vmatmul.msk.f32.gmra.mxu1 %vm388_vm1, %v4448_v21  ;;  %v1316_v32 = vpop.f32.mrf.mxu0 }
 0x1cf   : > { %v3892_v6 = vadd.f32 %v1313_v10, %v1191_v34  ;;  %2438 = vmatmul.msk.f32.gmra.mxu2 %vm388_vm1, %v2600_v52  ;;  %v2602_v34 = vld [vmem:[%s2776_s23 + $0xf0] sm:$0xff] }
 0x1d0   : > { %2474 = vmatmul.msk.f32.gmra.mxu3 %vm388_vm1, %v2926_v1  ;;  %v4452_v1 = vld [vmem:[#allocation55_spill] sm:$0xff] }
 0x1d1   : > { %2510 = vmatmul.msk.f32.gmra.mxu0 %vm388_vm1, %v3492_v15 }
 0x1d2   : > { %v1000_v16 = vpop.f32.mrf.mxu2 }
 0x1d3   : > { %v1156_v20 = vpop.f32.mrf.mxu3  ;;  %v1036_v26 = vadd.f32 %v1000_v16, %v738_v55  ;;  %v740_v7 = vpop.f32.mrf.mxu1  ;;  %v3926_v16 = vld [vmem:[%s4255_s2] ss:$0 sm:$0xff] }
 0x1d4   : > { %v741_v49 = vadd.f32 %v740_v7, %v4452_v1 }
 0x1d5   : > { %v1192_v21 = vadd.f32 %v1156_v20, %v1036_v26  ;;  %v3934_v20 = vld [vmem:[%s4256_s3] ss:$0 sm:$0xff]  ;;  %v2603_v26 = vld [vmem:[%s2776_s23 + $0xf8] sm:$0xff] }
 0x1d6   : > { %2403 = vmatmul.msk.f32.gmra.mxu1 %vm388_vm1, %v3476_v11  ;;  %v1319_v37 = vpop.f32.mrf.mxu0 }
 0x1d7   : > { %v3903_v10 = vadd.f32 %v1316_v32, %v1192_v21  ;;  %2439 = vmatmul.msk.f32.gmra.mxu2 %vm388_vm1, %v2601_v58 }
 0x1d8   : > { %2475 = vmatmul.msk.f32.gmra.mxu3 %vm388_vm1, %v2971_v27 }
 0x1d9   : > { %2511 = vmatmul.msk.f32.gmra.mxu0 %vm388_vm1, %v3507_v29 }
 0x1da   : > { %v1003_v59 = vpop.f32.mrf.mxu2 }
 0x1db   : > { %v1159_v18 = vpop.f32.mrf.mxu3  ;;  %v1037_v54 = vadd.f32 %v1003_v59, %v741_v49  ;;  %v1385_v12 = vpop.f32.mrf.mxu1 }
 0x1dc   : > { %v1481_v27 = vadd.f32 %v1385_v12, %v3480_v39 }
 0x1dd   : > { %v1193_v11 = vadd.f32 %v1159_v18, %v1037_v54  ;;  %v2604_v54 = vld [vmem:[%s2776_s23 + $0x108] sm:$0xff] }
 0x1de   : > { %2404 = vmatmul.msk.f32.gmra.mxu1 %vm388_vm1, %v3492_v15  ;;  %v1860_v24 = vpop.f32.mrf.mxu0 }
 0x1df   : > { %v3914_v51 = vadd.f32 %v1319_v37, %v1193_v11  ;;  %2440 = vmatmul.msk.f32.gmra.mxu2 %vm388_vm1, %v2602_v34 }
 0x1e0   : > { %2476 = vmatmul.msk.f32.gmra.mxu3 %vm388_vm1, %v3026_v63 }
 0x1e1   : > { %2512 = vmatmul.msk.f32.gmra.mxu0 %vm388_vm1, %v3523_v2 }
 0x1e2   : > { %v1541_v32 = vpop.f32.mrf.mxu2 }
 0x1e3   : > { %v1701_v52 = vpop.f32.mrf.mxu3  ;;  %v1637_v23 = vadd.f32 %v1541_v32, %v1481_v27  ;;  %v1388_v15 = vpop.f32.mrf.mxu1 }
 0x1e4   : > { %v1482_v7 = vadd.f32 %v1388_v15, %v3496_v48 }
 0x1e5   : > { %v1797_v55 = vadd.f32 %v1701_v52, %v1637_v23 }
 0x1e6   : > { %2405 = vmatmul.msk.f32.gmra.mxu1 %vm388_vm1, %v3507_v29  ;;  %v1863_v63 = vpop.f32.mrf.mxu0 }
 0x1e7   : > { %v1956_v39 = vadd.f32 %v1860_v24, %v1797_v55  ;;  %2441 = vmatmul.msk.f32.gmra.mxu2 %vm388_vm1, %v2603_v26  ;;  %v4453_v55 = vld [vmem:[#allocation57_spill] sm:$0xff] }
 0x1e8   : > { %2477 = vmatmul.msk.f32.gmra.mxu3 %vm388_vm1, %v3071_v5 }
 0x1e9   : > { %v1992_v29 = vmul.f32 %v3926_v16, %v1956_v39  ;;  %2513 = vmatmul.msk.f32.gmra.mxu0 %vm388_vm1, %v3547_v9 }
 0x1ea   : > { %v1544_v21 = vpop.f32.mrf.mxu2 }
 0x1eb   : > { %v1704_v37 = vpop.f32.mrf.mxu3  ;;  %v2028_v58 = vadd.f32 %v3934_v20, %v1992_v29  ;;  %v1638_v1 = vadd.f32 %v1544_v21, %v1482_v7  ;;  %v1391_v49 = vpop.f32.mrf.mxu1 }
 0x1ec   : > { %v1483_v12 = vadd.f32 %v1391_v49, %v3511_v3  ;;  %v2606_v49 = vld [vmem:[%s2776_s23 + $0x120] sm:$0xff] }
 0x1ed   : > { %v2060_v59 = vmax.f32 %v2028_v58, 0.0  ;;  %v1798_v18 = vadd.f32 %v1704_v37, %v1638_v1 }
 0x1ee   : > { %2406 = vmatmul.msk.f32.gmra.mxu1 %vm388_vm1, %v3523_v2  ;;  %v1866_v5 = vpop.f32.mrf.mxu0 }
 0x1ef   : > { %2092 = vst.msk [vmem:[%s3949_s29] sm:$0xff] %vm388_vm1, %v2060_v59  ;;  %v1957_v48 = vadd.f32 %v1863_v63, %v1798_v18  ;;  %2442 = vmatmul.msk.f32.gmra.mxu2 %vm388_vm1, %v2604_v54  ;;  %v4454_v59 = vld [vmem:[#allocation24_spill] sm:$0xff] }
 0x1f0   : > { %2478 = vmatmul.msk.f32.gmra.mxu3 %vm388_vm1, %v4389_v14  ;;  %v2605_v14 = vld [vmem:[%s2776_s23 + $0x110] sm:$0xff] }
 0x1f1   : > { %v1993_v11 = vmul.f32 %v3926_v16, %v1957_v48  ;;  %2514 = vmatmul.msk.f32.gmra.mxu0 %vm388_vm1, %v3566_v33  ;;  %v4455_v48 = vld [vmem:[#allocation5_spill] sm:$0xff] }
 0x1f2   : > { %v1547_v2 = vpop.f32.mrf.mxu2 }
 0x1f3   : > { %v1707_v24 = vpop.f32.mrf.mxu3  ;;  %v2029_v34 = vadd.f32 %v3934_v20, %v1993_v11  ;;  %v1639_v27 = vadd.f32 %v1547_v2, %v1483_v12  ;;  %v1394_v32 = vpop.f32.mrf.mxu1 }
 0x1f4   : > { %v1484_v63 = vadd.f32 %v1394_v32, %v4453_v55  ;;  %v2607_v32 = vld [vmem:[%s2776_s23 + $0x128] sm:$0xff] }
 0x1f5   : > { %v2061_v52 = vmax.f32 %v2029_v34, 0.0  ;;  %v1799_v23 = vadd.f32 %v1707_v24, %v1639_v27 }
 0x1f6   : > { %2407 = vmatmul.msk.f32.gmra.mxu1 %vm388_vm1, %v3547_v9  ;;  %v1869_v15 = vpop.f32.mrf.mxu0 }
 0x1f7   : > { %2093 = vst.msk [vmem:[%s3949_s29 + $0x8] sm:$0xff] %vm388_vm1, %v2061_v52  ;;  %v1958_v3 = vadd.f32 %v1866_v5, %v1799_v23  ;;  %2443 = vmatmul.msk.f32.gmra.mxu2 %vm388_vm1, %v2605_v14  ;;  %v4456_v52 = vld [vmem:[#allocation12_spill] sm:$0xff] }
 0x1f8   : > { %2479 = vmatmul.msk.f32.gmra.mxu3 %vm388_vm1, %v3162_v17  ;;  %v4457_v23 = vld [vmem:[#allocation32_spill] sm:$0xff] }
 0x1f9   : > { %v1994_v39 = vmul.f32 %v3926_v16, %v1958_v3  ;;  %2515 = vmatmul.msk.f32.gmra.mxu0 %vm388_vm1, %v3581_v41 }
 0x1fa   : > { %v1550_v9 = vpop.f32.mrf.mxu2 }
 0x1fb   : > { %v1710_v26 = vpop.f32.mrf.mxu3  ;;  %v2030_v7 = vadd.f32 %v3934_v20, %v1994_v39  ;;  %v1640_v29 = vadd.f32 %v1550_v9, %v1484_v63  ;;  %v1397_v21 = vpop.f32.mrf.mxu1 }
 0x1fc   : > { %v1485_v18 = vadd.f32 %v1397_v21, %v4454_v59  ;;  %v2608_v21 = vld [vmem:[%s2776_s23 + $0x138] sm:$0xff] }
 0x1fd   : > { %v2062_v37 = vmax.f32 %v2030_v7, 0.0  ;;  %v1800_v58 = vadd.f32 %v1710_v26, %v1640_v29 }
 0x1fe   : > { %2408 = vmatmul.msk.f32.gmra.mxu1 %vm388_vm1, %v3566_v33  ;;  %v1872_v1 = vpop.f32.mrf.mxu0 }
 0x1ff   : > { %2094 = vst.msk [vmem:[%s3949_s29 + $0x10] sm:$0xff] %vm388_vm1, %v2062_v37  ;;  %v1959_v17 = vadd.f32 %v1869_v15, %v1800_v58  ;;  %2444 = vmatmul.msk.f32.gmra.mxu2 %vm388_vm1, %v2606_v49  ;;  %v4458_v37 = vld [vmem:[#allocation28_spill] sm:$0xff] }
 0x200   : > { %2480 = vmatmul.msk.f32.gmra.mxu3 %vm388_vm1, %v4395_v28 }
 0x201   : > { %v1995_v5 = vmul.f32 %v3926_v16, %v1959_v17  ;;  %2516 = vmatmul.msk.f32.gmra.mxu0 %vm388_vm1, %v4455_v48  ;;  %v4459_v17 = vld [vmem:[#allocation6_spill] sm:$0xff] }
 0x202   : > { %v1553_v33 = vpop.f32.mrf.mxu2 }
 0x203   : > { %v1713_v54 = vpop.f32.mrf.mxu3  ;;  %v2031_v12 = vadd.f32 %v3934_v20, %v1995_v5  ;;  %v1641_v11 = vadd.f32 %v1553_v33, %v1485_v18  ;;  %v1400_v2 = vpop.f32.mrf.mxu1 }
 0x204   : > { %v1486_v15 = vadd.f32 %v1400_v2, %v4457_v23  ;;  %v4460_v2 = vld [vmem:[#allocation19_spill] sm:$0xff] }
 0x205   : > { %v2063_v24 = vmax.f32 %v2031_v12, 0.0  ;;  %v1801_v34 = vadd.f32 %v1713_v54, %v1641_v11  ;;  %v2609_v11 = vld [vmem:[%s2776_s23 + $0x140] sm:$0xff] }
 0x206   : > { %2409 = vmatmul.msk.f32.gmra.mxu1 %vm388_vm1, %v3581_v41  ;;  %v1875_v27 = vpop.f32.mrf.mxu0 }
 0x207   : > { %2095 = vst.msk [vmem:[%s3949_s29 + $0x18] sm:$0xff] %vm388_vm1, %v2063_v24  ;;  %v1960_v28 = vadd.f32 %v1872_v1, %v1801_v34  ;;  %2445 = vmatmul.msk.f32.gmra.mxu2 %vm388_vm1, %v2607_v32  ;;  %v4461_v24 = vld [vmem:[#allocation34_spill] sm:$0xff] }
 0x208   : > { %2481 = vmatmul.msk.f32.gmra.mxu3 %vm388_vm1, %v4456_v52 }
 0x209   : > { %v1996_v3 = vmul.f32 %v3926_v16, %v1960_v28  ;;  %2517 = vmatmul.msk.f32.gmra.mxu0 %vm388_vm1, %v3612_v47 }
 0x20a   : > { %v1556_v41 = vpop.f32.mrf.mxu2 }
 0x20b   : > { %v1716_v14 = vpop.f32.mrf.mxu3  ;;  %v2032_v55 = vadd.f32 %v3934_v20, %v1996_v3  ;;  %v1642_v63 = vadd.f32 %v1556_v41, %v1486_v15  ;;  %v1403_v39 = vpop.f32.mrf.mxu1 }
 0x20c   : > { %v1487_v58 = vadd.f32 %v1403_v39, %v4458_v37 }
 0x20d   : > { %v2064_v9 = vmax.f32 %v2032_v55, 0.0  ;;  %v1802_v26 = vadd.f32 %v1716_v14, %v1642_v63  ;;  %v2610_v55 = vld [vmem:[%s2776_s23 + $0x150] sm:$0xff]  ;;  %v4462_v63 = vld [vmem:[#allocation8_spill] sm:$0xff] }
 0x20e   : > { %2410 = vmatmul.msk.f32.gmra.mxu1 %vm388_vm1, %v4455_v48  ;;  %v1878_v7 = vpop.f32.mrf.mxu0 }
 0x20f   : > { %2096 = vst.msk [vmem:[%s3949_s29 + $0x20] sm:$0xff] %vm388_vm1, %v2064_v9  ;;  %v1961_v29 = vadd.f32 %v1875_v27, %v1802_v26  ;;  %2446 = vmatmul.msk.f32.gmra.mxu2 %vm388_vm1, %v2608_v21  ;;  %v4463_v26 = vld [vmem:[#allocation16_spill] sm:$0xff] }
 0x210   : > { %2482 = vmatmul.msk.f32.gmra.mxu3 %vm388_vm1, %v4403_v36 }
 0x211   : > { %v1997_v1 = vmul.f32 %v3926_v16, %v1961_v29  ;;  %2518 = vmatmul.msk.f32.gmra.mxu0 %vm388_vm1, %v4459_v17 }
 0x212   : > { %v1559_v49 = vpop.f32.mrf.mxu2 }
 0x213   : > { %v1719_v59 = vpop.f32.mrf.mxu3  ;;  %v2033_v18 = vadd.f32 %v3934_v20, %v1997_v1  ;;  %v1643_v5 = vadd.f32 %v1559_v49, %v1487_v58  ;;  %v1406_v48 = vpop.f32.mrf.mxu1 }
 0x214   : > { %v1488_v34 = vadd.f32 %v1406_v48, %v4461_v24 }
 0x215   : > { %v2065_v33 = vmax.f32 %v2033_v18, 0.0  ;;  %v1803_v54 = vadd.f32 %v1719_v59, %v1643_v5  ;;  %v2611_v59 = vld [vmem:[%s2776_s23 + $0x158] sm:$0xff]  ;;  %v4464_v18 = vld [vmem:[#allocation27_spill] sm:$0xff]  ;;  %v4465_v5 = vld [vmem:[#allocation13_spill] sm:$0xff] }
 0x216   : > { %2411 = vmatmul.msk.f32.gmra.mxu1 %vm388_vm1, %v3612_v47  ;;  %v1881_v12 = vpop.f32.mrf.mxu0 }
 0x217   : > { %2097 = vst.msk [vmem:[%s3949_s29 + $0x28] sm:$0xff] %vm388_vm1, %v2065_v33  ;;  %v1962_v36 = vadd.f32 %v1878_v7, %v1803_v54  ;;  %2447 = vmatmul.msk.f32.gmra.mxu2 %vm388_vm1, %v2609_v11 }
 0x218   : > { %2483 = vmatmul.msk.f32.gmra.mxu3 %vm388_vm1, %v4460_v2 }
 0x219   : > { %v1998_v27 = vmul.f32 %v3926_v16, %v1962_v36  ;;  %2519 = vmatmul.msk.f32.gmra.mxu0 %vm388_vm1, %v3643_v25 }
 0x21a   : > { %v1562_v47 = vpop.f32.mrf.mxu2 }
 0x21b   : > { %v1722_v28 = vpop.f32.mrf.mxu3  ;;  %v2034_v32 = vadd.f32 %v3934_v20, %v1998_v27  ;;  %v1644_v52 = vadd.f32 %v1562_v47, %v1488_v34  ;;  %v1409_v23 = vpop.f32.mrf.mxu1  ;;  %v2612_v47 = vld [vmem:[%s2776_s23 + $0x168] sm:$0xff] }
 0x21c   : > { %v1489_v39 = vadd.f32 %v1409_v23, %v4462_v63 }
 0x21d   : > { %v2066_v15 = vmax.f32 %v2034_v32, 0.0  ;;  %v1804_v3 = vadd.f32 %v1722_v28, %v1644_v52  ;;  %v4466_v28 = vld [vmem:[#allocation33_spill] sm:$0xff] }
 0x21e   : > { %2412 = vmatmul.msk.f32.gmra.mxu1 %vm388_vm1, %v4459_v17  ;;  %v1884_v41 = vpop.f32.mrf.mxu0  ;;  %v4467_v32 = vld [vmem:[#allocation9_spill] sm:$0xff] }
 0x21f   : > { %2098 = vst.msk [vmem:[%s3949_s29 + $0x30] sm:$0xff] %vm388_vm1, %v2066_v15  ;;  %v1963_v14 = vadd.f32 %v1881_v12, %v1804_v3  ;;  %2448 = vmatmul.msk.f32.gmra.mxu2 %vm388_vm1, %v2610_v55 }
 0x220   : > { %2484 = vmatmul.msk.f32.gmra.mxu3 %vm388_vm1, %v4411_v56 }
 0x221   : > { %v1999_v9 = vmul.f32 %v3926_v16, %v1963_v14  ;;  %2520 = vmatmul.msk.f32.gmra.mxu0 %vm388_vm1, %v4463_v26 }
 0x222   : > { %v1565_v7 = vpop.f32.mrf.mxu2 }
 0x223   : > { %v1725_v29 = vpop.f32.mrf.mxu3  ;;  %v2035_v21 = vadd.f32 %v3934_v20, %v1999_v9  ;;  %v1645_v37 = vadd.f32 %v1565_v7, %v1489_v39  ;;  %v1412_v58 = vpop.f32.mrf.mxu1  ;;  %v2613_v7 = vld [vmem:[%s2776_s23 + $0x170] sm:$0xff] }
 0x224   : > { %v1490_v48 = vadd.f32 %v1412_v58, %v4465_v5 }
 0x225   : > { %v2067_v1 = vmax.f32 %v2035_v21, 0.0  ;;  %v1805_v17 = vadd.f32 %v1725_v29, %v1645_v37  ;;  %v4468_v29 = vld [vmem:[#allocation36_spill] sm:$0xff]  ;;  %v4469_v21 = vld [vmem:[#allocation14_spill] sm:$0xff] }
 0x226   : > { %2413 = vmatmul.msk.f32.gmra.mxu1 %vm388_vm1, %v3643_v25  ;;  %v1887_v49 = vpop.f32.mrf.mxu0 }
 0x227   : > { %2099 = vst.msk [vmem:[%s3949_s29 + $0x38] sm:$0xff] %vm388_vm1, %v2067_v1  ;;  %v1964_v56 = vadd.f32 %v1884_v41, %v1805_v17  ;;  %2449 = vmatmul.msk.f32.gmra.mxu2 %vm388_vm1, %v2611_v59  ;;  %v4470_v1 = vld [vmem:[#allocation17_spill] sm:$0xff]  ;;  %v1355_v17 = vrot.slane %v3685_v4, 2 }
 0x228   : > { %2485 = vmatmul.msk.f32.gmra.mxu3 %vm388_vm1, %v4464_v18 }
 0x229   : > { %v2000_v33 = vmul.f32 %v3926_v16, %v1964_v56  ;;  %2521 = vmatmul.msk.f32.gmra.mxu0 %vm388_vm1, %v3674_v40 }
 0x22a   : > { %v1568_v25 = vpop.f32.mrf.mxu2 }
 0x22b   : > { %v1728_v54 = vpop.f32.mrf.mxu3  ;;  %v2036_v12 = vadd.f32 %v3934_v20, %v2000_v33  ;;  %v1646_v36 = vadd.f32 %v1568_v25, %v1490_v48  ;;  %v1415_v11 = vpop.f32.mrf.mxu1 }
 0x22c   : > { %v1491_v52 = vadd.f32 %v1415_v11, %v4467_v32 }
 0x22d   : > { %v2068_v2 = vmax.f32 %v2036_v12, 0.0  ;;  %v1806_v24 = vadd.f32 %v1728_v54, %v1646_v36  ;;  %v4471_v36 = vld [vmem:[#allocation20_spill] sm:$0xff] }
 0x22e   : > { %2414 = vmatmul.msk.f32.gmra.mxu1 %vm388_vm1, %v4463_v26  ;;  %v1890_v34 = vpop.f32.mrf.mxu0 }
 0x22f   : > { %2100 = vst.msk [vmem:[%s3949_s29 + $0x40] sm:$0xff] %vm388_vm1, %v2068_v2  ;;  %v1965_v27 = vadd.f32 %v1887_v49, %v1806_v24  ;;  %2450 = vmatmul.msk.f32.gmra.mxu2 %vm388_vm1, %v2612_v47 }
 0x230   : > { %2486 = vmatmul.msk.f32.gmra.mxu3 %vm388_vm1, %v4466_v28 }
 0x231   : > { %v2001_v23 = vmul.f32 %v3926_v16, %v1965_v27  ;;  %2522 = vmatmul.msk.f32.gmra.mxu0 %vm388_vm1, %v3698_v45 }
 0x232   : > { %v1571_v15 = vpop.f32.mrf.mxu2 }
 0x233   : > { %v1731_v3 = vpop.f32.mrf.mxu3  ;;  %v2037_v41 = vadd.f32 %v3934_v20, %v2001_v23  ;;  %v1647_v14 = vadd.f32 %v1571_v15, %v1491_v52  ;;  %v1418_v55 = vpop.f32.mrf.mxu1  ;;  %v247_v23 = vld [vmem:[%s2776_s23 + $0x198] sm:$0xff]  ;;  %v248_v15 = vld [vmem:[%s2776_s23 + $0x1a0] sm:$0xff] }
 0x234   : > { %v1492_v37 = vadd.f32 %v1418_v55, %v4469_v21  ;;  %v4472_v55 = vld [vmem:[#allocation23_spill] sm:$0xff] }
 0x235   : > { %v2069_v63 = vmax.f32 %v2037_v41, 0.0  ;;  %v1807_v39 = vadd.f32 %v1731_v3, %v1647_v14  ;;  %v1671_v14 = vrot.slane %v248_v15, 1 }
 0x236   : > { %2415 = vmatmul.msk.f32.gmra.mxu1 %vm388_vm1, %v3674_v40  ;;  %v1893_v9 = vpop.f32.mrf.mxu0  ;;  %v1354_v40 = vrot.slane %v4470_v1, 2 }
 0x237   : > { %2101 = vst.msk [vmem:[%s3949_s29 + $0x48] sm:$0xff] %vm388_vm1, %v2069_v63  ;;  %v1966_v26 = vadd.f32 %v1890_v34, %v1807_v39  ;;  %2451 = vmatmul.msk.f32.gmra.mxu2 %vm388_vm1, %v2613_v7  ;;  %v1357_v34 = vrot.slane %v3712_v53, 2  ;;  %v1670_v53 = vrot.slane %v247_v23, 1  ;;  %v1830_v7 = vrot.slane %v248_v15, 2 }
 0x238   : > { %2487 = vmatmul.msk.f32.gmra.mxu3 %vm388_vm1, %v4468_v29  ;;  %v1356_v54 = vsel %vm743_vm2, %v1354_v40, %v1355_v17 }
 0x239   : > { %v2002_v58 = vmul.f32 %v3926_v16, %v1966_v26  ;;  %2523 = vmatmul.msk.f32.gmra.mxu0 %vm388_vm1, %v3720_v19  ;;  %v1358_v3 = vsel %vm743_vm2, %v1355_v17, %v1357_v34  ;;  %v1829_v26 = vrot.slane %v247_v23, 2 }
 0x23a   : > { %v1574_v49 = vpop.f32.mrf.mxu2 }
 0x23b   : > { %v1734_v56 = vpop.f32.mrf.mxu3  ;;  %v2038_v59 = vadd.f32 %v3934_v20, %v2002_v58  ;;  %v1648_v18 = vadd.f32 %v1574_v49, %v1492_v37  ;;  %v1421_v5 = vpop.f32.mrf.mxu1  ;;  %v1831_v17 = vsel %vm743_vm2, %v1829_v26, %v1830_v7 }
 0x23c   : > { %v1493_v11 = vadd.f32 %v1421_v5, %v4471_v36 }
 0x23d   : > { %v2070_v48 = vmax.f32 %v2038_v59, 0.0  ;;  %v1808_v33 = vadd.f32 %v1734_v56, %v1648_v18 }
 0x23e   : > { %2416 = vmatmul.msk.f32.gmra.mxu1 %vm388_vm1, %v3698_v45  ;;  %v1896_v25 = vpop.f32.mrf.mxu0 }
 0x23f   : > { %2102 = vst.msk [vmem:[%s3949_s29 + $0x50] sm:$0xff] %vm388_vm1, %v2070_v48  ;;  %v1967_v12 = vadd.f32 %v1893_v9, %v1808_v33  ;;  %2452 = vmatmul.msk.f32.gmra.mxu2 %vm388_vm1, %v4470_v1  ;;  %v249_v1 = vld [vmem:[%s2776_s23 + $0x1a8] sm:$0x3]  ;;  %s2533_s23 = sshll.u32 %s2726_s19, 8  ;;  %s2125_s19 = scalar_lea.sflag [#allocation3], %s188_s20 }
 0x240   : > { %2488 = vmatmul.msk.f32.gmra.mxu3 %vm388_vm1, %v3703_v35  ;;  %v1673_v56 = vrot.slane %v249_v1, 1  ;;  %v1832_v33 = vrot.slane %v249_v1, 2  ;;  %s2136_s6 = scalar_lea.hbm %s4257_s4, %s2533_s23 }
 0x241   : > { %v2003_v2 = vmul.f32 %v3926_v16, %v1967_v12  ;;  %2524 = vmatmul.msk.f32.gmra.mxu0 %vm388_vm1, %v1356_v54  ;;  %s2139_s8 = sshll.u32 %s2136_s6, 4  ;;  %s2140_s8 = int_to_ptr.hbm [resolvable:$true] %s2139_s8 }
 0x242   : > { %v1577_v45 = vpop.f32.mrf.mxu2  ;;  %v1674_v36 = vsel %vm302_vm0, %v1671_v14, %v1673_v56  ;;  %s2628_s9 = sshra.s32 %s2140_s8, 4  ;;  %s2629_s9 = int_to_ptr.hbm [resolvable:$true] %s2628_s9 }
 0x243   : > { %v1737_v24 = vpop.f32.mrf.mxu3  ;;  %v2039_v27 = vadd.f32 %v3934_v20, %v2003_v2  ;;  %v1649_v47 = vadd.f32 %v1577_v45, %v1493_v11  ;;  %v1424_v28 = vpop.f32.mrf.mxu1  ;;  %s2630_s10 = scalar_lea.hbm %s2629_s9, 256  ;;  %p2635_p0 = scmp.lt.s32.totalorder %s2629_s9, %s4257_s4 }
 0x244   : > { %v1494_v63 = vadd.f32 %v1424_v28, %v4472_v55  ;;  %p2631_p11 = scmp.ne.s32.totalorder %s2629_s9, %s2630_s10  ;;  %p2636_p1 = scmp.lt.s32.totalorder %s2634_s13, %s2630_s10 }
 0x245   : > { %v2071_v32 = vmax.f32 %v2039_v27, 0.0  ;;  %v1809_v52 = vadd.f32 %v1737_v24, %v1649_v47 }
 0x246   : > { %2417 = vmatmul.msk.f32.gmra.mxu1 %vm388_vm1, %v3720_v19  ;;  %v1899_v35 = vpop.f32.mrf.mxu0  ;;  %p2632_p12 = pnand %p2631_p11, %p2743_p5  ;;  %p2637_p2 = por %p2636_p1, %p2635_p0 }
 0x247   : > { %2103 = vst.msk [vmem:[%s3949_s29 + $0x58] sm:$0xff] %vm388_vm1, %v2071_v32  ;;  %v1968_v41 = vadd.f32 %v1896_v25, %v1809_v52  ;;  %2453 = vmatmul.msk.f32.gmra.mxu2 %vm388_vm1, %v3685_v4 }
 0x248   : > { %2489 = vmatmul.msk.f32.gmra.mxu3 %vm388_vm1, %v3725_v38  ;;  %v1672_v38 = vsel %vm302_vm0, %v1670_v53, %v1671_v14  ;;  %p2633_p13 = pneg %p2632_p12 }
 0x249   : > { %v2004_v39 = vmul.f32 %v3926_v16, %v1968_v41  ;;  %2525 = vmatmul.msk.f32.gmra.mxu0 %vm388_vm1, %v1358_v3 }
 0x24a   : > { %v1580_v19 = vpop.f32.mrf.mxu2  ;;  %p2638_p3 = pnand %p2637_p2, %p2633_p13 }
 0x24b   : > { %v1740_v9 = vpop.f32.mrf.mxu3  ;;  %v2040_v29 = vadd.f32 %v3934_v20, %v2004_v39  ;;  %v1650_v4 = vadd.f32 %v1580_v19, %v1494_v63  ;;  %v1427_v21 = vpop.f32.mrf.mxu1 }
 0x24c   : > { %v1495_v59 = vadd.f32 %v1427_v21, %v3727_v22  ;;  %v1833_v22 = vsel %vm743_vm2, %v1830_v7, %v1832_v33 }
 0x24d   : > { %v2072_v37 = vmax.f32 %v2040_v29, 0.0  ;;  %v1810_v58 = vadd.f32 %v1740_v9, %v1650_v4 }
 0x24e   : > { %2418 = vmatmul.msk.f32.gmra.mxu1 %vm388_vm1, %v1356_v54  ;;  %v1902_v40 = vpop.f32.mrf.mxu0 }
 0x24f   : > { %2104 = vst.msk [vmem:[%s3949_s29 + $0x60] sm:$0xff] %vm388_vm1, %v2072_v37  ;;  %v1969_v49 = vadd.f32 %v1899_v35, %v1810_v58  ;;  %2454 = vmatmul.msk.f32.gmra.mxu2 %vm388_vm1, %v247_v23 }
 0x250   : > { %2490 = vmatmul.msk.f32.gmra.mxu3 %vm388_vm1, %v1672_v38 }
 0x251   : > { %v2005_v18 = vmul.f32 %v3926_v16, %v1969_v49  ;;  %2526 = vmatmul.msk.f32.gmra.mxu0 %vm388_vm1, %v1831_v17 }
 0x252   : > { %v1583_v5 = vpop.f32.mrf.mxu2 }
 0x253   : > { %v1743_v48 = vpop.f32.mrf.mxu3  ;;  %v2041_v25 = vadd.f32 %v3934_v20, %v2005_v18  ;;  %v1651_v54 = vadd.f32 %v1583_v5, %v1495_v59  ;;  %v1430_v12 = vpop.f32.mrf.mxu1 }
 0x254   : > { %v1496_v34 = vadd.f32 %v1430_v12, %v3738_v57 }
 0x255   : > { %v2073_v11 = vmax.f32 %v2041_v25, 0.0  ;;  %v1811_v2 = vadd.f32 %v1743_v48, %v1651_v54 }
 0x256   : > { %2419 = vmatmul.msk.f32.gmra.mxu1 %vm388_vm1, %v1358_v3  ;;  %v1905_v45 = vpop.f32.mrf.mxu0 }
 0x257   : > { %2105 = vst.msk [vmem:[%s3949_s29 + $0x68] sm:$0xff] %vm388_vm1, %v2073_v11  ;;  %v1970_v24 = vadd.f32 %v1902_v40, %v1811_v2  ;;  %2455 = vmatmul.msk.f32.gmra.mxu2 %vm388_vm1, %v248_v15 }
 0x258   : > { %2491 = vmatmul.msk.f32.gmra.mxu3 %vm388_vm1, %v1674_v36 }
 0x259   : > { %v2006_v27 = vmul.f32 %v3926_v16, %v1970_v24  ;;  %2527 = vmatmul.msk.f32.gmra.mxu0 %vm388_vm1, %v1833_v22 }
 0x25a   : > { %v1586_v47 = vpop.f32.mrf.mxu2 }
 0x25b   : > { %v1746_v28 = vpop.f32.mrf.mxu3  ;;  %v2042_v32 = vadd.f32 %v3934_v20, %v2006_v27  ;;  %v1652_v52 = vadd.f32 %v1586_v47, %v1496_v34  ;;  %v1433_v23 = vpop.f32.mrf.mxu1 }
 0x25c   : > { %v1497_v53 = vadd.f32 %v1433_v23, %v3749_v46 }
 0x25d   : > { %v2074_v35 = vmax.f32 %v2042_v32, 0.0  ;;  %v1812_v3 = vadd.f32 %v1746_v28, %v1652_v52 }
 0x25e   : > { %v1908_v41 = vpop.f32.mrf.mxu0 }
 0x25f   : > { %2106 = vst.msk [vmem:[%s3949_s29 + $0x70] sm:$0xff] %vm388_vm1, %v2074_v35  ;;  %v1971_v15 = vadd.f32 %v1905_v45, %v1812_v3 }
 0x261   : > { %v2007_v57 = vmul.f32 %v3926_v16, %v1971_v15 }
 0x262   : > { %v1589_v14 = vpop.f32.mrf.mxu2 }
 0x263   : > { %v1749_v55 = vpop.f32.mrf.mxu3  ;;  %v2043_v63 = vadd.f32 %v3934_v20, %v2007_v57  ;;  %v1653_v39 = vadd.f32 %v1589_v14, %v1497_v53  ;;  %v1436_v19 = vpop.f32.mrf.mxu1 }
 0x264   : > { %v1498_v4 = vadd.f32 %v1436_v19, %v3760_v42 }
 0x265   : > { %v2075_v9 = vmax.f32 %v2043_v63, 0.0  ;;  %v1813_v26 = vadd.f32 %v1749_v55, %v1653_v39 }
 0x266   : > { %v1911_v7 = vpop.f32.mrf.mxu0 }
 0x267   : > { %2107 = vst.msk [vmem:[%s3949_s29 + $0x78] sm:$0xff] %vm388_vm1, %v2075_v9  ;;  %v1972_v29 = vadd.f32 %v1908_v41, %v1813_v26 }
 0x269   : > { %v2008_v21 = vmul.f32 %v3926_v16, %v1972_v29 }
 0x26a   : > { %v1592_v46 = vpop.f32.mrf.mxu2 }
 0x26b   : > { %v1752_v38 = vpop.f32.mrf.mxu3  ;;  %v2044_v37 = vadd.f32 %v3934_v20, %v2008_v21  ;;  %v1654_v58 = vadd.f32 %v1592_v46, %v1498_v4  ;;  %v1439_v1 = vpop.f32.mrf.mxu1 }
 0x26c   : > { %v1499_v59 = vadd.f32 %v1439_v1, %v3771_v13 }
 0x26d   : > { %v2076_v40 = vmax.f32 %v2044_v37, 0.0  ;;  %v1814_v17 = vadd.f32 %v1752_v38, %v1654_v58 }
 0x26e   : > { %v1914_v49 = vpop.f32.mrf.mxu0 }
 0x26f   : > { %2108 = vst.msk [vmem:[%s3949_s29 + $0x80] sm:$0xff] %vm388_vm1, %v2076_v40  ;;  %v1973_v56 = vadd.f32 %v1911_v7, %v1814_v17 }
 0x271   : > { %v2009_v18 = vmul.f32 %v3926_v16, %v1973_v56 }
 0x272   : > { %v1595_v42 = vpop.f32.mrf.mxu2 }
 0x273   : > { %v1755_v5 = vpop.f32.mrf.mxu3  ;;  %v2045_v48 = vadd.f32 %v3934_v20, %v2009_v18  ;;  %v1655_v33 = vadd.f32 %v1595_v42, %v1499_v59  ;;  %v1442_v25 = vpop.f32.mrf.mxu1 }
 0x274   : > { %v1500_v2 = vadd.f32 %v1442_v25, %v3782_v8 }
 0x275   : > { %v2077_v54 = vmax.f32 %v2045_v48, 0.0  ;;  %v1815_v12 = vadd.f32 %v1755_v5, %v1655_v33 }
 0x276   : > { %v1917_v36 = vpop.f32.mrf.mxu0 }
 0x277   : > { %2109 = vst.msk [vmem:[%s3949_s29 + $0x88] sm:$0xff] %vm388_vm1, %v2077_v54  ;;  %v1974_v11 = vadd.f32 %v1914_v49, %v1815_v12 }
 0x279   : > { %v2010_v45 = vmul.f32 %v3926_v16, %v1974_v11 }
 0x27a   : > { %v1598_v13 = vpop.f32.mrf.mxu2 }
 0x27b   : > { %v1758_v22 = vpop.f32.mrf.mxu3  ;;  %v2046_v24 = vadd.f32 %v3934_v20, %v2010_v45  ;;  %v1656_v34 = vadd.f32 %v1598_v13, %v1500_v2  ;;  %v1445_v27 = vpop.f32.mrf.mxu1 }
 0x27c   : > { %v1501_v23 = vadd.f32 %v1445_v27, %v3793_v43 }
 0x27d   : > { %v2078_v47 = vmax.f32 %v2046_v24, 0.0  ;;  %v1816_v28 = vadd.f32 %v1758_v22, %v1656_v34 }
 0x27e   : > { %v1920_v32 = vpop.f32.mrf.mxu0 }
 0x27f   : > { %2110 = vst.msk [vmem:[%s3949_s29 + $0x90] sm:$0xff] %vm388_vm1, %v2078_v47  ;;  %v1975_v52 = vadd.f32 %v1917_v36, %v1816_v28 }
 0x281   : > { %v2011_v35 = vmul.f32 %v3926_v16, %v1975_v52 }
 0x282   : > { %v1601_v8 = vpop.f32.mrf.mxu2 }
 0x283   : > { %v1761_v3 = vpop.f32.mrf.mxu3  ;;  %v2047_v41 = vadd.f32 %v3934_v20, %v2011_v35  ;;  %v1657_v15 = vadd.f32 %v1601_v8, %v1501_v23  ;;  %v1448_v53 = vpop.f32.mrf.mxu1 }
 0x284   : > { %v1502_v39 = vadd.f32 %v1448_v53, %v3804_v30 }
 0x285   : > { %v2079_v57 = vmax.f32 %v2047_v41, 0.0  ;;  %v1817_v14 = vadd.f32 %v1761_v3, %v1657_v15 }
 0x286   : > { %v1923_v55 = vpop.f32.mrf.mxu0 }
 0x287   : > { %2111 = vst.msk [vmem:[%s3949_s29 + $0x98] sm:$0xff] %vm388_vm1, %v2079_v57  ;;  %v1976_v63 = vadd.f32 %v1920_v32, %v1817_v14 }
 0x289   : > { %v2012_v19 = vmul.f32 %v3926_v16, %v1976_v63 }
 0x28a   : > { %v1604_v43 = vpop.f32.mrf.mxu2 }
 0x28b   : > { %v1764_v9 = vpop.f32.mrf.mxu3  ;;  %v2048_v26 = vadd.f32 %v3934_v20, %v2012_v19  ;;  %v1658_v7 = vadd.f32 %v1604_v43, %v1502_v39  ;;  %v1451_v29 = vpop.f32.mrf.mxu1 }
 0x28c   : > { %v1503_v37 = vadd.f32 %v1451_v29, %v3815_v61 }
 0x28d   : > { %v2080_v4 = vmax.f32 %v2048_v26, 0.0  ;;  %v1818_v21 = vadd.f32 %v1764_v9, %v1658_v7 }
 0x28e   : > { %v1926_v46 = vpop.f32.mrf.mxu0 }
 0x28f   : > { %2112 = vst.msk [vmem:[%s3949_s29 + $0xa0] sm:$0xff] %vm388_vm1, %v2080_v4  ;;  %v1977_v38 = vadd.f32 %v1923_v55, %v1818_v21 }
 0x291   : > { %v2013_v58 = vmul.f32 %v3926_v16, %v1977_v38 }
 0x292   : > { %v1607_v30 = vpop.f32.mrf.mxu2 }
 0x293   : > { %v1767_v1 = vpop.f32.mrf.mxu3  ;;  %v2049_v40 = vadd.f32 %v3934_v20, %v2013_v58  ;;  %v1659_v17 = vadd.f32 %v1607_v30, %v1503_v37  ;;  %v1454_v49 = vpop.f32.mrf.mxu1 }
 0x294   : > { %v1504_v5 = vadd.f32 %v1454_v49, %v3826_v50 }
 0x295   : > { %v2081_v56 = vmax.f32 %v2049_v40, 0.0  ;;  %v1819_v59 = vadd.f32 %v1767_v1, %v1659_v17 }
 0x296   : > { %v1929_v18 = vpop.f32.mrf.mxu0 }
 0x297   : > { %2113 = vst.msk [vmem:[%s3949_s29 + $0xa8] sm:$0xff] %vm388_vm1, %v2081_v56  ;;  %v1978_v42 = vadd.f32 %v1926_v46, %v1819_v59 }
 0x299   : > { %v2014_v48 = vmul.f32 %v3926_v16, %v1978_v42 }
 0x29a   : > { %v1610_v61 = vpop.f32.mrf.mxu2 }
 0x29b   : > { %v1770_v33 = vpop.f32.mrf.mxu3  ;;  %v2050_v25 = vadd.f32 %v3934_v20, %v2014_v48  ;;  %v1660_v54 = vadd.f32 %v1610_v61, %v1504_v5  ;;  %v1457_v12 = vpop.f32.mrf.mxu1 }
 0x29c   : > { %v1505_v13 = vadd.f32 %v1457_v12, %v3837_v60 }
 0x29d   : > { %v2082_v36 = vmax.f32 %v2050_v25, 0.0  ;;  %v1820_v11 = vadd.f32 %v1770_v33, %v1660_v54 }
 0x29e   : > { %v1932_v2 = vpop.f32.mrf.mxu0 }
 0x29f   : > { %2114 = vst.msk [vmem:[%s3949_s29 + $0xb0] sm:$0xff] %vm388_vm1, %v2082_v36  ;;  %v1979_v45 = vadd.f32 %v1929_v18, %v1820_v11 }
 0x2a1   : > { %v2015_v22 = vmul.f32 %v3926_v16, %v1979_v45 }
 0x2a2   : > { %v1613_v50 = vpop.f32.mrf.mxu2 }
 0x2a3   : > { %v1773_v24 = vpop.f32.mrf.mxu3  ;;  %v2051_v34 = vadd.f32 %v3934_v20, %v2015_v22  ;;  %v1661_v27 = vadd.f32 %v1613_v50, %v1505_v13  ;;  %v1460_v47 = vpop.f32.mrf.mxu1 }
 0x2a4   : > { %v1506_v35 = vadd.f32 %v1460_v47, %v3848_v62 }
 0x2a5   : > { %v2083_v28 = vmax.f32 %v2051_v34, 0.0  ;;  %v1821_v32 = vadd.f32 %v1773_v24, %v1661_v27 }
 0x2a6   : > { %v1935_v52 = vpop.f32.mrf.mxu0 }
 0x2a7   : > { %2115 = vst.msk [vmem:[%s3949_s29 + $0xb8] sm:$0xff] %vm388_vm1, %v2083_v28  ;;  %v1980_v23 = vadd.f32 %v1932_v2, %v1821_v32 }
 0x2a9   : > { %v2016_v8 = vmul.f32 %v3926_v16, %v1980_v23 }
 0x2aa   : > { %v1616_v60 = vpop.f32.mrf.mxu2 }
 0x2ab   : > { %v1776_v3 = vpop.f32.mrf.mxu3  ;;  %v2052_v41 = vadd.f32 %v3934_v20, %v2016_v8  ;;  %v1662_v15 = vadd.f32 %v1616_v60, %v1506_v35  ;;  %v1463_v53 = vpop.f32.mrf.mxu1 }
 0x2ac   : > { %v1507_v39 = vadd.f32 %v1463_v53, %v3859_v0 }
 0x2ad   : > { %v2084_v57 = vmax.f32 %v2052_v41, 0.0  ;;  %v1822_v14 = vadd.f32 %v1776_v3, %v1662_v15 }
 0x2ae   : > { %v1938_v55 = vpop.f32.mrf.mxu0 }
 0x2af   : > { %2116 = vst.msk [vmem:[%s3949_s29 + $0xc0] sm:$0xff] %vm388_vm1, %v2084_v57  ;;  %v1981_v63 = vadd.f32 %v1935_v52, %v1822_v14 }
 0x2b1   : > { %v2017_v19 = vmul.f32 %v3926_v16, %v1981_v63 }
 0x2b2   : > { %v1619_v62 = vpop.f32.mrf.mxu2 }
 0x2b3   : > { %v1779_v43 = vpop.f32.mrf.mxu3  ;;  %v2053_v9 = vadd.f32 %v3934_v20, %v2017_v19  ;;  %v1663_v26 = vadd.f32 %v1619_v62, %v1507_v39  ;;  %v1466_v7 = vpop.f32.mrf.mxu1 }
 0x2b4   : > { %v1508_v38 = vadd.f32 %v1466_v7, %v3870_v31 }
 0x2b5   : > { %v2085_v29 = vmax.f32 %v2053_v9, 0.0  ;;  %v1823_v4 = vadd.f32 %v1779_v43, %v1663_v26 }
 0x2b6   : > { %v1941_v21 = vpop.f32.mrf.mxu0 }
 0x2b7   : > { %2117 = vst.msk [vmem:[%s3949_s29 + $0xc8] sm:$0xff] %vm388_vm1, %v2085_v29  ;;  %v1982_v46 = vadd.f32 %v1938_v55, %v1823_v4 }
 0x2b9   : > { %v2018_v37 = vmul.f32 %v3926_v16, %v1982_v46 }
 0x2ba   : > { %v1622_v0 = vpop.f32.mrf.mxu2 }
 0x2bb   : > { %v1782_v58 = vpop.f32.mrf.mxu3  ;;  %v2054_v30 = vadd.f32 %v3934_v20, %v2018_v37  ;;  %v1664_v1 = vadd.f32 %v1622_v0, %v1508_v38  ;;  %v1469_v40 = vpop.f32.mrf.mxu1 }
 0x2bc   : > { %v1509_v18 = vadd.f32 %v1469_v40, %v3881_v44 }
 0x2bd   : > { %v2086_v17 = vmax.f32 %v2054_v30, 0.0  ;;  %v1824_v49 = vadd.f32 %v1782_v58, %v1664_v1 }
 0x2be   : > { %v1944_v56 = vpop.f32.mrf.mxu0 }
 0x2bf   : > { %2118 = vst.msk [vmem:[%s3949_s29 + $0xd0] sm:$0xff] %vm388_vm1, %v2086_v17  ;;  %v1983_v59 = vadd.f32 %v1941_v21, %v1824_v49 }
 0x2c1   : > { %v2019_v42 = vmul.f32 %v3926_v16, %v1983_v59 }
 0x2c2   : > { %v1625_v31 = vpop.f32.mrf.mxu2 }
 0x2c3   : > { %v1785_v5 = vpop.f32.mrf.mxu3  ;;  %v2055_v48 = vadd.f32 %v3934_v20, %v2019_v42  ;;  %v1665_v61 = vadd.f32 %v1625_v31, %v1509_v18  ;;  %v1472_v33 = vpop.f32.mrf.mxu1 }
 0x2c4   : > { %v1510_v11 = vadd.f32 %v1472_v33, %v3892_v6 }
 0x2c5   : > { %v2087_v25 = vmax.f32 %v2055_v48, 0.0  ;;  %v1825_v54 = vadd.f32 %v1785_v5, %v1665_v61 }
 0x2c6   : > { %v1947_v36 = vpop.f32.mrf.mxu0 }
 0x2c7   : > { %2119 = vst.msk [vmem:[%s3949_s29 + $0xd8] sm:$0xff] %vm388_vm1, %v2087_v25  ;;  %v1984_v12 = vadd.f32 %v1944_v56, %v1825_v54 }
 0x2c9   : > { %v2020_v2 = vmul.f32 %v3926_v16, %v1984_v12 }
 0x2ca   : > { %v1628_v44 = vpop.f32.mrf.mxu2 }
 0x2cb   : > { %v1788_v45 = vpop.f32.mrf.mxu3  ;;  %v2056_v13 = vadd.f32 %v3934_v20, %v2020_v2  ;;  %v1666_v22 = vadd.f32 %v1628_v44, %v1510_v11  ;;  %v1475_v50 = vpop.f32.mrf.mxu1 }
 0x2cc   : > { %v1511_v47 = vadd.f32 %v1475_v50, %v3903_v10 }
 0x2cd   : > { %v2088_v24 = vmax.f32 %v2056_v13, 0.0  ;;  %v1826_v34 = vadd.f32 %v1788_v45, %v1666_v22 }
 0x2ce   : > { %v1950_v32 = vpop.f32.mrf.mxu0 }
 0x2cf   : > { %2120 = vst.msk [vmem:[%s3949_s29 + $0xe0] sm:$0xff] %vm388_vm1, %v2088_v24  ;;  %v1985_v27 = vadd.f32 %v1947_v36, %v1826_v34 }
 0x2d1   : > { %v2021_v28 = vmul.f32 %v3926_v16, %v1985_v27 }
 0x2d2   : > { %v1631_v6 = vpop.f32.mrf.mxu2 }
 0x2d3   : > { %v1791_v52 = vpop.f32.mrf.mxu3  ;;  %v2057_v23 = vadd.f32 %v3934_v20, %v2021_v28  ;;  %v1667_v35 = vadd.f32 %v1631_v6, %v1511_v47  ;;  %v1478_v3 = vpop.f32.mrf.mxu1 }
 0x2d4   : > { %v1512_v15 = vadd.f32 %v1478_v3, %v3914_v51 }
 0x2d5   : > { %v2089_v8 = vmax.f32 %v2057_v23, 0.0  ;;  %v1827_v60 = vadd.f32 %v1791_v52, %v1667_v35 }
 0x2d6   : > { %v1953_v63 = vpop.f32.mrf.mxu0 }
 0x2d7   : > { %2121 = vst.msk [vmem:[%s3949_s29 + $0xe8] sm:$0xff] %vm388_vm1, %v2089_v8  ;;  %v1986_v41 = vadd.f32 %v1950_v32, %v1827_v60 }
 0x2d9   : > { %v2022_v10 = vmul.f32 %v3926_v16, %v1986_v41 }
 0x2da   : > { %v1634_v53 = vpop.f32.mrf.mxu2 }
 0x2db   : > { %v1794_v57 = vpop.f32.mrf.mxu3  ;;  %v2058_v14 = vadd.f32 %v3934_v20, %v2022_v10  ;;  %v1668_v55 = vadd.f32 %v1634_v53, %v1512_v15 }
 0x2dd   : > { %v2090_v39 = vmax.f32 %v2058_v14, 0.0  ;;  %v1828_v19 = vadd.f32 %v1794_v57, %v1668_v55 }
 0x2df   : > { %2122 = vst.msk [vmem:[%s3949_s29 + $0xf0] sm:$0xff] %vm388_vm1, %v2090_v39  ;;  %v1987_v51 = vadd.f32 %v1953_v63, %v1828_v19 }
 0x2e1   : > { %v2023_v62 = vmul.f32 %v3926_v16, %v1987_v51 }
 0x2e3   : > { %v2059_v43 = vadd.f32 %v3934_v20, %v2023_v62 }
 0x2e5   : > { %v2091_v9 = vmax.f32 %v2059_v43, 0.0 }
 0x2e7   : > { %2123 = vst.msk [vmem:[%s3949_s29 + $0xf8] sm:$0xff] %vm388_vm1, %v2091_v9 }
 0x2e8   : > { %2641 = shalt.err (!%p2638_p3)
}
 0x2e9   : > { %s2678_s20 = smov 128   ;;  %s2679_s27 = smov 8  }
 0x2ea   : > { %2547 = dma.vmem_to_hbm [thread:$0]  (%p2743_p5), %s2138_s7, 4096, %s2140_s8, %s2125_s19, %s2678_s20, %s2678_s20, %s2679_s27  }
 0x2eb PF: > { %p2553_p4 = scmp.ge.s32.totalorder %s2676_s18, 2  ;;  %s2154_s28 = sand.u32 1, %s2664_s15  }
 0x2ec   : > { %s2155_s29 = scalar_lea.sflag [#allocation3], %s2154_s28 }
 0x2ed   : > { %p2550_p7 = pnand %p2553_p4, %p2747_p6 }
 0x2ef   : > { %p2551_p8 = pneg %p2550_p7 }
 0x2f1   : > { %2659 = dma.done.wait (%p2551_p8), %s2155_s29, 4096  }
 0x2f2   : > { %2661 = vsyncadd (%p2551_p8), %s2155_s29, 4294963200  ;;  %p14_p9 = scmp.ge.s32.totalorder %s2730_s21, 4   ;;  %s4473_s15 = smov %s2668_s16 }
 0x2f3   : > { %s4474_s16 = smov %s2672_s17  ;;  %s4475_s17 = smov %s2741_s24 }
 0x2f4   : > { %s4476_s18 = smov %s2730_s21  ;;  %16 = sbr.rel (!%p14_p9) target bundleno = 3 (0x3), region = 79 }
 0x2f9   :  { %2161 = vsyncpa [#allocation3], 1 }
 0x2fa   :  { %2163 = vsyncpa [#allocation3 + $0x1], 1 }

// kernel: conv_block_forward.2
= control target key start
LH: loop header
LB: loop body
LE: loop exit
PB: predicated region body
PF: predicated region fallthrough
CT: control target
= control target key end

     0   :  { %s2570_s15 = smov 0   ;;  %s3980_s0 = inlined_call_operand.vmem [shape: f32[2,18,18,4], index: 0, kind: input, shape index: {}]   ;;  %s3981_s1 = inlined_call_operand.vmem [shape: f32[9,4,32], index: 1, kind: input, shape index: {}]   ;;  %s3982_s2 = inlined_call_operand.vmem [shape: f32[1,32], index: 2, kind: input, shape index: {}]   ;;  %s3983_s3 = inlined_call_operand.vmem [shape: f32[1,32], index: 3, kind: input, shape index: {}]   ;;  %s3984_s4 = inlined_call_operand.vmem [shape: f32[2,16,16,32], index: 4, kind: output, shape index: {}]  }
   0x1 LB: > { %s2183_s16 = sadd.s32 4294967295, %s2543_s15   ;;  %p2187_p0 = scmp.ge.s32.totalorder %s2543_s15, 1  ;;  %s2543_s15 = sphi %s2570_s15, %s14_s15  }
   0x2   : > { %p162_p1 = scmp.lt.s32.totalorder %s2543_s15, 3 }
   0x4   : > { %p163_p2 = pnand %p2187_p0, %p162_p1 }
   0x6   : > { %166 = sbr.rel (%p163_p2) target bundleno = 735 (0x2df), region = 36 }
   0xb   : > { %v2191_v0 = vld [vmem:[%s3981_s1 + $0x4] sm:$0xf]  ;;  %vm449_vm0 = vcmask 1043456   ;;  %p188_p3 = scmp.lt.s32.totalorder %s2183_s16, 1  ;;  %v2258_v1 = vld [vmem:[%s3981_s1 + $0x8] sm:$0xf] }
   0xc   : > { %2499 = vmatpush.msk.msra.mxu1 %vm449_vm0, %v2191_v0  ;;  %2500 = vmatpush.msk.msra.mxu2 %vm449_vm0, %v2191_v0  ;;  %v2292_v2 = vld [vmem:[%s3981_s1 + $0xc] sm:$0xf]  ;;  %v252_v3 = vld [vmem:[%s3981_s1] sm:$0xf]  ;;  %v2326_v4 = vld [vmem:[%s3981_s1 + $0x10] sm:$0xf] }
   0xd   : > { %s4199_s16 = smov (!%p188_p3, %s2183_s16), 1  ;;  %2501 = vmatpush.msk.msra.mxu3 %vm449_vm0, %v2191_v0  ;;  %2192 = vmatpush.msk.msra.mxu0 %vm449_vm0, %v2191_v0  ;;  %vm301_vm1 = vcmask 1046528   ;;  %vm384_vm2 = vcmask 31744   ;;  %vm746_vm3 = vcmask 1045504   ;;  %vm2095_vm4 = vcmask 261120  }
   0xe   : > { %2259 = vmatpush.msk.msrb.mxu2 %vm449_vm0, %v2258_v1  ;;  %2225 = vmatpush.msk.msrb.mxu1 %vm449_vm0, %v252_v3  ;;  %s2502_s27 = smul.u32 432, %s4199_s16  ;;  %s2498_s19 = sshll.u32 %s4199_s16, 8 }
   0xf   : > { %2293 = vmatpush.msk.msrb.mxu3 %vm449_vm0, %v2292_v2  ;;  %2327 = vmatpush.msk.msrb.mxu0 %vm449_vm0, %v2326_v4  ;;  %s3705_s22 = scalar_lea.vmem %s3984_s4, %s2498_s19 }
  0x10   : > { %s2607_s30 = scalar_lea.vmem %s3980_s0, %s2502_s27 }
  0x11   : > { %v2610_v5 = vld [vmem:[%s2607_s30 + $0x60] sm:$0xff]  ;;  %v2613_v6 = vld [vmem:[%s2607_s30 + $0x68] sm:$0xff]  ;;  %v2634_v17 = vld [vmem:[%s2607_s30 + $0x70] sm:$0x3] }
  0x12   : > { %v2616_v7 = vld [vmem:[%s2607_s30 + $0xc0] sm:$0xff]  ;;  %v322_v8 = vrot.slane %v2610_v5, 1  ;;  %v323_v9 = vrot.slane %v2613_v6, 1  ;;  %v2621_v10 = vld [vmem:[%s2607_s30 + $0xc8] sm:$0xff]  ;;  %v2643_v20 = vld [vmem:[%s2607_s30 + $0xd0] sm:$0x3] }
  0x13   : > { %v342_v11 = vrot.slane %v2616_v7, 1  ;;  %v2625_v12 = vld [vmem:[%s2607_s30 + $0x120] sm:$0xff]  ;;  %v2628_v13 = vld [vmem:[%s2607_s30 + $0x128] sm:$0xff]  ;;  %v343_v14 = vrot.slane %v2621_v10, 1  ;;  %v2659_v26 = vld [vmem:[%s2607_s30 + $0x130] sm:$0x3] }
  0x14   : > { %4060 = vst [vmem:[#allocation2_spill] sm:$0xff] %v2625_v12  ;;  %v362_v15 = vrot.slane %v2625_v12, 1  ;;  %v363_v16 = vrot.slane %v2628_v13, 1  ;;  %v2637_v18 = vld [vmem:[%s2607_s30] sm:$0xff]  ;;  %v2640_v19 = vsel %vm301_vm1, %v322_v8, %v323_v9  ;;  %v2646_v21 = vld [vmem:[%s2607_s30 + $0x8] sm:$0xff]  ;;  %v325_v27 = vrot.slane %v2634_v17, 1 }
  0x15   : > { %4061 = vst [vmem:[#allocation3_spill] sm:$0xff] %v2628_v13  ;;  %v302_v22 = vrot.slane %v2637_v18, 1  ;;  %2201 = vmatmul.msk.f32.vlgmr.msra.gmra.mxu1 %vm384_vm2, %v2640_v19  ;;  %v2652_v23 = vsel %vm301_vm1, %v342_v11, %v343_v14  ;;  %v303_v25 = vrot.slane %v2646_v21, 1  ;;  %v2667_v28 = vld [vmem:[%s2607_s30 + $0x10] sm:$0x3]  ;;  %v345_v29 = vrot.slane %v2643_v20, 1 }
  0x16   : > { %4062 = vst [vmem:[#allocation4_spill] sm:$0xff] %v2652_v23  ;;  %v2655_v24 = vsel %vm301_vm1, %v362_v15, %v363_v16  ;;  %2209 = vmatmul.msk.f32.vlgmr.msra.gmra.mxu2 %vm384_vm2, %v2652_v23  ;;  %v365_v31 = vrot.slane %v2659_v26, 1  ;;  %v305_v32 = vrot.slane %v2667_v28, 1  ;;  %v2675_v33 = vsel %vm301_vm1, %v323_v9, %v325_v27  ;;  %v2684_v36 = vld [vmem:[%s2607_s30 + $0x78] sm:$0xff]  ;;  %v2687_v37 = vld [vmem:[%s2607_s30 + $0x80] sm:$0xff]  ;;  %v2769_v4 = vld [vmem:[%s2607_s30 + $0x90] sm:$0xff] }
  0x17   : > { %4063 = vst [vmem:[#allocation5_spill] sm:$0xff] %v2655_v24  ;;  %2217 = vmatmul.msk.f32.vlgmr.msra.gmra.mxu3 %vm384_vm2, %v2655_v24  ;;  %v304_v30 = vsel %vm301_vm1, %v302_v22, %v303_v25  ;;  %v2678_v34 = vsel %vm301_vm1, %v343_v14, %v345_v29  ;;  %v2690_v38 = vld [vmem:[%s2607_s30 + $0xd8] sm:$0xff]  ;;  %v2693_v39 = vld [vmem:[%s2607_s30 + $0xe0] sm:$0xff]  ;;  %v327_v43 = vrot.slane %v2684_v36, 1  ;;  %v328_v44 = vrot.slane %v2687_v37, 1  ;;  %v2775_v9 = vld [vmem:[%s2607_s30 + $0xf0] sm:$0xff] }
  0x18   : > { %4064 = vst [vmem:[#allocation6_spill] sm:$0xff] %v2659_v26  ;;  %2193 = vmatmul.msk.f32.vlgmr.msra.gmra.mxu0 %vm384_vm2, %v304_v30  ;;  %v2681_v35 = vsel %vm301_vm1, %v363_v16, %v365_v31  ;;  %v2696_v40 = vld [vmem:[%s2607_s30 + $0x138] sm:$0xff]  ;;  %v2699_v41 = vld [vmem:[%s2607_s30 + $0x140] sm:$0xff]  ;;  %v306_v42 = vsel %vm301_vm1, %v303_v25, %v305_v32  ;;  %v347_v47 = vrot.slane %v2690_v38, 1  ;;  %v348_v48 = vrot.slane %v2693_v39, 1  ;;  %v2781_v14 = vld [vmem:[%s2607_s30 + $0x150] sm:$0xff] }
  0x19   : > { %4065 = vst [vmem:[#allocation7_spill] sm:$0xff] %v2675_v33  ;;  %v2711_v45 = vld [vmem:[%s2607_s30 + $0x18] sm:$0xff]  ;;  %v2714_v46 = vld [vmem:[%s2607_s30 + $0x20] sm:$0xff]  ;;  %v367_v49 = vrot.slane %v2696_v40, 1  ;;  %v368_v50 = vrot.slane %v2699_v41, 1  ;;  %v2724_v53 = vsel %vm301_vm1, %v327_v43, %v328_v44  ;;  %v332_v22 = vrot.slane %v2769_v4, 1 }
  0x1a   : > { %4066 = vst [vmem:[#allocation8_spill] sm:$0xff] %v2678_v34  ;;  %v307_v51 = vrot.slane %v2711_v45, 1  ;;  %v308_v52 = vrot.slane %v2714_v46, 1  ;;  %v2727_v54 = vsel %vm301_vm1, %v347_v47, %v348_v48  ;;  %v2733_v56 = vld [vmem:[%s2607_s30 + $0x88] sm:$0x3]  ;;  %v2772_v8 = vld [vmem:[%s2607_s30 + $0x98] sm:$0xff] }
  0x1b   : > { %4067 = vst [vmem:[#allocation9_spill] sm:$0xff] %v2681_v35  ;;  %v2730_v55 = vsel %vm301_vm1, %v367_v49, %v368_v50  ;;  %v2736_v57 = vld [vmem:[%s2607_s30 + $0xe8] sm:$0x3]  ;;  %v330_v60 = vrot.slane %v2733_v56, 1  ;;  %v2778_v11 = vld [vmem:[%s2607_s30 + $0xf8] sm:$0xff]  ;;  %v333_v25 = vrot.slane %v2772_v8, 1 }
  0x1c   : > { %4068 = vst [vmem:[#allocation10_spill] sm:$0xff] %v2696_v40  ;;  %v2739_v58 = vld [vmem:[%s2607_s30 + $0x148] sm:$0x3]  ;;  %v2744_v59 = vsel %vm301_vm1, %v307_v51, %v308_v52  ;;  %v350_v62 = vrot.slane %v2736_v57, 1  ;;  %v2784_v15 = vld [vmem:[%s2607_s30 + $0x158] sm:$0xff]  ;;  %v2798_v27 = vld [vmem:[%s2607_s30 + $0x30] sm:$0xff] }
  0x1d   : > { %4069 = vst [vmem:[#allocation11_spill] sm:$0xff] %v2699_v41  ;;  %2202 = vmatmul.msk.f32.gmra.mxu1 %vm384_vm2, %v2675_v33  ;;  %v2752_v61 = vld [vmem:[%s2607_s30 + $0x28] sm:$0x3]  ;;  %v370_v63 = vrot.slane %v2739_v58, 1  ;;  %v2760_v1 = vsel %vm301_vm1, %v328_v44, %v330_v60  ;;  %v2801_v29 = vld [vmem:[%s2607_s30 + $0x38] sm:$0xff]  ;;  %v352_v30 = vrot.slane %v2775_v9, 1  ;;  %v2812_v47 = vsel %vm301_vm1, %v332_v22, %v333_v25 }
  0x1e   : > { %2210 = vmatmul.msk.f32.gmra.mxu2 %vm384_vm2, %v2678_v34  ;;  %4070 = vst [vmem:[#allocation12_spill] sm:$0xff] %v2724_v53  ;;  %v310_v0 = vrot.slane %v2752_v61, 1  ;;  %v2763_v2 = vsel %vm301_vm1, %v348_v48, %v350_v62  ;;  %v353_v31 = vrot.slane %v2778_v11, 1  ;;  %v372_v32 = vrot.slane %v2781_v14, 1  ;;  %v2815_v48 = vld [vmem:[%s2607_s30 + $0xa0] sm:$0x3] }
  0x1f   : > { %2218 = vmatmul.msk.f32.gmra.mxu3 %vm384_vm2, %v2681_v35  ;;  %4071 = vst [vmem:[#allocation13_spill] sm:$0xff] %v2730_v55  ;;  %v2766_v3 = vsel %vm301_vm1, %v368_v50, %v370_v63  ;;  %v312_v43 = vrot.slane %v2798_v27, 1  ;;  %v313_v44 = vrot.slane %v2801_v29, 1  ;;  %v2824_v51 = vld [vmem:[%s2607_s30 + $0x100] sm:$0x3]  ;;  %v335_v60 = vrot.slane %v2815_v48, 1 }
  0x20   : > { %2194 = vmatmul.msk.f32.gmra.mxu0 %vm384_vm2, %v306_v42  ;;  %4072 = vst [vmem:[#allocation14_spill] sm:$0xff] %v2739_v58  ;;  %v2789_v16 = vsel %vm301_vm1, %v308_v52, %v310_v0  ;;  %v373_v42 = vrot.slane %v2784_v15, 1  ;;  %v2818_v49 = vsel %vm301_vm1, %v352_v30, %v353_v31  ;;  %v2827_v52 = vld [vmem:[%s2607_s30 + $0x160] sm:$0x3]  ;;  %v2394_v0 = vld [vmem:[%s3981_s1 + $0x18] sm:$0xf] }
  0x21   : > { %4073 = vst [vmem:[#allocation15_spill] sm:$0xff] %v2760_v1  ;;  %v2833_v62 = vsel %vm301_vm1, %v312_v43, %v313_v44  ;;  %v2836_v63 = vld [vmem:[%s2607_s30 + $0x40] sm:$0x3]  ;;  %v2428_v22 = vld [vmem:[%s3981_s1 + $0x1c] sm:$0xf]  ;;  %v375_v43 = vrot.slane %v2827_v52, 1  ;;  %2395 = vmatpush.msk.msra.mxu2 %vm449_vm0, %v2394_v0 }
  0x22   : > { %4074 = vst [vmem:[#allocation16_spill] sm:$0xff] %v2766_v3  ;;  %v2821_v50 = vsel %vm301_vm1, %v372_v32, %v373_v42  ;;  %v2360_v30 = vld [vmem:[%s3981_s1 + $0x14] sm:$0xf]  ;;  %v355_v32 = vrot.slane %v2824_v51, 1  ;;  %2429 = vmatpush.msk.msra.mxu3 %vm449_vm0, %v2428_v22  ;;  %v2869_v0 = vld [vmem:[%s2607_s30 + $0xa8] sm:$0xff] }
  0x23   : > { %4075 = vst [vmem:[#allocation17_spill] sm:$0xff] %v2781_v14  ;;  %2361 = vmatpush.msk.msra.mxu1 %vm449_vm0, %v2360_v30  ;;  %v2872_v22 = vld [vmem:[%s2607_s30 + $0xb0] sm:$0xff]  ;;  %v2875_v14 = vld [vmem:[%s2607_s30 + $0x108] sm:$0xff]  ;;  %v2928_v24 = vld [vmem:[%s2607_s30 + $0x118] sm:$0x3] }
  0x24   : > { %4076 = vst [vmem:[#allocation18_spill] sm:$0xff] %v2784_v15  ;;  %v315_v15 = vrot.slane %v2836_v63, 1  ;;  %v2863_v58 = vsel %vm301_vm1, %v353_v31, %v355_v32  ;;  %v2878_v30 = vld [vmem:[%s2607_s30 + $0x110] sm:$0xff]  ;;  %v337_v31 = vrot.slane %v2869_v0, 1 }
  0x25   : > { %2203 = vmatmul.msk.f32.gmra.mxu1 %vm384_vm2, %v2724_v53  ;;  %4077 = vst [vmem:[#allocation19_spill] sm:$0xff] %v2812_v47  ;;  %v2884_v41 = vld [vmem:[%s2607_s30 + $0x170] sm:$0xff] }
  0x26   : > { %2211 = vmatmul.msk.f32.gmra.mxu2 %vm384_vm2, %v2727_v54  ;;  %4078 = vst [vmem:[#allocation20_spill] sm:$0xff] %v2821_v50  ;;  %v2901_v32 = vld [vmem:[%s2607_s30 + $0x50] sm:$0xff] }
  0x27   : > { %2219 = vmatmul.msk.f32.gmra.mxu3 %vm384_vm2, %v2730_v55  ;;  %4079 = vst [vmem:[#allocation21_spill] sm:$0xff] %v2824_v51  ;;  %v378_v55 = vrot.slane %v2884_v41, 1  ;;  %v318_v40 = vrot.slane %v2901_v32, 1 }
  0x28   : > { %2195 = vmatmul.msk.f32.gmra.mxu0 %vm384_vm2, %v2744_v59  ;;  %4080 = vst [vmem:[#allocation22_spill] sm:$0xff] %v2827_v52  ;;  %v2866_v52 = vsel %vm301_vm1, %v373_v42, %v375_v43  ;;  %v338_v42 = vrot.slane %v2872_v22, 1  ;;  %v358_v43 = vrot.slane %v2878_v30, 1 }
  0x29   : > { %4082 = vst [vmem:[#allocation24_spill] sm:$0xff] %v2866_v52 }
  0x2a   : > { %4083 = vst [vmem:[#allocation25_spill] sm:$0xff] %v2878_v30  ;;  %v2916_v35 = vsel %vm301_vm1, %v337_v31, %v338_v42  ;;  %v2944_v31 = vld [vmem:[%s2607_s30 + $0x58] sm:$0x3] }
  0x2b   : > { %4085 = vst [vmem:[#allocation27_spill] sm:$0xff] %v2884_v41  ;;  %v2925_v41 = vld [vmem:[%s2607_s30 + $0xb8] sm:$0x3] }
  0x2c   : > { %4086 = vst [vmem:[#allocation28_spill] sm:$0xff] %v2916_v35 }
  0x2d   : > { %2204 = vmatmul.msk.f32.gmra.mxu1 %vm384_vm2, %v2760_v1  ;;  %4089 = vst [vmem:[#allocation31_spill] sm:$0xff] %v2928_v24 }
  0x2e   : > { %2212 = vmatmul.msk.f32.gmra.mxu2 %vm384_vm2, %v2763_v2 }
  0x2f   : > { %2220 = vmatmul.msk.f32.gmra.mxu3 %vm384_vm2, %v2766_v3  ;;  %v2881_v3 = vld [vmem:[%s2607_s30 + $0x168] sm:$0xff] }
  0x30   : > { %2196 = vmatmul.msk.f32.gmra.mxu0 %vm384_vm2, %v2789_v16  ;;  %4084 = vst [vmem:[#allocation26_spill] sm:$0xff] %v2881_v3 }
  0x35   : > { %2205 = vmatmul.msk.f32.gmra.mxu1 %vm384_vm2, %v2812_v47 }
  0x36   : > { %2213 = vmatmul.msk.f32.gmra.mxu2 %vm384_vm2, %v2818_v49 }
  0x37   : > { %2221 = vmatmul.msk.f32.gmra.mxu3 %vm384_vm2, %v2821_v50  ;;  %v2860_v50 = vsel %vm301_vm1, %v333_v25, %v335_v60  ;;  %v2889_v25 = vsel %vm301_vm1, %v313_v44, %v315_v15  ;;  %v2898_v60 = vld [vmem:[%s2607_s30 + $0x48] sm:$0xff]  ;;  %v2462_v15 = vld [vmem:[%s3981_s1 + $0x20] sm:$0xf]  ;;  %v357_v44 = vrot.slane %v2875_v14, 1 }
  0x38   : > { %2197 = vmatmul.msk.f32.gmra.mxu0 %vm384_vm2, %v2833_v62  ;;  %4081 = vst [vmem:[#allocation23_spill] sm:$0xff] %v2860_v50  ;;  %v317_v26 = vrot.slane %v2898_v60, 1 }
  0x39   : > { %2463 = vmatpush.msk.msra.mxu0 %vm449_vm0, %v2462_v15  ;;  %v2919_v13 = vsel %vm301_vm1, %v357_v44, %v358_v43  ;;  %v2931_v15 = vld [vmem:[%s2607_s30 + $0x178] sm:$0x3]  ;;  %v360_v44 = vrot.slane %v2928_v24, 1 }
  0x3a   : > { %4087 = vst [vmem:[#allocation29_spill] sm:$0xff] %v2919_v13  ;;  %v2936_v12 = vsel %vm301_vm1, %v317_v26, %v318_v40  ;;  %v380_v30 = vrot.slane %v2931_v15, 1  ;;  %v320_v26 = vrot.slane %v2944_v31, 1 }
  0x3c   : > { %v2963_v24 = vsel %vm301_vm1, %v318_v40, %v320_v26  ;;  %v750_v40 = vrot.slane %v2667_v28, 2  ;;  %v762_v26 = vrot.slane %v2898_v60, 2 }
  0x3d   : > { %2206 = vmatmul.msk.f32.gmra.mxu1 %vm384_vm2, %v2860_v50 }
  0x3e   : > { %2214 = vmatmul.msk.f32.gmra.mxu2 %vm384_vm2, %v2863_v58 }
  0x3f   : > { %2222 = vmatmul.msk.f32.gmra.mxu3 %vm384_vm2, %v2866_v52  ;;  %v377_v52 = vrot.slane %v2881_v3, 1 }
  0x40   : > { %2198 = vmatmul.msk.f32.gmra.mxu0 %vm384_vm2, %v2889_v25 }
  0x41   : > { %v2922_v3 = vsel %vm301_vm1, %v377_v52, %v378_v55  ;;  %v340_v52 = vrot.slane %v2925_v41, 1 }
  0x42   : > { %4088 = vst [vmem:[#allocation30_spill] sm:$0xff] %v2922_v3 }
  0x43   : > { %v2952_v51 = vsel %vm301_vm1, %v338_v42, %v340_v52  ;;  %v747_v42 = vrot.slane %v2637_v18, 2  ;;  %v753_v52 = vrot.slane %v2714_v46, 2 }
  0x44   : > { %4090 = vst [vmem:[#allocation32_spill] sm:$0xff] %v2952_v51 }
  0x45   : > { %2207 = vmatmul.msk.f32.gmra.mxu1 %vm384_vm2, %v2916_v35 }
  0x46   : > { %2215 = vmatmul.msk.f32.gmra.mxu2 %vm384_vm2, %v2919_v13  ;;  %v2955_v13 = vsel %vm301_vm1, %v358_v43, %v360_v44  ;;  %v748_v43 = vrot.slane %v2646_v21, 2 }
  0x47   : > { %2223 = vmatmul.msk.f32.gmra.mxu3 %vm384_vm2, %v2922_v3  ;;  %v2958_v3 = vsel %vm301_vm1, %v378_v55, %v380_v30 }
  0x48   : > { %2199 = vmatmul.msk.f32.gmra.mxu0 %vm384_vm2, %v2936_v12  ;;  %4091 = vst [vmem:[#allocation33_spill] sm:$0xff] %v2958_v3  ;;  %v749_v55 = vsel %vm746_vm3, %v747_v42, %v748_v43  ;;  %v751_v30 = vsel %vm746_vm3, %v748_v43, %v750_v40  ;;  %v763_v42 = vrot.slane %v2901_v32, 2  ;;  %v765_v43 = vrot.slane %v2944_v31, 2 }
  0x49   : > { %v767_v40 = vrot.slane %v2610_v5, 2 }
  0x4d   : > { %2208 = vmatmul.msk.f32.gmra.mxu1 %vm384_vm2, %v2952_v51 }
  0x4e   : > { %2216 = vmatmul.msk.f32.gmra.mxu2 %vm384_vm2, %v2955_v13 }
  0x4f   : > { %2224 = vmatmul.msk.f32.gmra.mxu3 %vm384_vm2, %v2958_v3 }
  0x50   : > { %2200 = vmatmul.msk.f32.gmra.mxu0 %vm384_vm2, %v2963_v24 }
  0x55   : > { %2226 = vmatmul.msk.f32.vlgmr.msrb.gmra.mxu1 %vm384_vm2, %v2637_v18  ;;  %v752_v18 = vrot.slane %v2711_v45, 2 }
  0x56   : > { %2260 = vmatmul.msk.f32.vlgmr.msrb.gmra.mxu2 %vm384_vm2, %v749_v55  ;;  %v3055_v55 = vsel %vm746_vm3, %v763_v42, %v765_v43 }
  0x57   : > { %2294 = vmatmul.msk.f32.vlgmr.msrb.gmra.mxu3 %vm384_vm2, %v2711_v45  ;;  %v2993_v28 = vsel %vm746_vm3, %v752_v18, %v753_v52 }
  0x58   : > { %2328 = vmatmul.msk.f32.vlgmr.msrb.gmra.mxu0 %vm384_vm2, %v2744_v59 }
  0x5d   : > { %2227 = vmatmul.msk.f32.gmra.mxu1 %vm384_vm2, %v2646_v21  ;;  %v755_v21 = vrot.slane %v2752_v61, 2 }
  0x5e   : > { %2261 = vmatmul.msk.f32.gmra.mxu2 %vm384_vm2, %v751_v30  ;;  %v768_v30 = vrot.slane %v2613_v6, 2 }
  0x5f   : > { %2295 = vmatmul.msk.f32.gmra.mxu3 %vm384_vm2, %v2714_v46  ;;  %v3005_v59 = vsel %vm746_vm3, %v753_v52, %v755_v21  ;;  %v770_v21 = vrot.slane %v2634_v17, 2  ;;  %v772_v17 = vrot.slane %v2684_v36, 2 }
  0x60   : > { %2329 = vmatmul.msk.f32.gmra.mxu0 %vm384_vm2, %v2789_v16  ;;  %v758_v16 = vrot.slane %v2801_v29, 2  ;;  %v3070_v18 = vsel %vm746_vm3, %v767_v40, %v768_v30 }
  0x61   : > { %4092 = vst [vmem:[#allocation34_spill] sm:$0xff] %v3070_v18 }
  0x65   : > { %2228 = vmatmul.msk.f32.gmra.mxu1 %vm384_vm2, %v2711_v45  ;;  %v757_v45 = vrot.slane %v2798_v27, 2 }
  0x66   : > { %2262 = vmatmul.msk.f32.gmra.mxu2 %vm384_vm2, %v2993_v28 }
  0x67   : > { %2296 = vmatmul.msk.f32.gmra.mxu3 %vm384_vm2, %v2798_v27  ;;  %v3018_v61 = vsel %vm746_vm3, %v757_v45, %v758_v16 }
  0x68   : > { %2330 = vmatmul.msk.f32.gmra.mxu0 %vm384_vm2, %v2833_v62 }
  0x6d   : > { %2229 = vmatmul.msk.f32.gmra.mxu1 %vm384_vm2, %v2714_v46  ;;  %v760_v46 = vrot.slane %v2836_v63, 2  ;;  %v3043_v63 = vsel %vm746_vm3, %v762_v26, %v763_v42  ;;  %v773_v42 = vrot.slane %v2687_v37, 2 }
  0x6e   : > { %2263 = vmatmul.msk.f32.gmra.mxu2 %vm384_vm2, %v3005_v59 }
  0x6f   : > { %2297 = vmatmul.msk.f32.gmra.mxu3 %vm384_vm2, %v2801_v29  ;;  %v3030_v44 = vsel %vm746_vm3, %v758_v16, %v760_v46 }
  0x70   : > { %2331 = vmatmul.msk.f32.gmra.mxu0 %vm384_vm2, %v2889_v25 }
  0x75   : > { %2230 = vmatmul.msk.f32.gmra.mxu1 %vm384_vm2, %v2798_v27 }
  0x76   : > { %2264 = vmatmul.msk.f32.gmra.mxu2 %vm384_vm2, %v3018_v61 }
  0x77   : > { %2298 = vmatmul.msk.f32.gmra.mxu3 %vm384_vm2, %v2898_v60 }
  0x78   : > { %2332 = vmatmul.msk.f32.gmra.mxu0 %vm384_vm2, %v2936_v12 }
  0x7d   : > { %2231 = vmatmul.msk.f32.gmra.mxu1 %vm384_vm2, %v2801_v29 }
  0x7e   : > { %2265 = vmatmul.msk.f32.gmra.mxu2 %vm384_vm2, %v3030_v44 }
  0x7f   : > { %2299 = vmatmul.msk.f32.gmra.mxu3 %vm384_vm2, %v2901_v32 }
  0x80   : > { %2333 = vmatmul.msk.f32.gmra.mxu0 %vm384_vm2, %v2963_v24 }
  0x85   : > { %2232 = vmatmul.msk.f32.gmra.mxu1 %vm384_vm2, %v2898_v60 }
  0x86   : > { %2266 = vmatmul.msk.f32.gmra.mxu2 %vm384_vm2, %v3043_v63 }
  0x87   : > { %2300 = vmatmul.msk.f32.gmra.mxu3 %vm384_vm2, %v2610_v5 }
  0x88   : > { %2334 = vmatmul.msk.f32.gmra.mxu0 %vm384_vm2, %v2640_v19 }
  0x8d   : > { %2233 = vmatmul.msk.f32.gmra.mxu1 %vm384_vm2, %v2901_v32 }
  0x8e   : > { %2267 = vmatmul.msk.f32.gmra.mxu2 %vm384_vm2, %v3055_v55 }
  0x8f   : > { %2301 = vmatmul.msk.f32.gmra.mxu3 %vm384_vm2, %v2613_v6 }
  0x90   : > { %2335 = vmatmul.msk.f32.gmra.mxu0 %vm384_vm2, %v2675_v33 }
  0x92   : > { %v3067_v31 = vpop.f32.mrf.mxu1 }
  0x95   : > { %2234 = vmatmul.msk.f32.gmra.mxu1 %vm384_vm2, %v2610_v5  ;;  %v3074_v52 = vpop.f32.mrf.mxu0  ;;  %v3090_v5 = vsel %vm746_vm3, %v768_v30, %v770_v21  ;;  %v3111_v30 = vsel %vm746_vm3, %v772_v17, %v773_v42 }
  0x96   : > { %2268 = vmatmul.msk.f32.gmra.mxu2 %vm384_vm2, %v3070_v18  ;;  %4094 = vst [vmem:[#allocation36_spill] sm:$0xff] %v3090_v5 }
  0x97   : > { %2302 = vmatmul.msk.f32.gmra.mxu3 %vm384_vm2, %v2684_v36  ;;  %4096 = vst [vmem:[#allocation38_spill] sm:$0xff] %v3111_v30 }
  0x98   : > { %2336 = vmatmul.msk.f32.gmra.mxu0 %vm384_vm2, %v2724_v53 }
  0x99   : > { %v3083_v45 = vpop.f32.mrf.mxu2 }
  0x9a   : > { %v3085_v16 = vpop.f32.mrf.mxu3  ;;  %v3087_v46 = vpop.f32.mrf.mxu1 }
  0x9b   : > { %4093 = vst [vmem:[#allocation35_spill] sm:$0xff] %v3085_v16  ;;  %v775_v16 = vrot.slane %v2733_v56, 2  ;;  %v777_v56 = vrot.slane %v2769_v4, 2 }
  0x9d   : > { %2235 = vmatmul.msk.f32.gmra.mxu1 %vm384_vm2, %v2613_v6  ;;  %v3094_v26 = vpop.f32.mrf.mxu0 }
  0x9e   : > { %2269 = vmatmul.msk.f32.gmra.mxu2 %vm384_vm2, %v3090_v5 }
  0x9f   : > { %2303 = vmatmul.msk.f32.gmra.mxu3 %vm384_vm2, %v2687_v37 }
  0xa0   : > { %2337 = vmatmul.msk.f32.gmra.mxu0 %vm384_vm2, %v2760_v1 }
  0xa1   : > { %v3104_v43 = vpop.f32.mrf.mxu2 }
  0xa2   : > { %v3106_v40 = vpop.f32.mrf.mxu3  ;;  %v3108_v6 = vpop.f32.mrf.mxu1 }
  0xa3   : > { %4095 = vst [vmem:[#allocation37_spill] sm:$0xff] %v3106_v40 }
  0xa5   : > { %2236 = vmatmul.msk.f32.gmra.mxu1 %vm384_vm2, %v2684_v36  ;;  %v3115_v21 = vpop.f32.mrf.mxu0  ;;  %v3131_v36 = vsel %vm746_vm3, %v773_v42, %v775_v16 }
  0xa6   : > { %2270 = vmatmul.msk.f32.gmra.mxu2 %vm384_vm2, %v3111_v30  ;;  %4098 = vst [vmem:[#allocation40_spill] sm:$0xff] %v3131_v36 }
  0xa7   : > { %2304 = vmatmul.msk.f32.gmra.mxu3 %vm384_vm2, %v2769_v4 }
  0xa8   : > { %2338 = vmatmul.msk.f32.gmra.mxu0 %vm384_vm2, %v2812_v47 }
  0xa9   : > { %v3124_v40 = vpop.f32.mrf.mxu2 }
  0xaa   : > { %v3126_v17 = vpop.f32.mrf.mxu3  ;;  %v3128_v1 = vpop.f32.mrf.mxu1 }
  0xab   : > { %4097 = vst [vmem:[#allocation39_spill] sm:$0xff] %v3126_v17  ;;  %v778_v17 = vrot.slane %v2772_v8, 2 }
  0xad   : > { %2237 = vmatmul.msk.f32.gmra.mxu1 %vm384_vm2, %v2687_v37  ;;  %v3135_v30 = vpop.f32.mrf.mxu0  ;;  %v3152_v47 = vsel %vm746_vm3, %v777_v56, %v778_v17 }
  0xae   : > { %2271 = vmatmul.msk.f32.gmra.mxu2 %vm384_vm2, %v3131_v36  ;;  %4100 = vst [vmem:[#allocation42_spill] sm:$0xff] %v3152_v47 }
  0xaf   : > { %2305 = vmatmul.msk.f32.gmra.mxu3 %vm384_vm2, %v2772_v8 }
  0xb0   : > { %2339 = vmatmul.msk.f32.gmra.mxu0 %vm384_vm2, %v2860_v50  ;;  %v780_v50 = vrot.slane %v2815_v48, 2  ;;  %v782_v48 = vrot.slane %v2869_v0, 2 }
  0xb1   : > { %v3145_v16 = vpop.f32.mrf.mxu2 }
  0xb2   : > { %v3147_v42 = vpop.f32.mrf.mxu3  ;;  %v3149_v37 = vpop.f32.mrf.mxu1 }
  0xb3   : > { %4099 = vst [vmem:[#allocation41_spill] sm:$0xff] %v3147_v42 }
  0xb5   : > { %2238 = vmatmul.msk.f32.gmra.mxu1 %vm384_vm2, %v2769_v4  ;;  %v3156_v36 = vpop.f32.mrf.mxu0  ;;  %v3172_v4 = vsel %vm746_vm3, %v778_v17, %v780_v50 }
  0xb6   : > { %2272 = vmatmul.msk.f32.gmra.mxu2 %vm384_vm2, %v3152_v47  ;;  %4102 = vst [vmem:[#allocation44_spill] sm:$0xff] %v3172_v4 }
  0xb7   : > { %2306 = vmatmul.msk.f32.gmra.mxu3 %vm384_vm2, %v2869_v0 }
  0xb8   : > { %2340 = vmatmul.msk.f32.gmra.mxu0 %vm384_vm2, %v2916_v35 }
  0xb9   : > { %v3165_v42 = vpop.f32.mrf.mxu2 }
  0xba   : > { %v3167_v56 = vpop.f32.mrf.mxu3  ;;  %v3169_v53 = vpop.f32.mrf.mxu1 }
  0xbb   : > { %4101 = vst [vmem:[#allocation43_spill] sm:$0xff] %v3167_v56  ;;  %v783_v56 = vrot.slane %v2872_v22, 2 }
  0xbd   : > { %2239 = vmatmul.msk.f32.gmra.mxu1 %vm384_vm2, %v2772_v8  ;;  %v3176_v47 = vpop.f32.mrf.mxu0  ;;  %v3193_v35 = vsel %vm746_vm3, %v782_v48, %v783_v56 }
  0xbe   : > { %2273 = vmatmul.msk.f32.gmra.mxu2 %vm384_vm2, %v3172_v4  ;;  %4105 = vst [vmem:[#allocation47_spill] sm:$0xff] %v3193_v35 }
  0xbf   : > { %2307 = vmatmul.msk.f32.gmra.mxu3 %vm384_vm2, %v2872_v22 }
  0xc0   : > { %2341 = vmatmul.msk.f32.gmra.mxu0 %vm384_vm2, %v2952_v51  ;;  %v785_v51 = vrot.slane %v2925_v41, 2  ;;  %v787_v41 = vrot.slane %v2616_v7, 2 }
  0xc1   : > { %v3186_v50 = vpop.f32.mrf.mxu2 }
  0xc2   : > { %4103 = vst [vmem:[#allocation45_spill] sm:$0xff] %v3186_v50  ;;  %v3188_v17 = vpop.f32.mrf.mxu3  ;;  %v3190_v8 = vpop.f32.mrf.mxu1 }
  0xc3   : > { %4104 = vst [vmem:[#allocation46_spill] sm:$0xff] %v3188_v17 }
  0xc5   : > { %2240 = vmatmul.msk.f32.gmra.mxu1 %vm384_vm2, %v2869_v0  ;;  %v3197_v4 = vpop.f32.mrf.mxu0  ;;  %v3213_v0 = vsel %vm746_vm3, %v783_v56, %v785_v51 }
  0xc6   : > { %2274 = vmatmul.msk.f32.gmra.mxu2 %vm384_vm2, %v3193_v35  ;;  %4108 = vst [vmem:[#allocation50_spill] sm:$0xff] %v3213_v0 }
  0xc7   : > { %2308 = vmatmul.msk.f32.gmra.mxu3 %vm384_vm2, %v2616_v7 }
  0xc8   : > { %2342 = vmatmul.msk.f32.gmra.mxu0 %vm384_vm2, %v2652_v23 }
  0xc9   : > { %v3206_v17 = vpop.f32.mrf.mxu2 }
  0xca   : > { %4106 = vst [vmem:[#allocation48_spill] sm:$0xff] %v3206_v17  ;;  %v3208_v48 = vpop.f32.mrf.mxu3  ;;  %v3210_v5 = vpop.f32.mrf.mxu1 }
  0xcb   : > { %4107 = vst [vmem:[#allocation49_spill] sm:$0xff] %v3208_v48  ;;  %v788_v48 = vrot.slane %v2621_v10, 2 }
  0xcd   : > { %2241 = vmatmul.msk.f32.gmra.mxu1 %vm384_vm2, %v2872_v22  ;;  %v3217_v35 = vpop.f32.mrf.mxu0  ;;  %v3232_v23 = vsel %vm746_vm3, %v787_v41, %v788_v48 }
  0xce   : > { %2275 = vmatmul.msk.f32.gmra.mxu2 %vm384_vm2, %v3213_v0  ;;  %4111 = vst [vmem:[#allocation53_spill] sm:$0xff] %v3232_v23 }
  0xcf   : > { %2309 = vmatmul.msk.f32.gmra.mxu3 %vm384_vm2, %v2621_v10 }
  0xd0   : > { %2343 = vmatmul.msk.f32.gmra.mxu0 %vm384_vm2, %v2678_v34  ;;  %v790_v34 = vrot.slane %v2643_v20, 2  ;;  %v792_v20 = vrot.slane %v2690_v38, 2 }
  0xd1   : > { %v3227_v51 = vpop.f32.mrf.mxu2 }
  0xd2   : > { %4109 = vst [vmem:[#allocation51_spill] sm:$0xff] %v3227_v51  ;;  %v3229_v56 = vpop.f32.mrf.mxu3  ;;  %v650_v22 = vpop.f32.mrf.mxu1 }
  0xd3   : > { %4110 = vst [vmem:[#allocation52_spill] sm:$0xff] %v3229_v56  ;;  %v651_v51 = vadd.f32 %v650_v22, %v3074_v52  ;;  %v793_v52 = vrot.slane %v2693_v39, 2 }
  0xd5   : > { %2242 = vmatmul.msk.f32.gmra.mxu1 %vm384_vm2, %v2616_v7  ;;  %v1229_v0 = vpop.f32.mrf.mxu0  ;;  %v3245_v7 = vsel %vm746_vm3, %v788_v48, %v790_v34 }
  0xd6   : > { %2276 = vmatmul.msk.f32.gmra.mxu2 %vm384_vm2, %v3232_v23 }
  0xd7   : > { %2310 = vmatmul.msk.f32.gmra.mxu3 %vm384_vm2, %v2690_v38 }
  0xd8   : > { %2344 = vmatmul.msk.f32.gmra.mxu0 %vm384_vm2, %v2727_v54 }
  0xd9   : > { %v913_v56 = vpop.f32.mrf.mxu2 }
  0xda   : > { %v1069_v41 = vpop.f32.mrf.mxu3  ;;  %v1009_v17 = vadd.f32 %v913_v56, %v651_v51  ;;  %v653_v50 = vpop.f32.mrf.mxu1 }
  0xdb   : > { %v654_v34 = vadd.f32 %v653_v50, %v3094_v26  ;;  %v795_v26 = vrot.slane %v2736_v57, 2  ;;  %v797_v57 = vrot.slane %v2775_v9, 2 }
  0xdc   : > { %v1165_v33 = vadd.f32 %v1069_v41, %v1009_v17 }
  0xdd   : > { %2243 = vmatmul.msk.f32.gmra.mxu1 %vm384_vm2, %v2621_v10  ;;  %v1232_v23 = vpop.f32.mrf.mxu0 }
  0xde   : > { %v3249_v18 = vadd.f32 %v1229_v0, %v1165_v33  ;;  %2277 = vmatmul.msk.f32.gmra.mxu2 %vm384_vm2, %v3245_v7  ;;  %v3261_v0 = vsel %vm746_vm3, %v792_v20, %v793_v52 }
  0xdf   : > { %2311 = vmatmul.msk.f32.gmra.mxu3 %vm384_vm2, %v2693_v39 }
  0xe0   : > { %2345 = vmatmul.msk.f32.gmra.mxu0 %vm384_vm2, %v2763_v2 }
  0xe1   : > { %v916_v17 = vpop.f32.mrf.mxu2 }
  0xe2   : > { %v1072_v10 = vpop.f32.mrf.mxu3  ;;  %v1010_v48 = vadd.f32 %v916_v17, %v654_v34  ;;  %v656_v33 = vpop.f32.mrf.mxu1 }
  0xe3   : > { %v657_v50 = vadd.f32 %v656_v33, %v3115_v21  ;;  %v798_v21 = vrot.slane %v2778_v11, 2 }
  0xe4   : > { %v1166_v51 = vadd.f32 %v1072_v10, %v1010_v48 }
  0xe5   : > { %2244 = vmatmul.msk.f32.gmra.mxu1 %vm384_vm2, %v2690_v38  ;;  %v1235_v56 = vpop.f32.mrf.mxu0 }
  0xe6   : > { %v3265_v22 = vadd.f32 %v1232_v23, %v1166_v51  ;;  %2278 = vmatmul.msk.f32.gmra.mxu2 %vm384_vm2, %v3261_v0  ;;  %v3276_v23 = vsel %vm746_vm3, %v793_v52, %v795_v26  ;;  %v3292_v26 = vsel %vm746_vm3, %v797_v57, %v798_v21 }
  0xe7   : > { %2312 = vmatmul.msk.f32.gmra.mxu3 %vm384_vm2, %v2775_v9 }
  0xe8   : > { %2346 = vmatmul.msk.f32.gmra.mxu0 %vm384_vm2, %v2818_v49 }
  0xe9   : > { %v919_v41 = vpop.f32.mrf.mxu2 }
  0xea   : > { %v1075_v20 = vpop.f32.mrf.mxu3  ;;  %v1011_v34 = vadd.f32 %v919_v41, %v657_v50  ;;  %v659_v38 = vpop.f32.mrf.mxu1 }
  0xeb   : > { %v660_v52 = vadd.f32 %v659_v38, %v3135_v30  ;;  %v4113_v30 = vld [vmem:[#allocation21_spill] sm:$0xff] }
  0xec   : > { %v1167_v17 = vadd.f32 %v1075_v20, %v1011_v34  ;;  %v800_v34 = vrot.slane %v4113_v30, 2 }
  0xed   : > { %2245 = vmatmul.msk.f32.gmra.mxu1 %vm384_vm2, %v2693_v39  ;;  %v1238_v10 = vpop.f32.mrf.mxu0 }
  0xee   : > { %v3280_v48 = vadd.f32 %v1235_v56, %v1167_v17  ;;  %2279 = vmatmul.msk.f32.gmra.mxu2 %vm384_vm2, %v3276_v23  ;;  %v4114_v17 = vld [vmem:[#allocation29_spill] sm:$0xff] }
  0xef   : > { %2313 = vmatmul.msk.f32.gmra.mxu3 %vm384_vm2, %v2778_v11 }
  0xf0   : > { %2347 = vmatmul.msk.f32.gmra.mxu0 %vm384_vm2, %v2863_v58 }
  0xf1   : > { %v922_v33 = vpop.f32.mrf.mxu2 }
  0xf2   : > { %v1078_v39 = vpop.f32.mrf.mxu3  ;;  %v1012_v51 = vadd.f32 %v922_v33, %v660_v52  ;;  %v662_v56 = vpop.f32.mrf.mxu1 }
  0xf3   : > { %v663_v38 = vadd.f32 %v662_v56, %v3156_v36  ;;  %v4116_v36 = vld [vmem:[#allocation25_spill] sm:$0xff]  ;;  %v802_v56 = vrot.slane %v2875_v14, 2 }
  0xf4   : > { %v1168_v50 = vadd.f32 %v1078_v39, %v1012_v51  ;;  %v803_v30 = vrot.slane %v4116_v36, 2 }
  0xf5   : > { %2246 = vmatmul.msk.f32.gmra.mxu1 %vm384_vm2, %v2775_v9  ;;  %v1241_v41 = vpop.f32.mrf.mxu0 }
  0xf6   : > { %v3296_v20 = vadd.f32 %v1238_v10, %v1168_v50  ;;  %2280 = vmatmul.msk.f32.gmra.mxu2 %vm384_vm2, %v3292_v26  ;;  %v3307_v10 = vsel %vm746_vm3, %v798_v21, %v800_v34 }
  0xf7   : > { %2314 = vmatmul.msk.f32.gmra.mxu3 %vm384_vm2, %v2875_v14 }
  0xf8   : > { %4112 = vst [vmem:[#allocation54_spill] sm:$0xff] %v3296_v20  ;;  %2348 = vmatmul.msk.f32.gmra.mxu0 %vm384_vm2, %v4114_v17 }
  0xf9   : > { %v925_v57 = vpop.f32.mrf.mxu2 }
  0xfa   : > { %v1081_v52 = vpop.f32.mrf.mxu3  ;;  %v1013_v33 = vadd.f32 %v925_v57, %v663_v38  ;;  %v665_v9 = vpop.f32.mrf.mxu1  ;;  %v3323_v57 = vsel %vm746_vm3, %v802_v56, %v803_v30 }
  0xfb   : > { %v666_v21 = vadd.f32 %v665_v9, %v3176_v47  ;;  %v4118_v47 = vld [vmem:[#allocation2_spill] sm:$0xff]  ;;  %v4119_v9 = vld [vmem:[#allocation31_spill] sm:$0xff] }
  0xfc   : > { %v1169_v39 = vadd.f32 %v1081_v52, %v1013_v33 }
  0xfd   : > { %2247 = vmatmul.msk.f32.gmra.mxu1 %vm384_vm2, %v2778_v11  ;;  %v1244_v51 = vpop.f32.mrf.mxu0 }
  0xfe   : > { %v3311_v50 = vadd.f32 %v1241_v41, %v1169_v39  ;;  %2281 = vmatmul.msk.f32.gmra.mxu2 %vm384_vm2, %v3307_v10 }
  0xff   : > { %2315 = vmatmul.msk.f32.gmra.mxu3 %vm384_vm2, %v4116_v36 }
 0x100   : > { %4115 = vst [vmem:[#allocation21_spill] sm:$0xff] %v3311_v50  ;;  %2349 = vmatmul.msk.f32.gmra.mxu0 %vm384_vm2, %v2955_v13  ;;  %v805_v50 = vrot.slane %v4119_v9, 2 }
 0x101   : > { %v928_v34 = vpop.f32.mrf.mxu2 }
 0x102   : > { %v1084_v11 = vpop.f32.mrf.mxu3  ;;  %v1014_v38 = vadd.f32 %v928_v34, %v666_v21  ;;  %v668_v41 = vpop.f32.mrf.mxu1  ;;  %v4120_v34 = vld [vmem:[#allocation5_spill] sm:$0xff] }
 0x103   : > { %v669_v21 = vadd.f32 %v668_v41, %v3197_v4  ;;  %v4122_v4 = vld [vmem:[#allocation3_spill] sm:$0xff]  ;;  %v807_v41 = vrot.slane %v4118_v47, 2 }
 0x104   : > { %v1170_v52 = vadd.f32 %v1084_v11, %v1014_v38  ;;  %v808_v9 = vrot.slane %v4122_v4, 2 }
 0x105   : > { %2248 = vmatmul.msk.f32.gmra.mxu1 %vm384_vm2, %v2875_v14  ;;  %v1247_v33 = vpop.f32.mrf.mxu0 }
 0x106   : > { %v3327_v39 = vadd.f32 %v1244_v51, %v1170_v52  ;;  %2282 = vmatmul.msk.f32.gmra.mxu2 %vm384_vm2, %v3323_v57  ;;  %v3338_v51 = vsel %vm746_vm3, %v803_v30, %v805_v50  ;;  %v4123_v30 = vld [vmem:[#allocation9_spill] sm:$0xff] }
 0x107   : > { %2316 = vmatmul.msk.f32.gmra.mxu3 %vm384_vm2, %v4118_v47 }
 0x108   : > { %4117 = vst [vmem:[#allocation29_spill] sm:$0xff] %v3327_v39  ;;  %2350 = vmatmul.msk.f32.gmra.mxu0 %vm384_vm2, %v4120_v34 }
 0x109   : > { %v931_v56 = vpop.f32.mrf.mxu2 }
 0x10a   : > { %v1087_v11 = vpop.f32.mrf.mxu3  ;;  %v1015_v38 = vadd.f32 %v931_v56, %v669_v21  ;;  %v671_v14 = vpop.f32.mrf.mxu1 }
 0x10b   : > { %v672_v50 = vadd.f32 %v671_v14, %v3217_v35  ;;  %v4126_v35 = vld [vmem:[#allocation10_spill] sm:$0xff] }
 0x10c   : > { %v1171_v52 = vadd.f32 %v1087_v11, %v1015_v38  ;;  %v3354_v11 = vsel %vm746_vm3, %v807_v41, %v808_v9  ;;  %v4127_v14 = vld [vmem:[#allocation6_spill] sm:$0xff] }
 0x10d   : > { %2249 = vmatmul.msk.f32.gmra.mxu1 %vm384_vm2, %v4116_v36  ;;  %v1250_v39 = vpop.f32.mrf.mxu0  ;;  %4124 = vst [vmem:[#allocation2_spill] sm:$0xff] %v3354_v11 }
 0x10e   : > { %v3342_v20 = vadd.f32 %v1247_v33, %v1171_v52  ;;  %2283 = vmatmul.msk.f32.gmra.mxu2 %vm384_vm2, %v3338_v51 }
 0x10f   : > { %2317 = vmatmul.msk.f32.gmra.mxu3 %vm384_vm2, %v4122_v4 }
 0x110   : > { %4121 = vst [vmem:[#allocation25_spill] sm:$0xff] %v3342_v20  ;;  %2351 = vmatmul.msk.f32.gmra.mxu0 %vm384_vm2, %v4123_v30  ;;  %v810_v30 = vrot.slane %v4127_v14, 2 }
 0x111   : > { %v934_v21 = vpop.f32.mrf.mxu2 }
 0x112   : > { %v1090_v36 = vpop.f32.mrf.mxu3  ;;  %v1016_v56 = vadd.f32 %v934_v21, %v672_v50  ;;  %v674_v33 = vpop.f32.mrf.mxu1  ;;  %v4128_v21 = vld [vmem:[#allocation13_spill] sm:$0xff] }
 0x113   : > { %v675_v50 = vadd.f32 %v674_v33, %v3067_v31  ;;  %v4130_v31 = vld [vmem:[#allocation11_spill] sm:$0xff]  ;;  %v812_v33 = vrot.slane %v4126_v35, 2 }
 0x114   : > { %v1172_v38 = vadd.f32 %v1090_v36, %v1016_v56  ;;  %v813_v14 = vrot.slane %v4130_v31, 2 }
 0x115   : > { %2250 = vmatmul.msk.f32.gmra.mxu1 %vm384_vm2, %v4118_v47  ;;  %v1253_v52 = vpop.f32.mrf.mxu0 }
 0x116   : > { %v3358_v20 = vadd.f32 %v1250_v39, %v1172_v38  ;;  %2284 = vmatmul.msk.f32.gmra.mxu2 %vm384_vm2, %v3354_v11  ;;  %v3369_v39 = vsel %vm746_vm3, %v808_v9, %v810_v30  ;;  %v4131_v30 = vld [vmem:[#allocation16_spill] sm:$0xff] }
 0x117   : > { %2318 = vmatmul.msk.f32.gmra.mxu3 %vm384_vm2, %v4126_v35 }
 0x118   : > { %4125 = vst [vmem:[#allocation31_spill] sm:$0xff] %v3358_v20  ;;  %2352 = vmatmul.msk.f32.gmra.mxu0 %vm384_vm2, %v4128_v21 }
 0x119   : > { %v937_v41 = vpop.f32.mrf.mxu2 }
 0x11a   : > { %v1093_v36 = vpop.f32.mrf.mxu3  ;;  %v1017_v56 = vadd.f32 %v937_v41, %v675_v50  ;;  %v677_v47 = vpop.f32.mrf.mxu1 }
 0x11b   : > { %v678_v9 = vadd.f32 %v677_v47, %v3087_v46  ;;  %v4134_v46 = vld [vmem:[#allocation17_spill] sm:$0xff]  ;;  %v4135_v47 = vld [vmem:[#allocation14_spill] sm:$0xff] }
 0x11c   : > { %v1173_v38 = vadd.f32 %v1093_v36, %v1017_v56  ;;  %v3385_v36 = vsel %vm746_vm3, %v812_v33, %v813_v14 }
 0x11d   : > { %2251 = vmatmul.msk.f32.gmra.mxu1 %vm384_vm2, %v4122_v4  ;;  %v1256_v20 = vpop.f32.mrf.mxu0  ;;  %4132 = vst [vmem:[#allocation3_spill] sm:$0xff] %v3385_v36 }
 0x11e   : > { %v3373_v11 = vadd.f32 %v1253_v52, %v1173_v38  ;;  %2285 = vmatmul.msk.f32.gmra.mxu2 %vm384_vm2, %v3369_v39 }
 0x11f   : > { %2319 = vmatmul.msk.f32.gmra.mxu3 %vm384_vm2, %v4130_v31 }
 0x120   : > { %4129 = vst [vmem:[#allocation5_spill] sm:$0xff] %v3373_v11  ;;  %2353 = vmatmul.msk.f32.gmra.mxu0 %vm384_vm2, %v4131_v30  ;;  %v815_v30 = vrot.slane %v4135_v47, 2 }
 0x121   : > { %v940_v50 = vpop.f32.mrf.mxu2 }
 0x122   : > { %v1096_v4 = vpop.f32.mrf.mxu3  ;;  %v1018_v41 = vadd.f32 %v940_v50, %v678_v9  ;;  %v680_v52 = vpop.f32.mrf.mxu1  ;;  %v4136_v50 = vld [vmem:[#allocation20_spill] sm:$0xff] }
 0x123   : > { %v681_v9 = vadd.f32 %v680_v52, %v3108_v6  ;;  %v4138_v6 = vld [vmem:[#allocation18_spill] sm:$0xff]  ;;  %v817_v52 = vrot.slane %v4134_v46, 2 }
 0x124   : > { %v1174_v56 = vadd.f32 %v1096_v4, %v1018_v41  ;;  %v818_v47 = vrot.slane %v4138_v6, 2 }
 0x125   : > { %2252 = vmatmul.msk.f32.gmra.mxu1 %vm384_vm2, %v4126_v35  ;;  %v1259_v38 = vpop.f32.mrf.mxu0 }
 0x126   : > { %v3389_v11 = vadd.f32 %v1256_v20, %v1174_v56  ;;  %2286 = vmatmul.msk.f32.gmra.mxu2 %vm384_vm2, %v3385_v36  ;;  %v3400_v20 = vsel %vm746_vm3, %v813_v14, %v815_v30  ;;  %v4139_v30 = vld [vmem:[#allocation24_spill] sm:$0xff] }
 0x127   : > { %2320 = vmatmul.msk.f32.gmra.mxu3 %vm384_vm2, %v4134_v46 }
 0x128   : > { %4133 = vst [vmem:[#allocation10_spill] sm:$0xff] %v3389_v11  ;;  %2354 = vmatmul.msk.f32.gmra.mxu0 %vm384_vm2, %v4136_v50 }
 0x129   : > { %v943_v33 = vpop.f32.mrf.mxu2 }
 0x12a   : > { %v1099_v4 = vpop.f32.mrf.mxu3  ;;  %v1019_v41 = vadd.f32 %v943_v33, %v681_v9  ;;  %v683_v35 = vpop.f32.mrf.mxu1 }
 0x12b   : > { %v684_v14 = vadd.f32 %v683_v35, %v3128_v1  ;;  %v4142_v1 = vld [vmem:[#allocation26_spill] sm:$0xff] }
 0x12c   : > { %v1175_v56 = vadd.f32 %v1099_v4, %v1019_v41  ;;  %v3416_v4 = vsel %vm746_vm3, %v817_v52, %v818_v47  ;;  %v4143_v35 = vld [vmem:[#allocation22_spill] sm:$0xff] }
 0x12d   : > { %2253 = vmatmul.msk.f32.gmra.mxu1 %vm384_vm2, %v4130_v31  ;;  %v1262_v11 = vpop.f32.mrf.mxu0  ;;  %4140 = vst [vmem:[#allocation13_spill] sm:$0xff] %v3416_v4  ;;  %v4144_v52 = vld [vmem:[#allocation30_spill] sm:$0xff] }
 0x12e   : > { %v3404_v36 = vadd.f32 %v1259_v38, %v1175_v56  ;;  %2287 = vmatmul.msk.f32.gmra.mxu2 %vm384_vm2, %v3400_v20 }
 0x12f   : > { %2321 = vmatmul.msk.f32.gmra.mxu3 %vm384_vm2, %v4138_v6 }
 0x130   : > { %4137 = vst [vmem:[#allocation6_spill] sm:$0xff] %v3404_v36  ;;  %2355 = vmatmul.msk.f32.gmra.mxu0 %vm384_vm2, %v4139_v30 }
 0x131   : > { %v946_v9 = vpop.f32.mrf.mxu2 }
 0x132   : > { %v1102_v31 = vpop.f32.mrf.mxu3  ;;  %v1020_v33 = vadd.f32 %v946_v9, %v684_v14  ;;  %v686_v38 = vpop.f32.mrf.mxu1  ;;  %v820_v14 = vrot.slane %v4143_v35, 2  ;;  %v822_v35 = vrot.slane %v4142_v1, 2 }
 0x133   : > { %v687_v9 = vadd.f32 %v686_v38, %v3149_v37  ;;  %v4146_v37 = vld [vmem:[#allocation27_spill] sm:$0xff] }
 0x134   : > { %v1176_v41 = vadd.f32 %v1102_v31, %v1020_v33  ;;  %v3442_v38 = vld [vmem:[%s2607_s30 + $0x188] sm:$0xff] }
 0x135   : > { %2254 = vmatmul.msk.f32.gmra.mxu1 %vm384_vm2, %v4134_v46  ;;  %v1265_v56 = vpop.f32.mrf.mxu0 }
 0x136   : > { %v3420_v36 = vadd.f32 %v1262_v11, %v1176_v41  ;;  %2288 = vmatmul.msk.f32.gmra.mxu2 %vm384_vm2, %v3416_v4  ;;  %v3431_v41 = vsel %vm746_vm3, %v818_v47, %v820_v14  ;;  %v823_v47 = vrot.slane %v4146_v37, 2 }
 0x137   : > { %2322 = vmatmul.msk.f32.gmra.mxu3 %vm384_vm2, %v4142_v1 }
 0x138   : > { %4141 = vst [vmem:[#allocation11_spill] sm:$0xff] %v3420_v36  ;;  %2356 = vmatmul.msk.f32.gmra.mxu0 %vm384_vm2, %v4144_v52 }
 0x139   : > { %v949_v31 = vpop.f32.mrf.mxu2 }
 0x13a   : > { %v1105_v46 = vpop.f32.mrf.mxu3  ;;  %v1021_v33 = vadd.f32 %v949_v31, %v687_v9  ;;  %v689_v11 = vpop.f32.mrf.mxu1  ;;  %v3448_v9 = vld [vmem:[%s2607_s30 + $0x180] sm:$0xff]  ;;  %v1199_v31 = vrot.slane %v3442_v38, 1 }
 0x13b   : > { %v690_v14 = vadd.f32 %v689_v11, %v3169_v53  ;;  %4147 = vst [vmem:[#allocation14_spill] sm:$0xff] %v3448_v9 }
 0x13c   : > { %v1177_v36 = vadd.f32 %v1105_v46, %v1021_v33 }
 0x13d   : > { %2255 = vmatmul.msk.f32.gmra.mxu1 %vm384_vm2, %v4138_v6  ;;  %v1268_v30 = vpop.f32.mrf.mxu0 }
 0x13e   : > { %v3435_v4 = vadd.f32 %v1265_v56, %v1177_v36  ;;  %2289 = vmatmul.msk.f32.gmra.mxu2 %vm384_vm2, %v3431_v41  ;;  %v1198_v56 = vrot.slane %v3448_v9, 1 }
 0x13f   : > { %2323 = vmatmul.msk.f32.gmra.mxu3 %vm384_vm2, %v4146_v37 }
 0x140   : > { %4145 = vst [vmem:[#allocation17_spill] sm:$0xff] %v3435_v4  ;;  %2357 = vmatmul.msk.f32.gmra.mxu0 %vm384_vm2, %v2958_v3  ;;  %v3455_v4 = vsel %vm746_vm3, %v822_v35, %v823_v47  ;;  %v3460_v11 = vsel %vm301_vm1, %v1198_v56, %v1199_v31  ;;  %v825_v35 = vrot.slane %v2931_v15, 2 }
 0x141   : > { %v952_v36 = vpop.f32.mrf.mxu2 }
 0x142   : > { %v1108_v6 = vpop.f32.mrf.mxu3  ;;  %v1022_v46 = vadd.f32 %v952_v36, %v690_v14  ;;  %v692_v33 = vpop.f32.mrf.mxu1  ;;  %v3469_v14 = vld [vmem:[%s2607_s30 + $0x190] sm:$0x3] }
 0x143   : > { %v693_v36 = vadd.f32 %v692_v33, %v3190_v8 }
 0x144   : > { %v1178_v52 = vadd.f32 %v1108_v6, %v1022_v46  ;;  %v3477_v46 = vsel %vm746_vm3, %v823_v47, %v825_v35 }
 0x145   : > { %2256 = vmatmul.msk.f32.gmra.mxu1 %vm384_vm2, %v4142_v1  ;;  %v1271_v53 = vpop.f32.mrf.mxu0 }
 0x146   : > { %v3462_v3 = vadd.f32 %v1268_v30, %v1178_v52  ;;  %2290 = vmatmul.msk.f32.gmra.mxu2 %vm384_vm2, %v3455_v4  ;;  %v1201_v30 = vrot.slane %v3469_v14, 1 }
 0x147   : > { %2324 = vmatmul.msk.f32.gmra.mxu3 %vm384_vm2, %v3448_v9 }
 0x148   : > { %4148 = vst [vmem:[#allocation20_spill] sm:$0xff] %v3462_v3  ;;  %2358 = vmatmul.msk.f32.gmra.mxu0 %vm384_vm2, %v3460_v11  ;;  %v3482_v15 = vsel %vm301_vm1, %v1199_v31, %v1201_v30 }
 0x149   : > { %v955_v1 = vpop.f32.mrf.mxu2 }
 0x14a   : > { %v1111_v6 = vpop.f32.mrf.mxu3  ;;  %v1023_v52 = vadd.f32 %v955_v1, %v693_v36  ;;  %v695_v56 = vpop.f32.mrf.mxu1 }
 0x14b   : > { %v696_v33 = vadd.f32 %v695_v56, %v3210_v5 }
 0x14c   : > { %v1179_v3 = vadd.f32 %v1111_v6, %v1023_v52 }
 0x14d   : > { %2257 = vmatmul.msk.f32.gmra.mxu1 %vm384_vm2, %v4146_v37  ;;  %v1274_v9 = vpop.f32.mrf.mxu0 }
 0x14e   : > { %v3484_v8 = vadd.f32 %v1271_v53, %v1179_v3  ;;  %2291 = vmatmul.msk.f32.gmra.mxu2 %vm384_vm2, %v3477_v46 }
 0x14f   : > { %2325 = vmatmul.msk.f32.gmra.mxu3 %vm384_vm2, %v3442_v38 }
 0x150   : > { %2359 = vmatmul.msk.f32.gmra.mxu0 %vm384_vm2, %v3482_v15 }
 0x151   : > { %v958_v47 = vpop.f32.mrf.mxu2 }
 0x152   : > { %v1114_v35 = vpop.f32.mrf.mxu3  ;;  %v1024_v37 = vadd.f32 %v958_v47, %v696_v33  ;;  %v698_v36 = vpop.f32.mrf.mxu1 }
 0x153   : > { %v699_v5 = vadd.f32 %v698_v36, %v3083_v45 }
 0x154   : > { %v1180_v1 = vadd.f32 %v1114_v35, %v1024_v37 }
 0x155   : > { %2362 = vmatmul.msk.f32.vlgmr.msra.gmra.mxu1 %vm384_vm2, %v2993_v28  ;;  %v1277_v3 = vpop.f32.mrf.mxu0 }
 0x156   : > { %v3495_v31 = vadd.f32 %v1274_v9, %v1180_v1  ;;  %2396 = vmatmul.msk.f32.vlgmr.msra.gmra.mxu2 %vm384_vm2, %v2798_v27 }
 0x157   : > { %2430 = vmatmul.msk.f32.vlgmr.msra.gmra.mxu3 %vm384_vm2, %v2833_v62 }
 0x158   : > { %2464 = vmatmul.msk.f32.vlgmr.msra.gmra.mxu0 %vm384_vm2, %v3018_v61 }
 0x159   : > { %v961_v53 = vpop.f32.mrf.mxu2 }
 0x15a   : > { %v1117_v6 = vpop.f32.mrf.mxu3  ;;  %v1025_v30 = vadd.f32 %v961_v53, %v699_v5  ;;  %v701_v52 = vpop.f32.mrf.mxu1 }
 0x15b   : > { %v702_v27 = vadd.f32 %v701_v52, %v3104_v43 }
 0x15c   : > { %v1181_v56 = vadd.f32 %v1117_v6, %v1025_v30 }
 0x15d   : > { %2363 = vmatmul.msk.f32.gmra.mxu1 %vm384_vm2, %v3005_v59  ;;  %v1280_v28 = vpop.f32.mrf.mxu0 }
 0x15e   : > { %v3506_v9 = vadd.f32 %v1277_v3, %v1181_v56  ;;  %2397 = vmatmul.msk.f32.gmra.mxu2 %vm384_vm2, %v2801_v29 }
 0x15f   : > { %2431 = vmatmul.msk.f32.gmra.mxu3 %vm384_vm2, %v2889_v25 }
 0x160   : > { %2465 = vmatmul.msk.f32.gmra.mxu0 %vm384_vm2, %v3030_v44 }
 0x161   : > { %v964_v62 = vpop.f32.mrf.mxu2 }
 0x162   : > { %v1120_v45 = vpop.f32.mrf.mxu3  ;;  %v1026_v33 = vadd.f32 %v964_v62, %v702_v27  ;;  %v704_v47 = vpop.f32.mrf.mxu1 }
 0x163   : > { %v705_v29 = vadd.f32 %v704_v47, %v3124_v40  ;;  %v2514_v47 = vld [vmem:[%s2607_s30 + $0x68] sm:$0xff] }
 0x164   : > { %v1182_v35 = vadd.f32 %v1120_v45, %v1026_v33 }
 0x165   : > { %2364 = vmatmul.msk.f32.gmra.mxu1 %vm384_vm2, %v3018_v61  ;;  %v1283_v59 = vpop.f32.mrf.mxu0 }
 0x166   : > { %v3517_v37 = vadd.f32 %v1280_v28, %v1182_v35  ;;  %2398 = vmatmul.msk.f32.gmra.mxu2 %vm384_vm2, %v2898_v60 }
 0x167   : > { %2432 = vmatmul.msk.f32.gmra.mxu3 %vm384_vm2, %v2936_v12 }
 0x168   : > { %2466 = vmatmul.msk.f32.gmra.mxu0 %vm384_vm2, %v3043_v63 }
 0x169   : > { %v967_v25 = vpop.f32.mrf.mxu2 }
 0x16a   : > { %v1123_v43 = vpop.f32.mrf.mxu3  ;;  %v1027_v36 = vadd.f32 %v967_v25, %v705_v29  ;;  %v707_v1 = vpop.f32.mrf.mxu1 }
 0x16b   : > { %v708_v12 = vadd.f32 %v707_v1, %v3145_v16  ;;  %v4149_v16 = vld [vmem:[#allocation34_spill] sm:$0xff] }
 0x16c   : > { %v1183_v3 = vadd.f32 %v1123_v43, %v1027_v36 }
 0x16d   : > { %2365 = vmatmul.msk.f32.gmra.mxu1 %vm384_vm2, %v3030_v44  ;;  %v1286_v61 = vpop.f32.mrf.mxu0 }
 0x16e   : > { %v3528_v5 = vadd.f32 %v1283_v59, %v1183_v3  ;;  %2399 = vmatmul.msk.f32.gmra.mxu2 %vm384_vm2, %v2901_v32  ;;  %v2513_v32 = vld [vmem:[%s2607_s30 + $0x60] sm:$0xff]  ;;  %v4152_v59 = vld [vmem:[#allocation36_spill] sm:$0xff] }
 0x16f   : > { %2433 = vmatmul.msk.f32.gmra.mxu3 %vm384_vm2, %v2963_v24 }
 0x170   : > { %2467 = vmatmul.msk.f32.gmra.mxu0 %vm384_vm2, %v3055_v55 }
 0x171   : > { %v970_v60 = vpop.f32.mrf.mxu2 }
 0x172   : > { %v1126_v40 = vpop.f32.mrf.mxu3  ;;  %v1028_v53 = vadd.f32 %v970_v60, %v708_v12  ;;  %v710_v6 = vpop.f32.mrf.mxu1  ;;  %v4153_v12 = vld [vmem:[#allocation12_spill] sm:$0xff] }
 0x173   : > { %v711_v24 = vadd.f32 %v710_v6, %v3165_v42  ;;  %v4151_v42 = vld [vmem:[#allocation45_spill] sm:$0xff]  ;;  %v4154_v60 = vld [vmem:[#allocation48_spill] sm:$0xff] }
 0x174   : > { %v1184_v30 = vadd.f32 %v1126_v40, %v1028_v53  ;;  %v4155_v53 = vld [vmem:[#allocation38_spill] sm:$0xff] }
 0x175   : > { %2366 = vmatmul.msk.f32.gmra.mxu1 %vm384_vm2, %v3043_v63  ;;  %v1289_v44 = vpop.f32.mrf.mxu0 }
 0x176   : > { %v3539_v52 = vadd.f32 %v1286_v61, %v1184_v30  ;;  %2400 = vmatmul.msk.f32.gmra.mxu2 %vm384_vm2, %v2513_v32  ;;  %v2515_v61 = vld [vmem:[%s2607_s30 + $0x78] sm:$0xff] }
 0x177   : > { %2434 = vmatmul.msk.f32.gmra.mxu3 %vm384_vm2, %v2640_v19  ;;  %v4150_v19 = vld [vmem:[#allocation7_spill] sm:$0xff] }
 0x178   : > { %2468 = vmatmul.msk.f32.gmra.mxu0 %vm384_vm2, %v4149_v16 }
 0x179   : > { %v973_v56 = vpop.f32.mrf.mxu2 }
 0x17a   : > { %v1129_v28 = vpop.f32.mrf.mxu3  ;;  %v1029_v27 = vadd.f32 %v973_v56, %v711_v24  ;;  %v713_v62 = vpop.f32.mrf.mxu1 }
 0x17b   : > { %v714_v35 = vadd.f32 %v713_v62, %v4151_v42  ;;  %v4157_v62 = vld [vmem:[#allocation51_spill] sm:$0xff] }
 0x17c   : > { %v1185_v63 = vadd.f32 %v1129_v28, %v1029_v27  ;;  %v2516_v28 = vld [vmem:[%s2607_s30 + $0x80] sm:$0xff]  ;;  %v4156_v27 = vld [vmem:[#allocation15_spill] sm:$0xff] }
 0x17d   : > { %2367 = vmatmul.msk.f32.gmra.mxu1 %vm384_vm2, %v3055_v55  ;;  %v1292_v45 = vpop.f32.mrf.mxu0 }
 0x17e   : > { %v3550_v33 = vadd.f32 %v1289_v44, %v1185_v63  ;;  %2401 = vmatmul.msk.f32.gmra.mxu2 %vm384_vm2, %v2514_v47 }
 0x17f   : > { %2435 = vmatmul.msk.f32.gmra.mxu3 %vm384_vm2, %v4150_v19 }
 0x180   : > { %2469 = vmatmul.msk.f32.gmra.mxu0 %vm384_vm2, %v4152_v59 }
 0x181   : > { %v976_v29 = vpop.f32.mrf.mxu2 }
 0x182   : > { %v1132_v25 = vpop.f32.mrf.mxu3  ;;  %v1030_v43 = vadd.f32 %v976_v29, %v714_v35  ;;  %v716_v36 = vpop.f32.mrf.mxu1 }
 0x183   : > { %v717_v40 = vadd.f32 %v716_v36, %v4154_v60  ;;  %v4159_v36 = vld [vmem:[#allocation19_spill] sm:$0xff] }
 0x184   : > { %v1186_v55 = vadd.f32 %v1132_v25, %v1030_v43  ;;  %v2517_v43 = vld [vmem:[%s2607_s30 + $0x90] sm:$0xff] }
 0x185   : > { %2368 = vmatmul.msk.f32.gmra.mxu1 %vm384_vm2, %v4149_v16  ;;  %v1295_v1 = vpop.f32.mrf.mxu0 }
 0x186   : > { %v3561_v3 = vadd.f32 %v1292_v45, %v1186_v55  ;;  %2402 = vmatmul.msk.f32.gmra.mxu2 %vm384_vm2, %v2515_v61  ;;  %v4158_v45 = vld [vmem:[#allocation40_spill] sm:$0xff]  ;;  %v4160_v55 = vld [vmem:[#allocation35_spill] sm:$0xff]  ;;  %v4161_v61 = vld [vmem:[#allocation42_spill] sm:$0xff] }
 0x187   : > { %2436 = vmatmul.msk.f32.gmra.mxu3 %vm384_vm2, %v4153_v12 }
 0x188   : > { %2470 = vmatmul.msk.f32.gmra.mxu0 %vm384_vm2, %v4155_v53 }
 0x189   : > { %v979_v6 = vpop.f32.mrf.mxu2 }
 0x18a   : > { %v1135_v30 = vpop.f32.mrf.mxu3  ;;  %v1031_v44 = vadd.f32 %v979_v6, %v717_v40  ;;  %v719_v32 = vpop.f32.mrf.mxu1 }
 0x18b   : > { %v720_v63 = vadd.f32 %v719_v32, %v4157_v62  ;;  %v2518_v32 = vld [vmem:[%s2607_s30 + $0x98] sm:$0xff] }
 0x18c   : > { %v1187_v24 = vadd.f32 %v1135_v30, %v1031_v44 }
 0x18d   : > { %2369 = vmatmul.msk.f32.gmra.mxu1 %vm384_vm2, %v4152_v59  ;;  %v1298_v16 = vpop.f32.mrf.mxu0 }
 0x18e   : > { %v3572_v56 = vadd.f32 %v1295_v1, %v1187_v24  ;;  %2403 = vmatmul.msk.f32.gmra.mxu2 %vm384_vm2, %v2516_v28  ;;  %v4162_v24 = vld [vmem:[#allocation23_spill] sm:$0xff] }
 0x18f   : > { %2437 = vmatmul.msk.f32.gmra.mxu3 %vm384_vm2, %v4156_v27  ;;  %v4164_v27 = vld [vmem:[#allocation44_spill] sm:$0xff] }
 0x190   : > { %2471 = vmatmul.msk.f32.gmra.mxu0 %vm384_vm2, %v4158_v45 }
 0x191   : > { %v982_v47 = vpop.f32.mrf.mxu2 }
 0x192   : > { %v1138_v19 = vpop.f32.mrf.mxu3  ;;  %v1032_v42 = vadd.f32 %v982_v47, %v720_v63  ;;  %v722_v35 = vpop.f32.mrf.mxu1 }
 0x193   : > { %v723_v1 = vadd.f32 %v722_v35, %v4160_v55  ;;  %v4167_v55 = vld [vmem:[#allocation47_spill] sm:$0xff] }
 0x194   : > { %v1188_v59 = vadd.f32 %v1138_v19, %v1032_v42 }
 0x195   : > { %2370 = vmatmul.msk.f32.gmra.mxu1 %vm384_vm2, %v4155_v53  ;;  %v1301_v29 = vpop.f32.mrf.mxu0 }
 0x196   : > { %v3583_v25 = vadd.f32 %v1298_v16, %v1188_v59  ;;  %2404 = vmatmul.msk.f32.gmra.mxu2 %vm384_vm2, %v2517_v43  ;;  %v4163_v16 = vld [vmem:[#allocation37_spill] sm:$0xff]  ;;  %v2519_v59 = vld [vmem:[%s2607_s30 + $0xa8] sm:$0xff] }
 0x197   : > { %2438 = vmatmul.msk.f32.gmra.mxu3 %vm384_vm2, %v4159_v36  ;;  %v4166_v43 = vld [vmem:[#allocation39_spill] sm:$0xff] }
 0x198   : > { %2472 = vmatmul.msk.f32.gmra.mxu0 %vm384_vm2, %v4161_v61 }
 0x199   : > { %v985_v12 = vpop.f32.mrf.mxu2 }
 0x19a   : > { %v1141_v60 = vpop.f32.mrf.mxu3  ;;  %v1033_v40 = vadd.f32 %v985_v12, %v723_v1  ;;  %v725_v6 = vpop.f32.mrf.mxu1 }
 0x19b   : > { %v726_v28 = vadd.f32 %v725_v6, %v4163_v16 }
 0x19c   : > { %v1189_v53 = vadd.f32 %v1141_v60, %v1033_v40 }
 0x19d   : > { %2371 = vmatmul.msk.f32.gmra.mxu1 %vm384_vm2, %v4158_v45  ;;  %v1304_v30 = vpop.f32.mrf.mxu0 }
 0x19e   : > { %v3594_v44 = vadd.f32 %v1301_v29, %v1189_v53  ;;  %2405 = vmatmul.msk.f32.gmra.mxu2 %vm384_vm2, %v2518_v32  ;;  %v4165_v29 = vld [vmem:[#allocation28_spill] sm:$0xff] }
 0x19f   : > { %2439 = vmatmul.msk.f32.gmra.mxu3 %vm384_vm2, %v4162_v24  ;;  %v4168_v32 = vld [vmem:[#allocation32_spill] sm:$0xff]  ;;  %v4169_v24 = vld [vmem:[#allocation41_spill] sm:$0xff] }
 0x1a0   : > { %2473 = vmatmul.msk.f32.gmra.mxu0 %vm384_vm2, %v4164_v27 }
 0x1a1   : > { %v988_v62 = vpop.f32.mrf.mxu2 }
 0x1a2   : > { %v1144_v63 = vpop.f32.mrf.mxu3  ;;  %v1034_v47 = vadd.f32 %v988_v62, %v726_v28  ;;  %v728_v19 = vpop.f32.mrf.mxu1  ;;  %v4170_v28 = vld [vmem:[#allocation50_spill] sm:$0xff] }
 0x1a3   : > { %v729_v36 = vadd.f32 %v728_v19, %v4166_v43  ;;  %v4172_v43 = vld [vmem:[#allocation43_spill] sm:$0xff] }
 0x1a4   : > { %v1190_v45 = vadd.f32 %v1144_v63, %v1034_v47 }
 0x1a5   : > { %2372 = vmatmul.msk.f32.gmra.mxu1 %vm384_vm2, %v4161_v61  ;;  %v1307_v42 = vpop.f32.mrf.mxu0 }
 0x1a6   : > { %v3605_v35 = vadd.f32 %v1304_v30, %v1190_v45  ;;  %2406 = vmatmul.msk.f32.gmra.mxu2 %vm384_vm2, %v2519_v59  ;;  %v2520_v30 = vld [vmem:[%s2607_s30 + $0xb0] sm:$0xff]  ;;  %v2521_v59 = vld [vmem:[%s2607_s30 + $0xc0] sm:$0xff] }
 0x1a7   : > { %2440 = vmatmul.msk.f32.gmra.mxu3 %vm384_vm2, %v4165_v29  ;;  %v4171_v29 = vld [vmem:[#allocation4_spill] sm:$0xff] }
 0x1a8   : > { %2474 = vmatmul.msk.f32.gmra.mxu0 %vm384_vm2, %v4167_v55 }
 0x1a9   : > { %v991_v1 = vpop.f32.mrf.mxu2 }
 0x1aa   : > { %v1147_v12 = vpop.f32.mrf.mxu3  ;;  %v1035_v60 = vadd.f32 %v991_v1, %v729_v36  ;;  %v731_v40 = vpop.f32.mrf.mxu1  ;;  %v4173_v1 = vld [vmem:[#allocation53_spill] sm:$0xff] }
 0x1ab   : > { %v732_v16 = vadd.f32 %v731_v40, %v4169_v24  ;;  %v4174_v24 = vld [vmem:[#allocation8_spill] sm:$0xff] }
 0x1ac   : > { %v1191_v61 = vadd.f32 %v1147_v12, %v1035_v60 }
 0x1ad   : > { %2373 = vmatmul.msk.f32.gmra.mxu1 %vm384_vm2, %v4164_v27  ;;  %v1310_v6 = vpop.f32.mrf.mxu0 }
 0x1ae   : > { %v3616_v53 = vadd.f32 %v1307_v42, %v1191_v61  ;;  %2407 = vmatmul.msk.f32.gmra.mxu2 %vm384_vm2, %v2520_v30 }
 0x1af   : > { %2441 = vmatmul.msk.f32.gmra.mxu3 %vm384_vm2, %v4168_v32  ;;  %v2522_v32 = vld [vmem:[%s2607_s30 + $0xc8] sm:$0xff] }
 0x1b0   : > { %2475 = vmatmul.msk.f32.gmra.mxu0 %vm384_vm2, %v4170_v28 }
 0x1b1   : > { %v994_v62 = vpop.f32.mrf.mxu2 }
 0x1b2   : > { %v1150_v63 = vpop.f32.mrf.mxu3  ;;  %v1036_v47 = vadd.f32 %v994_v62, %v732_v16  ;;  %v734_v19 = vpop.f32.mrf.mxu1  ;;  %v4175_v16 = vld [vmem:[#allocation46_spill] sm:$0xff] }
 0x1b3   : > { %v735_v36 = vadd.f32 %v734_v19, %v4172_v43  ;;  %v4176_v43 = vld [vmem:[#allocation49_spill] sm:$0xff] }
 0x1b4   : > { %v1192_v27 = vadd.f32 %v1150_v63, %v1036_v47 }
 0x1b5   : > { %2374 = vmatmul.msk.f32.gmra.mxu1 %vm384_vm2, %v4167_v55  ;;  %v1313_v45 = vpop.f32.mrf.mxu0 }
 0x1b6   : > { %v3627_v42 = vadd.f32 %v1310_v6, %v1192_v27  ;;  %2408 = vmatmul.msk.f32.gmra.mxu2 %vm384_vm2, %v2521_v59 }
 0x1b7   : > { %2442 = vmatmul.msk.f32.gmra.mxu3 %vm384_vm2, %v4171_v29  ;;  %v2523_v29 = vld [vmem:[%s2607_s30 + $0xd8] sm:$0xff] }
 0x1b8   : > { %2476 = vmatmul.msk.f32.gmra.mxu0 %vm384_vm2, %v4173_v1 }
 0x1b9   : > { %v997_v12 = vpop.f32.mrf.mxu2 }
 0x1ba   : > { %v1153_v60 = vpop.f32.mrf.mxu3  ;;  %v1037_v40 = vadd.f32 %v997_v12, %v735_v36  ;;  %v737_v61 = vpop.f32.mrf.mxu1 }
 0x1bb   : > { %v738_v62 = vadd.f32 %v737_v61, %v4175_v16 }
 0x1bc   : > { %v1193_v55 = vadd.f32 %v1153_v60, %v1037_v40 }
 0x1bd   : > { %2375 = vmatmul.msk.f32.gmra.mxu1 %vm384_vm2, %v4170_v28  ;;  %v1316_v6 = vpop.f32.mrf.mxu0 }
 0x1be   : > { %v3638_v30 = vadd.f32 %v1313_v45, %v1193_v55  ;;  %2409 = vmatmul.msk.f32.gmra.mxu2 %vm384_vm2, %v2522_v32  ;;  %v2524_v32 = vld [vmem:[%s2607_s30 + $0xe0] sm:$0xff] }
 0x1bf   : > { %2443 = vmatmul.msk.f32.gmra.mxu3 %vm384_vm2, %v4174_v24 }
 0x1c0   : > { %2477 = vmatmul.msk.f32.gmra.mxu0 %vm384_vm2, %v3245_v7 }
 0x1c1   : > { %v1000_v63 = vpop.f32.mrf.mxu2 }
 0x1c2   : > { %v1156_v47 = vpop.f32.mrf.mxu3  ;;  %v1038_v19 = vadd.f32 %v1000_v63, %v738_v62  ;;  %v740_v27 = vpop.f32.mrf.mxu1 }
 0x1c3   : > { %v741_v36 = vadd.f32 %v740_v27, %v4176_v43 }
 0x1c4   : > { %v1194_v28 = vadd.f32 %v1156_v47, %v1038_v19 }
 0x1c5   : > { %2376 = vmatmul.msk.f32.gmra.mxu1 %vm384_vm2, %v4173_v1  ;;  %v1319_v45 = vpop.f32.mrf.mxu0 }
 0x1c6   : > { %v3649_v59 = vadd.f32 %v1316_v6, %v1194_v28  ;;  %2410 = vmatmul.msk.f32.gmra.mxu2 %vm384_vm2, %v2523_v29  ;;  %v2525_v28 = vld [vmem:[%s2607_s30 + $0xf0] sm:$0xff] }
 0x1c7   : > { %2444 = vmatmul.msk.f32.gmra.mxu3 %vm384_vm2, %v2727_v54  ;;  %v4177_v54 = vld [vmem:[#allocation52_spill] sm:$0xff] }
 0x1c8   : > { %2478 = vmatmul.msk.f32.gmra.mxu0 %vm384_vm2, %v3261_v0 }
 0x1c9   : > { %v1003_v12 = vpop.f32.mrf.mxu2 }
 0x1ca   : > { %v1159_v60 = vpop.f32.mrf.mxu3  ;;  %v1039_v40 = vadd.f32 %v1003_v12, %v741_v36  ;;  %v743_v61 = vpop.f32.mrf.mxu1  ;;  %v3683_v12 = vld [vmem:[%s3982_s2] ss:$0 sm:$0xff] }
 0x1cb   : > { %v744_v24 = vadd.f32 %v743_v61, %v4177_v54 }
 0x1cc   : > { %v1195_v1 = vadd.f32 %v1159_v60, %v1039_v40  ;;  %v2526_v40 = vld [vmem:[%s2607_s30 + $0xf8] sm:$0xff] }
 0x1cd   : > { %2377 = vmatmul.msk.f32.gmra.mxu1 %vm384_vm2, %v3245_v7  ;;  %v1322_v55 = vpop.f32.mrf.mxu0 }
 0x1ce   : > { %v3660_v6 = vadd.f32 %v1319_v45, %v1195_v1  ;;  %2411 = vmatmul.msk.f32.gmra.mxu2 %vm384_vm2, %v2524_v32 }
 0x1cf   : > { %2445 = vmatmul.msk.f32.gmra.mxu3 %vm384_vm2, %v2763_v2 }
 0x1d0   : > { %2479 = vmatmul.msk.f32.gmra.mxu0 %vm384_vm2, %v3276_v23 }
 0x1d1   : > { %v1006_v16 = vpop.f32.mrf.mxu2 }
 0x1d2   : > { %v1162_v62 = vpop.f32.mrf.mxu3  ;;  %v1040_v63 = vadd.f32 %v1006_v16, %v744_v24  ;;  %v1388_v47 = vpop.f32.mrf.mxu1 }
 0x1d3   : > { %v1484_v2 = vadd.f32 %v1388_v47, %v3249_v18  ;;  %v3690_v18 = vld [vmem:[%s3983_s3] ss:$0 sm:$0xff] }
 0x1d4   : > { %v1196_v7 = vadd.f32 %v1162_v62, %v1040_v63  ;;  %v2527_v63 = vld [vmem:[%s2607_s30 + $0x108] sm:$0xff] }
 0x1d5   : > { %2378 = vmatmul.msk.f32.gmra.mxu1 %vm384_vm2, %v3261_v0  ;;  %v1863_v19 = vpop.f32.mrf.mxu0 }
 0x1d6   : > { %v3671_v27 = vadd.f32 %v1322_v55, %v1196_v7  ;;  %2412 = vmatmul.msk.f32.gmra.mxu2 %vm384_vm2, %v2525_v28 }
 0x1d7   : > { %2446 = vmatmul.msk.f32.gmra.mxu3 %vm384_vm2, %v2818_v49 }
 0x1d8   : > { %2480 = vmatmul.msk.f32.gmra.mxu0 %vm384_vm2, %v3292_v26 }
 0x1d9   : > { %v1544_v45 = vpop.f32.mrf.mxu2 }
 0x1da   : > { %v1704_v29 = vpop.f32.mrf.mxu3  ;;  %v1640_v43 = vadd.f32 %v1544_v45, %v1484_v2  ;;  %v1391_v0 = vpop.f32.mrf.mxu1 }
 0x1db   : > { %v1485_v61 = vadd.f32 %v1391_v0, %v3265_v22 }
 0x1dc   : > { %v1800_v36 = vadd.f32 %v1704_v29, %v1640_v43 }
 0x1dd   : > { %2379 = vmatmul.msk.f32.gmra.mxu1 %vm384_vm2, %v3276_v23  ;;  %v1866_v49 = vpop.f32.mrf.mxu0 }
 0x1de   : > { %v1959_v60 = vadd.f32 %v1863_v19, %v1800_v36  ;;  %2413 = vmatmul.msk.f32.gmra.mxu2 %vm384_vm2, %v2526_v40  ;;  %v4178_v36 = vld [vmem:[#allocation54_spill] sm:$0xff] }
 0x1df   : > { %2447 = vmatmul.msk.f32.gmra.mxu3 %vm384_vm2, %v2863_v58 }
 0x1e0   : > { %v1995_v1 = vmul.f32 %v3683_v12, %v1959_v60  ;;  %2481 = vmatmul.msk.f32.gmra.mxu0 %vm384_vm2, %v3307_v10 }
 0x1e1   : > { %v1547_v23 = vpop.f32.mrf.mxu2 }
 0x1e2   : > { %v1707_v55 = vpop.f32.mrf.mxu3  ;;  %v2031_v32 = vadd.f32 %v3690_v18, %v1995_v1  ;;  %v1641_v54 = vadd.f32 %v1547_v23, %v1485_v61  ;;  %v1394_v24 = vpop.f32.mrf.mxu1 }
 0x1e3   : > { %v1486_v47 = vadd.f32 %v1394_v24, %v3280_v48  ;;  %v2529_v24 = vld [vmem:[%s2607_s30 + $0x120] sm:$0xff] }
 0x1e4   : > { %v2063_v58 = vmax.f32 %v2031_v32, 0.0  ;;  %v1801_v22 = vadd.f32 %v1707_v55, %v1641_v54 }
 0x1e5   : > { %2380 = vmatmul.msk.f32.gmra.mxu1 %vm384_vm2, %v3292_v26  ;;  %v1869_v16 = vpop.f32.mrf.mxu0 }
 0x1e6   : > { %2096 = vst.msk [vmem:[%s3705_s22] sm:$0xff] %vm2095_vm4, %v2063_v58  ;;  %v1960_v62 = vadd.f32 %v1866_v49, %v1801_v22  ;;  %2414 = vmatmul.msk.f32.gmra.mxu2 %vm384_vm2, %v2527_v63  ;;  %v4179_v58 = vld [vmem:[#allocation21_spill] sm:$0xff] }
 0x1e7   : > { %2448 = vmatmul.msk.f32.gmra.mxu3 %vm384_vm2, %v4114_v17  ;;  %v2528_v17 = vld [vmem:[%s2607_s30 + $0x110] sm:$0xff] }
 0x1e8   : > { %v1996_v7 = vmul.f32 %v3683_v12, %v1960_v62  ;;  %2482 = vmatmul.msk.f32.gmra.mxu0 %vm384_vm2, %v3323_v57  ;;  %v4180_v62 = vld [vmem:[#allocation2_spill] sm:$0xff] }
 0x1e9   : > { %v1550_v26 = vpop.f32.mrf.mxu2 }
 0x1ea   : > { %v1710_v19 = vpop.f32.mrf.mxu3  ;;  %v2032_v28 = vadd.f32 %v3690_v18, %v1996_v7  ;;  %v1642_v2 = vadd.f32 %v1550_v26, %v1486_v47  ;;  %v1397_v45 = vpop.f32.mrf.mxu1 }
 0x1eb   : > { %v1487_v49 = vadd.f32 %v1397_v45, %v4178_v36  ;;  %v2530_v45 = vld [vmem:[%s2607_s30 + $0x128] sm:$0xff] }
 0x1ec   : > { %v2064_v29 = vmax.f32 %v2032_v28, 0.0  ;;  %v1802_v43 = vadd.f32 %v1710_v19, %v1642_v2 }
 0x1ed   : > { %2381 = vmatmul.msk.f32.gmra.mxu1 %vm384_vm2, %v3307_v10  ;;  %v1872_v0 = vpop.f32.mrf.mxu0 }
 0x1ee   : > { %2097 = vst.msk [vmem:[%s3705_s22 + $0x8] sm:$0xff] %vm2095_vm4, %v2064_v29  ;;  %v1961_v48 = vadd.f32 %v1869_v16, %v1802_v43  ;;  %2415 = vmatmul.msk.f32.gmra.mxu2 %vm384_vm2, %v2528_v17  ;;  %v4181_v29 = vld [vmem:[#allocation9_spill] sm:$0xff] }
 0x1ef   : > { %2449 = vmatmul.msk.f32.gmra.mxu3 %vm384_vm2, %v2955_v13  ;;  %v4182_v43 = vld [vmem:[#allocation29_spill] sm:$0xff] }
 0x1f0   : > { %v1997_v60 = vmul.f32 %v3683_v12, %v1961_v48  ;;  %2483 = vmatmul.msk.f32.gmra.mxu0 %vm384_vm2, %v3338_v51 }
 0x1f1   : > { %v1553_v10 = vpop.f32.mrf.mxu2 }
 0x1f2   : > { %v1713_v40 = vpop.f32.mrf.mxu3  ;;  %v2033_v61 = vadd.f32 %v3690_v18, %v1997_v60  ;;  %v1643_v1 = vadd.f32 %v1553_v10, %v1487_v49  ;;  %v1400_v23 = vpop.f32.mrf.mxu1 }
 0x1f3   : > { %v1488_v22 = vadd.f32 %v1400_v23, %v4179_v58  ;;  %v2531_v23 = vld [vmem:[%s2607_s30 + $0x138] sm:$0xff] }
 0x1f4   : > { %v2065_v55 = vmax.f32 %v2033_v61, 0.0  ;;  %v1803_v32 = vadd.f32 %v1713_v40, %v1643_v1 }
 0x1f5   : > { %2382 = vmatmul.msk.f32.gmra.mxu1 %vm384_vm2, %v3323_v57  ;;  %v1875_v54 = vpop.f32.mrf.mxu0 }
 0x1f6   : > { %2098 = vst.msk [vmem:[%s3705_s22 + $0x10] sm:$0xff] %vm2095_vm4, %v2065_v55  ;;  %v1962_v13 = vadd.f32 %v1872_v0, %v1803_v32  ;;  %2416 = vmatmul.msk.f32.gmra.mxu2 %vm384_vm2, %v2529_v24  ;;  %v4183_v55 = vld [vmem:[#allocation25_spill] sm:$0xff] }
 0x1f7   : > { %2450 = vmatmul.msk.f32.gmra.mxu3 %vm384_vm2, %v4120_v34 }
 0x1f8   : > { %v1998_v16 = vmul.f32 %v3683_v12, %v1962_v13  ;;  %2484 = vmatmul.msk.f32.gmra.mxu0 %vm384_vm2, %v4180_v62  ;;  %v4184_v13 = vld [vmem:[#allocation3_spill] sm:$0xff] }
 0x1f9   : > { %v1556_v57 = vpop.f32.mrf.mxu2 }
 0x1fa   : > { %v1716_v63 = vpop.f32.mrf.mxu3  ;;  %v2034_v47 = vadd.f32 %v3690_v18, %v1998_v16  ;;  %v1644_v7 = vadd.f32 %v1556_v57, %v1488_v22  ;;  %v1403_v26 = vpop.f32.mrf.mxu1 }
 0x1fb   : > { %v1489_v0 = vadd.f32 %v1403_v26, %v4182_v43  ;;  %v4185_v26 = vld [vmem:[#allocation16_spill] sm:$0xff] }
 0x1fc   : > { %v2066_v19 = vmax.f32 %v2034_v47, 0.0  ;;  %v1804_v28 = vadd.f32 %v1716_v63, %v1644_v7  ;;  %v2532_v7 = vld [vmem:[%s2607_s30 + $0x140] sm:$0xff] }
 0x1fd   : > { %2383 = vmatmul.msk.f32.gmra.mxu1 %vm384_vm2, %v3338_v51  ;;  %v1878_v2 = vpop.f32.mrf.mxu0 }
 0x1fe   : > { %2099 = vst.msk [vmem:[%s3705_s22 + $0x18] sm:$0xff] %vm2095_vm4, %v2066_v19  ;;  %v1963_v34 = vadd.f32 %v1875_v54, %v1804_v28  ;;  %2417 = vmatmul.msk.f32.gmra.mxu2 %vm384_vm2, %v2530_v45  ;;  %v4186_v19 = vld [vmem:[#allocation31_spill] sm:$0xff] }
 0x1ff   : > { %2451 = vmatmul.msk.f32.gmra.mxu3 %vm384_vm2, %v4181_v29 }
 0x200   : > { %v1999_v48 = vmul.f32 %v3683_v12, %v1963_v34  ;;  %2485 = vmatmul.msk.f32.gmra.mxu0 %vm384_vm2, %v3369_v39 }
 0x201   : > { %v1559_v51 = vpop.f32.mrf.mxu2 }
 0x202   : > { %v1719_v17 = vpop.f32.mrf.mxu3  ;;  %v2035_v36 = vadd.f32 %v3690_v18, %v1999_v48  ;;  %v1645_v49 = vadd.f32 %v1559_v51, %v1489_v0  ;;  %v1406_v60 = vpop.f32.mrf.mxu1 }
 0x203   : > { %v1490_v32 = vadd.f32 %v1406_v60, %v4183_v55 }
 0x204   : > { %v2067_v10 = vmax.f32 %v2035_v36, 0.0  ;;  %v1805_v40 = vadd.f32 %v1719_v17, %v1645_v49  ;;  %v2533_v36 = vld [vmem:[%s2607_s30 + $0x150] sm:$0xff]  ;;  %v4187_v49 = vld [vmem:[#allocation5_spill] sm:$0xff] }
 0x205   : > { %2384 = vmatmul.msk.f32.gmra.mxu1 %vm384_vm2, %v4180_v62  ;;  %v1881_v61 = vpop.f32.mrf.mxu0 }
 0x206   : > { %2100 = vst.msk [vmem:[%s3705_s22 + $0x20] sm:$0xff] %vm2095_vm4, %v2067_v10  ;;  %v1964_v1 = vadd.f32 %v1878_v2, %v1805_v40  ;;  %2418 = vmatmul.msk.f32.gmra.mxu2 %vm384_vm2, %v2531_v23  ;;  %v4188_v40 = vld [vmem:[#allocation13_spill] sm:$0xff] }
 0x207   : > { %2452 = vmatmul.msk.f32.gmra.mxu3 %vm384_vm2, %v4128_v21 }
 0x208   : > { %v2000_v54 = vmul.f32 %v3683_v12, %v1964_v1  ;;  %2486 = vmatmul.msk.f32.gmra.mxu0 %vm384_vm2, %v4184_v13 }
 0x209   : > { %v1562_v24 = vpop.f32.mrf.mxu2 }
 0x20a   : > { %v1722_v58 = vpop.f32.mrf.mxu3  ;;  %v2036_v22 = vadd.f32 %v3690_v18, %v2000_v54  ;;  %v1646_v16 = vadd.f32 %v1562_v24, %v1490_v32  ;;  %v1409_v62 = vpop.f32.mrf.mxu1 }
 0x20b   : > { %v1491_v28 = vadd.f32 %v1409_v62, %v4186_v19 }
 0x20c   : > { %v2068_v57 = vmax.f32 %v2036_v22, 0.0  ;;  %v1806_v63 = vadd.f32 %v1722_v58, %v1646_v16  ;;  %v2534_v58 = vld [vmem:[%s2607_s30 + $0x158] sm:$0xff]  ;;  %v4189_v22 = vld [vmem:[#allocation24_spill] sm:$0xff]  ;;  %v4190_v16 = vld [vmem:[#allocation10_spill] sm:$0xff] }
 0x20d   : > { %2385 = vmatmul.msk.f32.gmra.mxu1 %vm384_vm2, %v3369_v39  ;;  %v1884_v47 = vpop.f32.mrf.mxu0 }
 0x20e   : > { %2101 = vst.msk [vmem:[%s3705_s22 + $0x28] sm:$0xff] %vm2095_vm4, %v2068_v57  ;;  %v1965_v21 = vadd.f32 %v1881_v61, %v1806_v63  ;;  %2419 = vmatmul.msk.f32.gmra.mxu2 %vm384_vm2, %v2532_v7 }
 0x20f   : > { %2453 = vmatmul.msk.f32.gmra.mxu3 %vm384_vm2, %v4185_v26 }
 0x210   : > { %v2001_v2 = vmul.f32 %v3683_v12, %v1965_v21  ;;  %2487 = vmatmul.msk.f32.gmra.mxu0 %vm384_vm2, %v3400_v20 }
 0x211   : > { %v1565_v39 = vpop.f32.mrf.mxu2 }
 0x212   : > { %v1725_v34 = vpop.f32.mrf.mxu3  ;;  %v2037_v45 = vadd.f32 %v3690_v18, %v2001_v2  ;;  %v1647_v29 = vadd.f32 %v1565_v39, %v1491_v28  ;;  %v1412_v43 = vpop.f32.mrf.mxu1  ;;  %v2535_v39 = vld [vmem:[%s2607_s30 + $0x168] sm:$0xff] }
 0x213   : > { %v1492_v60 = vadd.f32 %v1412_v43, %v4187_v49 }
 0x214   : > { %v2069_v0 = vmax.f32 %v2037_v45, 0.0  ;;  %v1807_v48 = vadd.f32 %v1725_v34, %v1647_v29  ;;  %v4191_v34 = vld [vmem:[#allocation30_spill] sm:$0xff] }
 0x215   : > { %2386 = vmatmul.msk.f32.gmra.mxu1 %vm384_vm2, %v4184_v13  ;;  %v1887_v51 = vpop.f32.mrf.mxu0  ;;  %v4192_v45 = vld [vmem:[#allocation6_spill] sm:$0xff] }
 0x216   : > { %2102 = vst.msk [vmem:[%s3705_s22 + $0x30] sm:$0xff] %vm2095_vm4, %v2069_v0  ;;  %v1966_v17 = vadd.f32 %v1884_v47, %v1807_v48  ;;  %2420 = vmatmul.msk.f32.gmra.mxu2 %vm384_vm2, %v2533_v36 }
 0x217   : > { %2454 = vmatmul.msk.f32.gmra.mxu3 %vm384_vm2, %v4136_v50 }
 0x218   : > { %v2002_v10 = vmul.f32 %v3683_v12, %v1966_v17  ;;  %2488 = vmatmul.msk.f32.gmra.mxu0 %vm384_vm2, %v4188_v40 }
 0x219   : > { %v1568_v61 = vpop.f32.mrf.mxu2 }
 0x21a   : > { %v1728_v1 = vpop.f32.mrf.mxu3  ;;  %v2038_v23 = vadd.f32 %v3690_v18, %v2002_v10  ;;  %v1648_v55 = vadd.f32 %v1568_v61, %v1492_v60  ;;  %v1415_v32 = vpop.f32.mrf.mxu1  ;;  %v2536_v61 = vld [vmem:[%s2607_s30 + $0x170] sm:$0xff] }
 0x21b   : > { %v1493_v62 = vadd.f32 %v1415_v32, %v4190_v16 }
 0x21c   : > { %v2070_v54 = vmax.f32 %v2038_v23, 0.0  ;;  %v1808_v13 = vadd.f32 %v1728_v1, %v1648_v55  ;;  %v4193_v1 = vld [vmem:[#allocation33_spill] sm:$0xff]  ;;  %v4194_v23 = vld [vmem:[#allocation11_spill] sm:$0xff] }
 0x21d   : > { %2387 = vmatmul.msk.f32.gmra.mxu1 %vm384_vm2, %v3400_v20  ;;  %v1890_v24 = vpop.f32.mrf.mxu0 }
 0x21e   : > { %2103 = vst.msk [vmem:[%s3705_s22 + $0x38] sm:$0xff] %vm2095_vm4, %v2070_v54  ;;  %v1967_v50 = vadd.f32 %v1887_v51, %v1808_v13  ;;  %2421 = vmatmul.msk.f32.gmra.mxu2 %vm384_vm2, %v2534_v58  ;;  %v4195_v54 = vld [vmem:[#allocation14_spill] sm:$0xff]  ;;  %v1358_v13 = vrot.slane %v3442_v38, 2 }
 0x21f   : > { %2455 = vmatmul.msk.f32.gmra.mxu3 %vm384_vm2, %v4189_v22 }
 0x220   : > { %v2003_v57 = vmul.f32 %v3683_v12, %v1967_v50  ;;  %2489 = vmatmul.msk.f32.gmra.mxu0 %vm384_vm2, %v3431_v41 }
 0x221   : > { %v1571_v20 = vpop.f32.mrf.mxu2 }
 0x222   : > { %v1731_v63 = vpop.f32.mrf.mxu3  ;;  %v2039_v47 = vadd.f32 %v3690_v18, %v2003_v57  ;;  %v1649_v21 = vadd.f32 %v1571_v20, %v1493_v62  ;;  %v1418_v7 = vpop.f32.mrf.mxu1 }
 0x223   : > { %v1494_v29 = vadd.f32 %v1418_v7, %v4192_v45 }
 0x224   : > { %v2071_v26 = vmax.f32 %v2039_v47, 0.0  ;;  %v1809_v19 = vadd.f32 %v1731_v63, %v1649_v21  ;;  %v4196_v21 = vld [vmem:[#allocation17_spill] sm:$0xff] }
 0x225   : > { %2388 = vmatmul.msk.f32.gmra.mxu1 %vm384_vm2, %v4188_v40  ;;  %v1893_v28 = vpop.f32.mrf.mxu0 }
 0x226   : > { %2104 = vst.msk [vmem:[%s3705_s22 + $0x40] sm:$0xff] %vm2095_vm4, %v2071_v26  ;;  %v1968_v2 = vadd.f32 %v1890_v24, %v1809_v19  ;;  %2422 = vmatmul.msk.f32.gmra.mxu2 %vm384_vm2, %v2535_v39 }
 0x227   : > { %2456 = vmatmul.msk.f32.gmra.mxu3 %vm384_vm2, %v4191_v34 }
 0x228   : > { %v2004_v43 = vmul.f32 %v3683_v12, %v1968_v2  ;;  %2490 = vmatmul.msk.f32.gmra.mxu0 %vm384_vm2, %v3455_v4 }
 0x229   : > { %v1574_v0 = vpop.f32.mrf.mxu2 }
 0x22a   : > { %v1734_v48 = vpop.f32.mrf.mxu3  ;;  %v2040_v51 = vadd.f32 %v3690_v18, %v2004_v43  ;;  %v1650_v17 = vadd.f32 %v1574_v0, %v1494_v29  ;;  %v1421_v36 = vpop.f32.mrf.mxu1  ;;  %v249_v43 = vld [vmem:[%s2607_s30 + $0x198] sm:$0xff]  ;;  %v250_v0 = vld [vmem:[%s2607_s30 + $0x1a0] sm:$0xff] }
 0x22b   : > { %v1495_v55 = vadd.f32 %v1421_v36, %v4194_v23  ;;  %v4197_v36 = vld [vmem:[#allocation20_spill] sm:$0xff] }
 0x22c   : > { %v2072_v49 = vmax.f32 %v2040_v51, 0.0  ;;  %v1810_v60 = vadd.f32 %v1734_v48, %v1650_v17  ;;  %v1674_v17 = vrot.slane %v250_v0, 1 }
 0x22d   : > { %2389 = vmatmul.msk.f32.gmra.mxu1 %vm384_vm2, %v3431_v41  ;;  %v1896_v10 = vpop.f32.mrf.mxu0  ;;  %v1357_v41 = vrot.slane %v4195_v54, 2 }
 0x22e   : > { %2105 = vst.msk [vmem:[%s3705_s22 + $0x48] sm:$0xff] %vm2095_vm4, %v2072_v49  ;;  %v1969_v40 = vadd.f32 %v1893_v28, %v1810_v60  ;;  %2423 = vmatmul.msk.f32.gmra.mxu2 %vm384_vm2, %v2536_v61  ;;  %v1360_v28 = vrot.slane %v3469_v14, 2  ;;  %v1673_v14 = vrot.slane %v249_v43, 1  ;;  %v1833_v61 = vrot.slane %v250_v0, 2 }
 0x22f   : > { %2457 = vmatmul.msk.f32.gmra.mxu3 %vm384_vm2, %v4193_v1  ;;  %v1359_v63 = vsel %vm746_vm3, %v1357_v41, %v1358_v13 }
 0x230   : > { %v2005_v32 = vmul.f32 %v3683_v12, %v1969_v40  ;;  %2491 = vmatmul.msk.f32.gmra.mxu0 %vm384_vm2, %v3477_v46  ;;  %v1361_v48 = vsel %vm746_vm3, %v1358_v13, %v1360_v28  ;;  %v1832_v40 = vrot.slane %v249_v43, 2 }
 0x231   : > { %v1577_v24 = vpop.f32.mrf.mxu2 }
 0x232   : > { %v1737_v50 = vpop.f32.mrf.mxu3  ;;  %v2041_v58 = vadd.f32 %v3690_v18, %v2005_v32  ;;  %v1651_v22 = vadd.f32 %v1577_v24, %v1495_v55  ;;  %v1424_v16 = vpop.f32.mrf.mxu1  ;;  %v1834_v13 = vsel %vm746_vm3, %v1832_v40, %v1833_v61 }
 0x233   : > { %v1496_v7 = vadd.f32 %v1424_v16, %v4196_v21 }
 0x234   : > { %v2073_v62 = vmax.f32 %v2041_v58, 0.0  ;;  %v1811_v57 = vadd.f32 %v1737_v50, %v1651_v22 }
 0x235   : > { %2390 = vmatmul.msk.f32.gmra.mxu1 %vm384_vm2, %v3455_v4  ;;  %v1899_v20 = vpop.f32.mrf.mxu0 }
 0x236   : > { %2106 = vst.msk [vmem:[%s3705_s22 + $0x50] sm:$0xff] %vm2095_vm4, %v2073_v62  ;;  %v1970_v47 = vadd.f32 %v1896_v10, %v1811_v57  ;;  %2424 = vmatmul.msk.f32.gmra.mxu2 %vm384_vm2, %v4195_v54  ;;  %v251_v54 = vld [vmem:[%s2607_s30 + $0x1a8] sm:$0x3] }
 0x237   : > { %2458 = vmatmul.msk.f32.gmra.mxu3 %vm384_vm2, %v3460_v11  ;;  %v1676_v50 = vrot.slane %v251_v54, 1  ;;  %v1835_v57 = vrot.slane %v251_v54, 2 }
 0x238   : > { %v2006_v26 = vmul.f32 %v3683_v12, %v1970_v47  ;;  %2492 = vmatmul.msk.f32.gmra.mxu0 %vm384_vm2, %v1359_v63 }
 0x239   : > { %v1580_v4 = vpop.f32.mrf.mxu2  ;;  %v1677_v21 = vsel %vm301_vm1, %v1674_v17, %v1676_v50 }
 0x23a   : > { %v1740_v19 = vpop.f32.mrf.mxu3  ;;  %v2042_v2 = vadd.f32 %v3690_v18, %v2006_v26  ;;  %v1652_v39 = vadd.f32 %v1580_v4, %v1496_v7  ;;  %v1427_v34 = vpop.f32.mrf.mxu1 }
 0x23b   : > { %v1497_v49 = vadd.f32 %v1427_v34, %v4197_v36 }
 0x23c   : > { %v2074_v45 = vmax.f32 %v2042_v2, 0.0  ;;  %v1812_v29 = vadd.f32 %v1740_v19, %v1652_v39 }
 0x23d   : > { %2391 = vmatmul.msk.f32.gmra.mxu1 %vm384_vm2, %v3477_v46  ;;  %v1902_v11 = vpop.f32.mrf.mxu0 }
 0x23e   : > { %2107 = vst.msk [vmem:[%s3705_s22 + $0x58] sm:$0xff] %vm2095_vm4, %v2074_v45  ;;  %v1971_v51 = vadd.f32 %v1899_v20, %v1812_v29  ;;  %2425 = vmatmul.msk.f32.gmra.mxu2 %vm384_vm2, %v3442_v38 }
 0x23f   : > { %2459 = vmatmul.msk.f32.gmra.mxu3 %vm384_vm2, %v3482_v15  ;;  %v1675_v15 = vsel %vm301_vm1, %v1673_v14, %v1674_v17 }
 0x240   : > { %v2007_v60 = vmul.f32 %v3683_v12, %v1971_v51  ;;  %2493 = vmatmul.msk.f32.gmra.mxu0 %vm384_vm2, %v1361_v48 }
 0x241   : > { %v1583_v46 = vpop.f32.mrf.mxu2 }
 0x242   : > { %v1743_v10 = vpop.f32.mrf.mxu3  ;;  %v2043_v1 = vadd.f32 %v3690_v18, %v2007_v60  ;;  %v1653_v38 = vadd.f32 %v1583_v46, %v1497_v49  ;;  %v1430_v23 = vpop.f32.mrf.mxu1 }
 0x243   : > { %v1498_v58 = vadd.f32 %v1430_v23, %v3484_v8  ;;  %v1836_v8 = vsel %vm746_vm3, %v1833_v61, %v1835_v57 }
 0x244   : > { %v2075_v55 = vmax.f32 %v2043_v1, 0.0  ;;  %v1813_v32 = vadd.f32 %v1743_v10, %v1653_v38 }
 0x245   : > { %2392 = vmatmul.msk.f32.gmra.mxu1 %vm384_vm2, %v1359_v63  ;;  %v1905_v41 = vpop.f32.mrf.mxu0 }
 0x246   : > { %2108 = vst.msk [vmem:[%s3705_s22 + $0x60] sm:$0xff] %vm2095_vm4, %v2075_v55  ;;  %v1972_v24 = vadd.f32 %v1902_v11, %v1813_v32  ;;  %2426 = vmatmul.msk.f32.gmra.mxu2 %vm384_vm2, %v249_v43 }
 0x247   : > { %2460 = vmatmul.msk.f32.gmra.mxu3 %vm384_vm2, %v1675_v15 }
 0x248   : > { %v2008_v22 = vmul.f32 %v3683_v12, %v1972_v24  ;;  %2494 = vmatmul.msk.f32.gmra.mxu0 %vm384_vm2, %v1834_v13 }
 0x249   : > { %v1586_v16 = vpop.f32.mrf.mxu2 }
 0x24a   : > { %v1746_v62 = vpop.f32.mrf.mxu3  ;;  %v2044_v20 = vadd.f32 %v3690_v18, %v2008_v22  ;;  %v1654_v63 = vadd.f32 %v1586_v16, %v1498_v58  ;;  %v1433_v47 = vpop.f32.mrf.mxu1 }
 0x24b   : > { %v1499_v28 = vadd.f32 %v1433_v47, %v3495_v31 }
 0x24c   : > { %v2076_v7 = vmax.f32 %v2044_v20, 0.0  ;;  %v1814_v26 = vadd.f32 %v1746_v62, %v1654_v63 }
 0x24d   : > { %2393 = vmatmul.msk.f32.gmra.mxu1 %vm384_vm2, %v1361_v48  ;;  %v1908_v4 = vpop.f32.mrf.mxu0 }
 0x24e   : > { %2109 = vst.msk [vmem:[%s3705_s22 + $0x68] sm:$0xff] %vm2095_vm4, %v2076_v7  ;;  %v1973_v19 = vadd.f32 %v1905_v41, %v1814_v26  ;;  %2427 = vmatmul.msk.f32.gmra.mxu2 %vm384_vm2, %v250_v0 }
 0x24f   : > { %2461 = vmatmul.msk.f32.gmra.mxu3 %vm384_vm2, %v1677_v21 }
 0x250   : > { %v2009_v2 = vmul.f32 %v3683_v12, %v1973_v19  ;;  %2495 = vmatmul.msk.f32.gmra.mxu0 %vm384_vm2, %v1836_v8 }
 0x251   : > { %v1589_v39 = vpop.f32.mrf.mxu2 }
 0x252   : > { %v1749_v34 = vpop.f32.mrf.mxu3  ;;  %v2045_v45 = vadd.f32 %v3690_v18, %v2009_v2  ;;  %v1655_v29 = vadd.f32 %v1589_v39, %v1499_v28  ;;  %v1436_v43 = vpop.f32.mrf.mxu1 }
 0x253   : > { %v1500_v14 = vadd.f32 %v1436_v43, %v3506_v9 }
 0x254   : > { %v2077_v11 = vmax.f32 %v2045_v45, 0.0  ;;  %v1815_v48 = vadd.f32 %v1749_v34, %v1655_v29 }
 0x255   : > { %v1911_v51 = vpop.f32.mrf.mxu0 }
 0x256   : > { %2110 = vst.msk [vmem:[%s3705_s22 + $0x70] sm:$0xff] %vm2095_vm4, %v2077_v11  ;;  %v1974_v0 = vadd.f32 %v1908_v4, %v1815_v48 }
 0x258   : > { %v2010_v31 = vmul.f32 %v3683_v12, %v1974_v0 }
 0x259   : > { %v1592_v17 = vpop.f32.mrf.mxu2 }
 0x25a   : > { %v1752_v36 = vpop.f32.mrf.mxu3  ;;  %v2046_v49 = vadd.f32 %v3690_v18, %v2010_v31  ;;  %v1656_v60 = vadd.f32 %v1592_v17, %v1500_v14  ;;  %v1439_v46 = vpop.f32.mrf.mxu1 }
 0x25b   : > { %v1501_v38 = vadd.f32 %v1439_v46, %v3517_v37 }
 0x25c   : > { %v2078_v10 = vmax.f32 %v2046_v49, 0.0  ;;  %v1816_v40 = vadd.f32 %v1752_v36, %v1656_v60 }
 0x25d   : > { %v1914_v61 = vpop.f32.mrf.mxu0 }
 0x25e   : > { %2111 = vst.msk [vmem:[%s3705_s22 + $0x78] sm:$0xff] %vm2095_vm4, %v2078_v10  ;;  %v1975_v1 = vadd.f32 %v1911_v51, %v1816_v40 }
 0x260   : > { %v2011_v23 = vmul.f32 %v3683_v12, %v1975_v1 }
 0x261   : > { %v1595_v9 = vpop.f32.mrf.mxu2 }
 0x262   : > { %v1755_v15 = vpop.f32.mrf.mxu3  ;;  %v2047_v55 = vadd.f32 %v3690_v18, %v2011_v23  ;;  %v1657_v32 = vadd.f32 %v1595_v9, %v1501_v38  ;;  %v1442_v54 = vpop.f32.mrf.mxu1 }
 0x263   : > { %v1502_v58 = vadd.f32 %v1442_v54, %v3528_v5 }
 0x264   : > { %v2079_v41 = vmax.f32 %v2047_v55, 0.0  ;;  %v1817_v13 = vadd.f32 %v1755_v15, %v1657_v32 }
 0x265   : > { %v1917_v24 = vpop.f32.mrf.mxu0 }
 0x266   : > { %2112 = vst.msk [vmem:[%s3705_s22 + $0x80] sm:$0xff] %vm2095_vm4, %v2079_v41  ;;  %v1976_v50 = vadd.f32 %v1914_v61, %v1817_v13 }
 0x268   : > { %v2012_v22 = vmul.f32 %v3683_v12, %v1976_v50 }
 0x269   : > { %v1598_v37 = vpop.f32.mrf.mxu2 }
 0x26a   : > { %v1758_v16 = vpop.f32.mrf.mxu3  ;;  %v2048_v62 = vadd.f32 %v3690_v18, %v2012_v22  ;;  %v1658_v57 = vadd.f32 %v1598_v37, %v1502_v58  ;;  %v1445_v20 = vpop.f32.mrf.mxu1 }
 0x26b   : > { %v1503_v26 = vadd.f32 %v1445_v20, %v3539_v52 }
 0x26c   : > { %v2080_v63 = vmax.f32 %v2048_v62, 0.0  ;;  %v1818_v47 = vadd.f32 %v1758_v16, %v1658_v57 }
 0x26d   : > { %v1920_v21 = vpop.f32.mrf.mxu0 }
 0x26e   : > { %2113 = vst.msk [vmem:[%s3705_s22 + $0x88] sm:$0xff] %vm2095_vm4, %v2080_v63  ;;  %v1977_v7 = vadd.f32 %v1917_v24, %v1818_v47 }
 0x270   : > { %v2013_v4 = vmul.f32 %v3683_v12, %v1977_v7 }
 0x271   : > { %v1601_v5 = vpop.f32.mrf.mxu2 }
 0x272   : > { %v1761_v8 = vpop.f32.mrf.mxu3  ;;  %v2049_v19 = vadd.f32 %v3690_v18, %v2013_v4  ;;  %v1659_v28 = vadd.f32 %v1601_v5, %v1503_v26  ;;  %v1448_v2 = vpop.f32.mrf.mxu1 }
 0x273   : > { %v1504_v43 = vadd.f32 %v1448_v2, %v3550_v33 }
 0x274   : > { %v2081_v39 = vmax.f32 %v2049_v19, 0.0  ;;  %v1819_v34 = vadd.f32 %v1761_v8, %v1659_v28 }
 0x275   : > { %v1923_v45 = vpop.f32.mrf.mxu0 }
 0x276   : > { %2114 = vst.msk [vmem:[%s3705_s22 + $0x90] sm:$0xff] %vm2095_vm4, %v2081_v39  ;;  %v1978_v29 = vadd.f32 %v1920_v21, %v1819_v34 }
 0x278   : > { %v2014_v11 = vmul.f32 %v3683_v12, %v1978_v29 }
 0x279   : > { %v1604_v52 = vpop.f32.mrf.mxu2 }
 0x27a   : > { %v1764_v48 = vpop.f32.mrf.mxu3  ;;  %v2050_v51 = vadd.f32 %v3690_v18, %v2014_v11  ;;  %v1660_v0 = vadd.f32 %v1604_v52, %v1504_v43  ;;  %v1451_v14 = vpop.f32.mrf.mxu1 }
 0x27b   : > { %v1505_v60 = vadd.f32 %v1451_v14, %v3561_v3 }
 0x27c   : > { %v2082_v31 = vmax.f32 %v2050_v51, 0.0  ;;  %v1820_v17 = vadd.f32 %v1764_v48, %v1660_v0 }
 0x27d   : > { %v1926_v36 = vpop.f32.mrf.mxu0 }
 0x27e   : > { %2115 = vst.msk [vmem:[%s3705_s22 + $0x98] sm:$0xff] %vm2095_vm4, %v2082_v31  ;;  %v1979_v49 = vadd.f32 %v1923_v45, %v1820_v17 }
 0x280   : > { %v2015_v46 = vmul.f32 %v3683_v12, %v1979_v49 }
 0x281   : > { %v1607_v33 = vpop.f32.mrf.mxu2 }
 0x282   : > { %v1767_v10 = vpop.f32.mrf.mxu3  ;;  %v2051_v40 = vadd.f32 %v3690_v18, %v2015_v46  ;;  %v1661_v61 = vadd.f32 %v1607_v33, %v1505_v60  ;;  %v1454_v1 = vpop.f32.mrf.mxu1 }
 0x283   : > { %v1506_v55 = vadd.f32 %v1454_v1, %v3572_v56 }
 0x284   : > { %v2083_v38 = vmax.f32 %v2051_v40, 0.0  ;;  %v1821_v23 = vadd.f32 %v1767_v10, %v1661_v61 }
 0x285   : > { %v1929_v9 = vpop.f32.mrf.mxu0 }
 0x286   : > { %2116 = vst.msk [vmem:[%s3705_s22 + $0xa0] sm:$0xff] %vm2095_vm4, %v2083_v38  ;;  %v1980_v15 = vadd.f32 %v1926_v36, %v1821_v23 }
 0x288   : > { %v2016_v32 = vmul.f32 %v3683_v12, %v1980_v15 }
 0x289   : > { %v1610_v3 = vpop.f32.mrf.mxu2 }
 0x28a   : > { %v1770_v54 = vpop.f32.mrf.mxu3  ;;  %v2052_v41 = vadd.f32 %v3690_v18, %v2016_v32  ;;  %v1662_v13 = vadd.f32 %v1610_v3, %v1506_v55  ;;  %v1457_v24 = vpop.f32.mrf.mxu1 }
 0x28b   : > { %v1507_v16 = vadd.f32 %v1457_v24, %v3583_v25 }
 0x28c   : > { %v2084_v50 = vmax.f32 %v2052_v41, 0.0  ;;  %v1822_v58 = vadd.f32 %v1770_v54, %v1662_v13 }
 0x28d   : > { %v1932_v22 = vpop.f32.mrf.mxu0 }
 0x28e   : > { %2117 = vst.msk [vmem:[%s3705_s22 + $0xa8] sm:$0xff] %vm2095_vm4, %v2084_v50  ;;  %v1981_v37 = vadd.f32 %v1929_v9, %v1822_v58 }
 0x290   : > { %v2017_v62 = vmul.f32 %v3683_v12, %v1981_v37 }
 0x291   : > { %v1613_v56 = vpop.f32.mrf.mxu2 }
 0x292   : > { %v1773_v57 = vpop.f32.mrf.mxu3  ;;  %v2053_v20 = vadd.f32 %v3690_v18, %v2017_v62  ;;  %v1663_v63 = vadd.f32 %v1613_v56, %v1507_v16  ;;  %v1460_v47 = vpop.f32.mrf.mxu1 }
 0x293   : > { %v1508_v5 = vadd.f32 %v1460_v47, %v3594_v44 }
 0x294   : > { %v2085_v21 = vmax.f32 %v2053_v20, 0.0  ;;  %v1823_v7 = vadd.f32 %v1773_v57, %v1663_v63 }
 0x295   : > { %v1935_v26 = vpop.f32.mrf.mxu0 }
 0x296   : > { %2118 = vst.msk [vmem:[%s3705_s22 + $0xb0] sm:$0xff] %vm2095_vm4, %v2085_v21  ;;  %v1982_v4 = vadd.f32 %v1932_v22, %v1823_v7 }
 0x298   : > { %v2018_v8 = vmul.f32 %v3683_v12, %v1982_v4 }
 0x299   : > { %v1616_v25 = vpop.f32.mrf.mxu2 }
 0x29a   : > { %v1776_v19 = vpop.f32.mrf.mxu3  ;;  %v2054_v28 = vadd.f32 %v3690_v18, %v2018_v8  ;;  %v1664_v2 = vadd.f32 %v1616_v25, %v1508_v5  ;;  %v1463_v39 = vpop.f32.mrf.mxu1 }
 0x29b   : > { %v1509_v11 = vadd.f32 %v1463_v39, %v3605_v35 }
 0x29c   : > { %v2086_v34 = vmax.f32 %v2054_v28, 0.0  ;;  %v1824_v45 = vadd.f32 %v1776_v19, %v1664_v2 }
 0x29d   : > { %v1938_v29 = vpop.f32.mrf.mxu0 }
 0x29e   : > { %2119 = vst.msk [vmem:[%s3705_s22 + $0xb8] sm:$0xff] %vm2095_vm4, %v2086_v34  ;;  %v1983_v43 = vadd.f32 %v1935_v26, %v1824_v45 }
 0x2a0   : > { %v2019_v52 = vmul.f32 %v3683_v12, %v1983_v43 }
 0x2a1   : > { %v1619_v44 = vpop.f32.mrf.mxu2 }
 0x2a2   : > { %v1779_v48 = vpop.f32.mrf.mxu3  ;;  %v2055_v51 = vadd.f32 %v3690_v18, %v2019_v52  ;;  %v1665_v0 = vadd.f32 %v1619_v44, %v1509_v11  ;;  %v1466_v14 = vpop.f32.mrf.mxu1 }
 0x2a3   : > { %v1510_v60 = vadd.f32 %v1466_v14, %v3616_v53 }
 0x2a4   : > { %v2087_v31 = vmax.f32 %v2055_v51, 0.0  ;;  %v1825_v17 = vadd.f32 %v1779_v48, %v1665_v0 }
 0x2a5   : > { %v1941_v36 = vpop.f32.mrf.mxu0 }
 0x2a6   : > { %2120 = vst.msk [vmem:[%s3705_s22 + $0xc0] sm:$0xff] %vm2095_vm4, %v2087_v31  ;;  %v1984_v49 = vadd.f32 %v1938_v29, %v1825_v17 }
 0x2a8   : > { %v2020_v46 = vmul.f32 %v3683_v12, %v1984_v49 }
 0x2a9   : > { %v1622_v35 = vpop.f32.mrf.mxu2 }
 0x2aa   : > { %v1782_v33 = vpop.f32.mrf.mxu3  ;;  %v2056_v10 = vadd.f32 %v3690_v18, %v2020_v46  ;;  %v1666_v40 = vadd.f32 %v1622_v35, %v1510_v60  ;;  %v1469_v61 = vpop.f32.mrf.mxu1 }
 0x2ab   : > { %v1511_v15 = vadd.f32 %v1469_v61, %v3627_v42 }
 0x2ac   : > { %v2088_v1 = vmax.f32 %v2056_v10, 0.0  ;;  %v1826_v38 = vadd.f32 %v1782_v33, %v1666_v40 }
 0x2ad   : > { %v1944_v23 = vpop.f32.mrf.mxu0 }
 0x2ae   : > { %2121 = vst.msk [vmem:[%s3705_s22 + $0xc8] sm:$0xff] %vm2095_vm4, %v2088_v1  ;;  %v1985_v9 = vadd.f32 %v1941_v36, %v1826_v38 }
 0x2b0   : > { %v2021_v55 = vmul.f32 %v3683_v12, %v1985_v9 }
 0x2b1   : > { %v1625_v53 = vpop.f32.mrf.mxu2 }
 0x2b2   : > { %v1785_v32 = vpop.f32.mrf.mxu3  ;;  %v2057_v3 = vadd.f32 %v3690_v18, %v2021_v55  ;;  %v1667_v54 = vadd.f32 %v1625_v53, %v1511_v15  ;;  %v1472_v41 = vpop.f32.mrf.mxu1 }
 0x2b3   : > { %v1512_v22 = vadd.f32 %v1472_v41, %v3638_v30 }
 0x2b4   : > { %v2089_v13 = vmax.f32 %v2057_v3, 0.0  ;;  %v1827_v24 = vadd.f32 %v1785_v32, %v1667_v54 }
 0x2b5   : > { %v1947_v50 = vpop.f32.mrf.mxu0 }
 0x2b6   : > { %2122 = vst.msk [vmem:[%s3705_s22 + $0xd0] sm:$0xff] %vm2095_vm4, %v2089_v13  ;;  %v1986_v58 = vadd.f32 %v1944_v23, %v1827_v24 }
 0x2b8   : > { %v2022_v37 = vmul.f32 %v3683_v12, %v1986_v58 }
 0x2b9   : > { %v1628_v42 = vpop.f32.mrf.mxu2 }
 0x2ba   : > { %v1788_v16 = vpop.f32.mrf.mxu3  ;;  %v2058_v62 = vadd.f32 %v3690_v18, %v2022_v37  ;;  %v1668_v56 = vadd.f32 %v1628_v42, %v1512_v22  ;;  %v1475_v57 = vpop.f32.mrf.mxu1 }
 0x2bb   : > { %v1513_v7 = vadd.f32 %v1475_v57, %v3649_v59 }
 0x2bc   : > { %v2090_v20 = vmax.f32 %v2058_v62, 0.0  ;;  %v1828_v63 = vadd.f32 %v1788_v16, %v1668_v56 }
 0x2bd   : > { %v1950_v21 = vpop.f32.mrf.mxu0 }
 0x2be   : > { %2123 = vst.msk [vmem:[%s3705_s22 + $0xd8] sm:$0xff] %vm2095_vm4, %v2090_v20  ;;  %v1987_v47 = vadd.f32 %v1947_v50, %v1828_v63 }
 0x2c0   : > { %v2023_v26 = vmul.f32 %v3683_v12, %v1987_v47 }
 0x2c1   : > { %v1631_v30 = vpop.f32.mrf.mxu2 }
 0x2c2   : > { %v1791_v4 = vpop.f32.mrf.mxu3  ;;  %v2059_v5 = vadd.f32 %v3690_v18, %v2023_v26  ;;  %v1669_v8 = vadd.f32 %v1631_v30, %v1513_v7  ;;  %v1478_v25 = vpop.f32.mrf.mxu1 }
 0x2c3   : > { %v1514_v39 = vadd.f32 %v1478_v25, %v3660_v6 }
 0x2c4   : > { %v2091_v19 = vmax.f32 %v2059_v5, 0.0  ;;  %v1829_v28 = vadd.f32 %v1791_v4, %v1669_v8 }
 0x2c5   : > { %v1953_v45 = vpop.f32.mrf.mxu0 }
 0x2c6   : > { %2124 = vst.msk [vmem:[%s3705_s22 + $0xe0] sm:$0xff] %vm2095_vm4, %v2091_v19  ;;  %v1988_v2 = vadd.f32 %v1950_v21, %v1829_v28 }
 0x2c8   : > { %v2024_v34 = vmul.f32 %v3683_v12, %v1988_v2 }
 0x2c9   : > { %v1634_v59 = vpop.f32.mrf.mxu2 }
 0x2ca   : > { %v1794_v29 = vpop.f32.mrf.mxu3  ;;  %v2060_v43 = vadd.f32 %v3690_v18, %v2024_v34  ;;  %v1670_v11 = vadd.f32 %v1634_v59, %v1514_v39  ;;  %v1481_v48 = vpop.f32.mrf.mxu1 }
 0x2cb   : > { %v1515_v0 = vadd.f32 %v1481_v48, %v3671_v27 }
 0x2cc   : > { %v2092_v52 = vmax.f32 %v2060_v43, 0.0  ;;  %v1830_v44 = vadd.f32 %v1794_v29, %v1670_v11 }
 0x2cd   : > { %v1956_v49 = vpop.f32.mrf.mxu0 }
 0x2ce   : > { %2125 = vst.msk [vmem:[%s3705_s22 + $0xe8] sm:$0xff] %vm2095_vm4, %v2092_v52  ;;  %v1989_v51 = vadd.f32 %v1953_v45, %v1830_v44 }
 0x2d0   : > { %v2025_v6 = vmul.f32 %v3683_v12, %v1989_v51 }
 0x2d1   : > { %v1637_v14 = vpop.f32.mrf.mxu2 }
 0x2d2   : > { %v1797_v31 = vpop.f32.mrf.mxu3  ;;  %v2061_v17 = vadd.f32 %v3690_v18, %v2025_v6  ;;  %v1671_v36 = vadd.f32 %v1637_v14, %v1515_v0 }
 0x2d4   : > { %v2093_v60 = vmax.f32 %v2061_v17, 0.0  ;;  %v1831_v46 = vadd.f32 %v1797_v31, %v1671_v36 }
 0x2d6   : > { %2126 = vst.msk [vmem:[%s3705_s22 + $0xf0] sm:$0xff] %vm2095_vm4, %v2093_v60  ;;  %v1990_v35 = vadd.f32 %v1956_v49, %v1831_v46 }
 0x2d8   : > { %v2026_v33 = vmul.f32 %v3683_v12, %v1990_v35 }
 0x2da   : > { %v2062_v10 = vadd.f32 %v3690_v18, %v2026_v33 }
 0x2dc   : > { %v2094_v40 = vmax.f32 %v2062_v10, 0.0 }
 0x2de   : > { %2127 = vst.msk [vmem:[%s3705_s22 + $0xf8] sm:$0xff] %vm2095_vm4, %v2094_v40 }
 0x2df PF: > { %s14_s15 = sadd.s32 1, %s2543_s15  }
 0x2e0   : > { %p11_p4 = scmp.ge.s32.totalorder %s14_s15, 4  }
 0x2e2   :  { %13 = sbr.rel (!%p11_p4) target bundleno = 1 (0x1), region = 74 }

</bundles_post_ra>
